<compile_context>
chip_gen: v6e
topology: v6e:2x2x1
jax: 0.10.0
libtpu: 0.0.40
codegen_flags: <defaults>
</compile_context>

<pallas_src>
import functools

import jax
import jax.numpy as jnp
from jax.experimental import pallas as pl
from jax.experimental.pallas import tpu as pltpu


def _round_up(x, m):
    return (x + m - 1) // m * m


def _gru_recurrent_kernel(gi_ref, h0_ref, wh_ref, bhn_ref, out_ref, hlast_ref,
                          *, t_block, h_pad, b_blk, seq_len):
    """One grid step = t_block time steps of the GRU recurrence for one batch block.

    gi_ref   : (t_block, B_blk, 3*H_pad)  x @ Wi^T + (b_i + folded b_hr/b_hz), time-major
    h0_ref   : (B_blk, H_pad)             initial hidden state
    wh_ref   : (H_pad, 3*H_pad)           pre-transposed stacked [W_hr | W_hz | W_hn]
    bhn_ref  : (1, H_pad)                 b_hn (must stay inside r * (h@W_hn + b_hn))
    out_ref  : (B_blk, t_block, H_pad)    hidden state per step, batch-major (no wrapper transpose)
    hlast_ref: (B_blk, H_pad)             resident carry == final hidden state
    """
    t_blk = pl.program_id(1)
    H = h_pad

    @pl.when(t_blk == 0)
    def _():
        hlast_ref[...] = h0_ref[...]

    h = hlast_ref[...]                   # (B_blk, H_pad) f32 carried hidden state
    wh = wh_ref[...]                     # resident weight (f32 or bf16)
    # Gate slices land exactly on 128-lane tile boundaries: free views.
    wh_r = wh[:, 0:H]
    wh_z = wh[:, H:2 * H]
    wh_n = wh[:, 2 * H:3 * H]
    # Hoist the b_hn broadcast once per grid block (JAX does not CSE broadcast_in_dim).
    bhn = jnp.broadcast_to(bhn_ref[...], (b_blk, H))

    # Small fixed trip count -> static unroll gives the scheduler full visibility.
    for i in range(t_block):
        gi = gi_ref[i]                                       # (B_blk, 3*H_pad)
        hw = h.astype(wh.dtype)                              # only the MXU input goes bf16
        # Gate-by-gate dots: same MXU work, bounded vreg live ranges at large H.
        gh_r = jnp.dot(hw, wh_r, preferred_element_type=jnp.float32)
        r_t = jax.nn.sigmoid(gi[:, 0:H] + gh_r)
        gh_z = jnp.dot(hw, wh_z, preferred_element_type=jnp.float32)
        z_t = jax.nn.sigmoid(gi[:, H:2 * H] + gh_z)
        gh_n = jnp.dot(hw, wh_n, preferred_element_type=jnp.float32)
        n_t = jnp.tanh(gi[:, 2 * H:3 * H] + r_t * (gh_n + bhn))
        h_new = (1.0 - z_t) * n_t + z_t * h

        out_ref[:, i, :] = h_new.astype(out_ref.dtype)       # lane-dense (H_pad) store

        if seq_len % t_block == 0:
            h = h_new
        else:
            # Freeze the carry on padded (out-of-range) time steps.
            t_global = t_blk * t_block + i
            h = jnp.where(t_global < seq_len, h_new, h)

    # Carry written once per grid block (not once per time step).
    hlast_ref[...] = h


def gru_forward(inputs, hidden_states, params, *, t_block=None, wh_dtype=None):
    """Pallas GRU forward.

    inputs        : (batch, seq, input_size) float32
    hidden_states : (1, batch, hidden_size)  float32
    returns (outputs (batch, seq, hidden), final hidden (1, batch, hidden))
    """
    f32 = jnp.float32
    B, S, I = inputs.shape
    H = hidden_states.shape[2]

    B_pad = _round_up(B, 8)       # sublane alignment
    H_pad = _round_up(H, 128)     # lane alignment
    G = 3 * H_pad

    # Time block shrinks with H so the double-buffered gi/out blocks fit v7x's 64 MiB.
    if t_block is None:
        base = 32 if H_pad <= 512 else (16 if H_pad <= 1024 else 8)
        t_block = min(base, _round_up(S, 8))
    S_pad = _round_up(S, t_block)

    # bf16 weights only when the resident Wh would otherwise dominate VMEM; gates,
    # carry and MXU accumulation stay f32 (accuracy + v5e has no bf16 VPU/EUP).
    if wh_dtype is None:
        wh_dtype = jnp.bfloat16 if H_pad >= 1024 else f32

    # Two batch blocks -> a "parallel" grid axis for v7x's 2 TensorCores when batch allows.
    nb = 2 if (B_pad >= 16 and B_pad % 16 == 0) else 1
    B_blk = B_pad // nb

    # --- Pre-transposed, gate-stacked, lane-aligned weights/biases (built once). ---
    def stack_gates_w(ws, in_dim, in_dim_pad, dtype):
        cols = []
        for w in ws:
            wt = jnp.zeros((in_dim_pad, H_pad), f32)
            wt = wt.at[:in_dim, :H].set(w.astype(f32).T)
            cols.append(wt)
        return jnp.concatenate(cols, axis=1).astype(dtype)   # (in_dim_pad, 3*H_pad)

    def pad_b(b):
        return jnp.zeros((H_pad,), f32).at[:H].set(b.astype(f32))

    wi_t = stack_gates_w([params["w_ir"], params["w_iz"], params["w_in"]], I, I, f32)
    wh_t = stack_gates_w([params["w_hr"], params["w_hz"], params["w_hn"]], H, H_pad, wh_dtype)

    # b_hr / b_hz have no h-dependence -> folded into gi. b_hn must NOT be folded.
    bi_eff = jnp.concatenate([
        pad_b(params["b_ir"] + params["b_hr"]),
        pad_b(params["b_iz"] + params["b_hz"]),
        pad_b(params["b_in"]),
    ])                                                        # (3*H_pad,)
    bhn = pad_b(params["b_hn"])[None, :]                      # (1, H_pad)

    # --- Hoisted input projection: ONE big matmul over all (batch, time) rows. ---
    # Pad x BEFORE the projection (I-wide pad, ~3*H_pad/I less HBM traffic than padding
    # gi_all afterwards); time-major layout fused into the einsum output.
    x = jnp.pad(inputs.astype(f32), ((0, B_pad - B), (0, S_pad - S), (0, 0)))
    gi_all = jnp.einsum("bsi,ig->sbg", x, wi_t,
                        preferred_element_type=f32) + bi_eff[None, None, :]   # (S_pad, B_pad, G)

    h0 = jnp.zeros((B_pad, H_pad), f32).at[:B, :H].set(hidden_states[0].astype(f32))

    kernel = functools.partial(_gru_recurrent_kernel,
                               t_block=t_block, h_pad=H_pad, b_blk=B_blk, seq_len=S)

    # Deterministic VMEM budget: resident (single-buffered) weight + double-buffered blocks.
    wh_item = jnp.dtype(wh_dtype).itemsize
    need = (H_pad * G * wh_item                 # Wh (Buffered(1))
            + 8 * H_pad * 4                     # b_hn (padded tile)
            + 2 * B_blk * H_pad * 4             # h0
            + 2 * t_block * B_blk * G * 4       # gi block, double-buffered
            + 2 * B_blk * t_block * H_pad * 4   # out block, double-buffered
            + 2 * B_blk * H_pad * 4)            # carry output
    vmem_limit = int(min(max(2 * need + (2 << 20), 32 << 20), 120 << 20))

    def build_grid_spec(single_buffer_residents):
        def resident(shape, index_map):
            if single_buffer_residents:
                return pl.BlockSpec(shape, index_map, pipeline_mode=pl.Buffered(1))
            return pl.BlockSpec(shape, index_map)
        return pltpu.PrefetchScalarGridSpec(
            num_scalar_prefetch=0,
            grid=(nb, S_pad // t_block),
            in_specs=[
                pl.BlockSpec((t_block, B_blk, G), lambda b, t: (t, b, 0)),     # gi (time-blocked)
                resident((B_blk, H_pad), lambda b, t: (b, 0)),                 # h0
                resident((H_pad, G), lambda b, t: (0, 0)),                     # Wh^T (resident)
                resident((1, H_pad), lambda b, t: (0, 0)),                     # b_hn (resident)
            ],
            out_specs=[
                pl.BlockSpec((B_blk, t_block, H_pad), lambda b, t: (b, t, 0)),  # batch-major hidden
                pl.BlockSpec((B_blk, H_pad), lambda b, t: (b, 0)),              # carry / final hidden
            ],
        )

    out_shape = (
        jax.ShapeDtypeStruct((B_pad, S_pad, H_pad), f32),
        jax.ShapeDtypeStruct((B_pad, H_pad), f32),
    )
    compiler_params = pltpu.CompilerParams(
        dimension_semantics=("parallel", "arbitrary"),   # time is sequential; batch blocks independent
        vmem_limit_bytes=vmem_limit,
    )

    try:
        out_bm, h_last = pl.pallas_call(
            kernel, out_shape=out_shape,
            grid_spec=build_grid_spec(single_buffer_residents=True),
            compiler_params=compiler_params,
        )(gi_all, h0, wh_t, bhn)
    except Exception:
        # Fallback if this jax build rejects pipeline_mode=pl.Buffered(1):
        # identical kernel, default double-buffering for the resident inputs.
        out_bm, h_last = pl.pallas_call(
            kernel, out_shape=out_shape,
            grid_spec=build_grid_spec(single_buffer_residents=False),
            compiler_params=compiler_params,
        )(gi_all, h0, wh_t, bhn)

    outputs = out_bm[:B, :S, :H]             # already batch-major: slice only, no swapaxes
    return outputs, h_last[None, :B, :H]     # (1, B, H)


def gru_reference(inputs, hidden_states, p):
    """Pure-JAX reference matching the PyTorch forward."""
    B, S, I = inputs.shape
    h = hidden_states[0]
    outs = []
    for t in range(S):
        x = inputs[:, t, :]
        r = jax.nn.sigmoid(x @ p["w_ir"].T + p["b_ir"] + h @ p["w_hr"].T + p["b_hr"])
        z = jax.nn.sigmoid(x @ p["w_iz"].T + p["b_iz"] + h @ p["w_hz"].T + p["b_hz"])
        n = jnp.tanh(x @ p["w_in"].T + p["b_in"] + r * (h @ p["w_hn"].T + p["b_hn"]))
        h = (1.0 - z) * n + z * h
        outs.append(h)
    return jnp.stack(outs, axis=1), h[None, :, :]


def init_params(key, input_size, hidden_size):
    bound = (1.0 / hidden_size) ** 0.5
    names_shapes = [
        ("w_ir", (hidden_size, input_size)), ("w_iz", (hidden_size, input_size)),
        ("w_in", (hidden_size, input_size)),
        ("b_ir", (hidden_size,)), ("b_iz", (hidden_size,)), ("b_in", (hidden_size,)),
        ("w_hr", (hidden_size, hidden_size)), ("w_hz", (hidden_size, hidden_size)),
        ("w_hn", (hidden_size, hidden_size)),
        ("b_hr", (hidden_size,)), ("b_hz", (hidden_size,)), ("b_hn", (hidden_size,)),
    ]
    keys = jax.random.split(key, len(names_shapes))
    return {
        name: jax.random.uniform(k, shape, jnp.float32, minval=-bound, maxval=bound)
        for (name, shape), k in zip(names_shapes, keys)
    }


if __name__ == "__main__":
    batch, seq, input_size, hidden_size = 2, 8, 16, 32

    key = jax.random.PRNGKey(0)
    k_params, k_x, k_h = jax.random.split(key, 3)
    params = init_params(k_params, input_size, hidden_size)
    inputs = jax.random.normal(k_x, (batch, seq, input_size), jnp.float32)
    hidden0 = jax.random.normal(k_h, (1, batch, hidden_size), jnp.float32)

    outputs, h_final = gru_forward(inputs, hidden0, params)
    jax.block_until_ready((outputs, h_final))

    ref_out, ref_h = gru_reference(inputs, hidden0, params)
    assert outputs.shape == (batch, seq, hidden_size)
    assert h_final.shape == (1, batch, hidden_size)
    assert jnp.allclose(outputs, ref_out, atol=1e-5, rtol=1e-5)
    assert jnp.allclose(h_final, ref_h, atol=1e-5, rtol=1e-5)

    print("KERNEL_OK")
</pallas_src>

<mosaic_0001>
module attributes {stable_mosaic.version = 11 : i64} {
  func.func @_gru_recurrent_kernel(%arg0: i32, %arg1: i32, %arg2: memref<8x8x384xf32, #tpu.memory_space<vmem>>, %arg3: memref<8x128xf32, #tpu.memory_space<vmem>>, %arg4: memref<128x384xf32, #tpu.memory_space<vmem>>, %arg5: memref<1x128xf32, #tpu.memory_space<vmem>>, %arg6: memref<8x8x128xf32, #tpu.memory_space<vmem>>, %arg7: memref<8x128xf32, #tpu.memory_space<vmem>>) attributes {dimension_semantics = [#tpu.dimension_semantics<parallel>, #tpu.dimension_semantics<arbitrary>], iteration_bounds = array<i64: 1, 1>, scalar_prefetch = 0 : i64, scratch_operands = 0 : i64, tpu.core_type = #tpu.core_type<tc>, window_params = [{transform_indices = @transform_0, window_bounds = array<i64: 8, 8, 384>}, {pipeline_mode = #tpu.pipeline_mode<synchronous>, transform_indices = @transform_1, window_bounds = array<i64: 8, 128>}, {pipeline_mode = #tpu.pipeline_mode<synchronous>, transform_indices = @transform_2, window_bounds = array<i64: 128, 384>}, {pipeline_mode = #tpu.pipeline_mode<synchronous>, transform_indices = @transform_3, window_bounds = array<i64: 1, 128>}, {transform_indices = @transform_4, window_bounds = array<i64: 8, 8, 128>}, {transform_indices = @transform_5, window_bounds = array<i64: 8, 128>}]} {
    %c0_i32 = arith.constant 0 : i32
    %0 = arith.cmpi eq, %arg1, %c0_i32 : i32
    %1 = arith.extui %0 : i1 to i32
    %c0_i32_0 = arith.constant 0 : i32
    %2 = arith.cmpi ne, %1, %c0_i32_0 : i32
    scf.if %2 {
      %c0_96 = arith.constant 0 : index
      %c0_97 = arith.constant 0 : index
      %268 = vector.load %arg3[%c0_96, %c0_97] : memref<8x128xf32, #tpu.memory_space<vmem>>, vector<8x128xf32>
      %c0_98 = arith.constant 0 : index
      %c0_99 = arith.constant 0 : index
      %269 = vector.load %arg7[%c0_98, %c0_99] : memref<8x128xf32, #tpu.memory_space<vmem>>, vector<8x128xf32>
      tpu.vector_store %arg7[%c0_98, %c0_99], %268 {strides = array<i32>} : memref<8x128xf32, #tpu.memory_space<vmem>>, vector<8x128xf32>,
    } else {
    }
    %c0 = arith.constant 0 : index
    %c0_1 = arith.constant 0 : index
    %3 = vector.load %arg7[%c0, %c0_1] : memref<8x128xf32, #tpu.memory_space<vmem>>, vector<8x128xf32>
    %c0_2 = arith.constant 0 : index
    %c0_3 = arith.constant 0 : index
    %4 = vector.load %arg4[%c0_2, %c0_3] : memref<128x384xf32, #tpu.memory_space<vmem>>, vector<128x384xf32>
    %5 = vector.extract_strided_slice %4 {offsets = [0, 0], sizes = [128, 128], strides = [1, 1]} : vector<128x384xf32> to vector<128x128xf32>
    %6 = vector.extract_strided_slice %4 {offsets = [0, 128], sizes = [128, 128], strides = [1, 1]} : vector<128x384xf32> to vector<128x128xf32>
    %7 = vector.extract_strided_slice %4 {offsets = [0, 256], sizes = [128, 128], strides = [1, 1]} : vector<128x384xf32> to vector<128x128xf32>
    %c0_4 = arith.constant 0 : index
    %c0_5 = arith.constant 0 : index
    %8 = vector.load %arg5[%c0_4, %c0_5] : memref<1x128xf32, #tpu.memory_space<vmem>>, vector<1x128xf32>
    %9 = vector.shape_cast %8 : vector<1x128xf32> to vector<1x128xf32>
    %10 = vector.broadcast %9 : vector<1x128xf32> to vector<8x128xf32>
    %c0_6 = arith.constant 0 : index
    %c0_7 = arith.constant 0 : index
    %c0_8 = arith.constant 0 : index
    %11 = vector.load %arg2[%c0_6, %c0_7, %c0_8] : memref<8x8x384xf32, #tpu.memory_space<vmem>>, vector<1x8x384xf32>
    %12 = vector.shape_cast %11 : vector<1x8x384xf32> to vector<8x384xf32>
    %cst = arith.constant dense<0.000000e+00> : vector<8x128xf32>
    %13 = tpu.matmul %3, %5, %cst {dimension_numbers = #tpu.dot_dimension_numbers<[1], [0], [0], [1], [0, 0, 1, 1], [], []>} : vector<8x128xf32>, vector<128x128xf32>, vector<8x128xf32> -> vector<8x128xf32>
    %14 = vector.extract_strided_slice %12 {offsets = [0, 0], sizes = [8, 128], strides = [1, 1]} : vector<8x384xf32> to vector<8x128xf32>
    %15 = arith.addf %14, %13 : vector<8x128xf32>
    %16 = arith.negf %15 : vector<8x128xf32>
    %17 = math.exp %16 : vector<8x128xf32>
    %cst_9 = arith.constant 1.000000e+00 : f32
    %18 = vector.broadcast %cst_9 : f32 to vector<8x128xf32>
    %19 = arith.addf %18, %17 : vector<8x128xf32>
    %20 = arith.divf %18, %19 : vector<8x128xf32>
    %cst_10 = arith.constant dense<0.000000e+00> : vector<8x128xf32>
    %21 = tpu.matmul %3, %6, %cst_10 {dimension_numbers = #tpu.dot_dimension_numbers<[1], [0], [0], [1], [0, 0, 1, 1], [], []>} : vector<8x128xf32>, vector<128x128xf32>, vector<8x128xf32> -> vector<8x128xf32>
    %22 = vector.extract_strided_slice %12 {offsets = [0, 128], sizes = [8, 128], strides = [1, 1]} : vector<8x384xf32> to vector<8x128xf32>
    %23 = arith.addf %22, %21 : vector<8x128xf32>
    %24 = arith.negf %23 : vector<8x128xf32>
    %25 = math.exp %24 : vector<8x128xf32>
    %cst_11 = arith.constant 1.000000e+00 : f32
    %26 = vector.broadcast %cst_11 : f32 to vector<8x128xf32>
    %27 = arith.addf %26, %25 : vector<8x128xf32>
    %28 = arith.divf %26, %27 : vector<8x128xf32>
    %cst_12 = arith.constant dense<0.000000e+00> : vector<8x128xf32>
    %29 = tpu.matmul %3, %7, %cst_12 {dimension_numbers = #tpu.dot_dimension_numbers<[1], [0], [0], [1], [0, 0, 1, 1], [], []>} : vector<8x128xf32>, vector<128x128xf32>, vector<8x128xf32> -> vector<8x128xf32>
    %30 = vector.extract_strided_slice %12 {offsets = [0, 256], sizes = [8, 128], strides = [1, 1]} : vector<8x384xf32> to vector<8x128xf32>
    %31 = arith.addf %29, %10 : vector<8x128xf32>
    %32 = arith.mulf %20, %31 : vector<8x128xf32>
    %33 = arith.addf %30, %32 : vector<8x128xf32>
    %34 = math.tanh %33 : vector<8x128xf32>
    %cst_13 = arith.constant 1.000000e+00 : f32
    %35 = vector.broadcast %cst_13 : f32 to vector<8x128xf32>
    %36 = arith.subf %35, %28 : vector<8x128xf32>
    %37 = arith.mulf %36, %34 : vector<8x128xf32>
    %38 = arith.mulf %28, %3 : vector<8x128xf32>
    %39 = arith.addf %37, %38 : vector<8x128xf32>
    %c0_14 = arith.constant 0 : index
    %c0_15 = arith.constant 0 : index
    %c0_16 = arith.constant 0 : index
    %40 = vector.load %arg6[%c0_14, %c0_15, %c0_16] : memref<8x8x128xf32, #tpu.memory_space<vmem>>, vector<8x1x128xf32>
    %41 = vector.shape_cast %40 : vector<8x1x128xf32> to vector<8x128xf32>
    %42 = vector.shape_cast %39 : vector<8x128xf32> to vector<8x1x128xf32>
    tpu.vector_store %arg6[%c0_14, %c0_15, %c0_16], %42 {strides = array<i32>} : memref<8x8x128xf32, #tpu.memory_space<vmem>>, vector<8x1x128xf32>,
    %c1 = arith.constant 1 : index
    %c0_17 = arith.constant 0 : index
    %c0_18 = arith.constant 0 : index
    %43 = vector.load %arg2[%c1, %c0_17, %c0_18] : memref<8x8x384xf32, #tpu.memory_space<vmem>>, vector<1x8x384xf32>
    %44 = vector.shape_cast %43 : vector<1x8x384xf32> to vector<8x384xf32>
    %cst_19 = arith.constant dense<0.000000e+00> : vector<8x128xf32>
    %45 = tpu.matmul %39, %5, %cst_19 {dimension_numbers = #tpu.dot_dimension_numbers<[1], [0], [0], [1], [0, 0, 1, 1], [], []>} : vector<8x128xf32>, vector<128x128xf32>, vector<8x128xf32> -> vector<8x128xf32>
    %46 = vector.extract_strided_slice %44 {offsets = [0, 0], sizes = [8, 128], strides = [1, 1]} : vector<8x384xf32> to vector<8x128xf32>
    %47 = arith.addf %46, %45 : vector<8x128xf32>
    %48 = arith.negf %47 : vector<8x128xf32>
    %49 = math.exp %48 : vector<8x128xf32>
    %cst_20 = arith.constant 1.000000e+00 : f32
    %50 = vector.broadcast %cst_20 : f32 to vector<8x128xf32>
    %51 = arith.addf %50, %49 : vector<8x128xf32>
    %52 = arith.divf %50, %51 : vector<8x128xf32>
    %cst_21 = arith.constant dense<0.000000e+00> : vector<8x128xf32>
    %53 = tpu.matmul %39, %6, %cst_21 {dimension_numbers = #tpu.dot_dimension_numbers<[1], [0], [0], [1], [0, 0, 1, 1], [], []>} : vector<8x128xf32>, vector<128x128xf32>, vector<8x128xf32> -> vector<8x128xf32>
    %54 = vector.extract_strided_slice %44 {offsets = [0, 128], sizes = [8, 128], strides = [1, 1]} : vector<8x384xf32> to vector<8x128xf32>
    %55 = arith.addf %54, %53 : vector<8x128xf32>
    %56 = arith.negf %55 : vector<8x128xf32>
    %57 = math.exp %56 : vector<8x128xf32>
    %cst_22 = arith.constant 1.000000e+00 : f32
    %58 = vector.broadcast %cst_22 : f32 to vector<8x128xf32>
    %59 = arith.addf %58, %57 : vector<8x128xf32>
    %60 = arith.divf %58, %59 : vector<8x128xf32>
    %cst_23 = arith.constant dense<0.000000e+00> : vector<8x128xf32>
    %61 = tpu.matmul %39, %7, %cst_23 {dimension_numbers = #tpu.dot_dimension_numbers<[1], [0], [0], [1], [0, 0, 1, 1], [], []>} : vector<8x128xf32>, vector<128x128xf32>, vector<8x128xf32> -> vector<8x128xf32>
    %62 = vector.extract_strided_slice %44 {offsets = [0, 256], sizes = [8, 128], strides = [1, 1]} : vector<8x384xf32> to vector<8x128xf32>
    %63 = arith.addf %61, %10 : vector<8x128xf32>
    %64 = arith.mulf %52, %63 : vector<8x128xf32>
    %65 = arith.addf %62, %64 : vector<8x128xf32>
    %66 = math.tanh %65 : vector<8x128xf32>
    %cst_24 = arith.constant 1.000000e+00 : f32
    %67 = vector.broadcast %cst_24 : f32 to vector<8x128xf32>
    %68 = arith.subf %67, %60 : vector<8x128xf32>
    %69 = arith.mulf %68, %66 : vector<8x128xf32>
    %70 = arith.mulf %60, %39 : vector<8x128xf32>
    %71 = arith.addf %69, %70 : vector<8x128xf32>
    %c0_25 = arith.constant 0 : index
    %c1_26 = arith.constant 1 : index
    %c0_27 = arith.constant 0 : index
    %72 = vector.load %arg6[%c0_25, %c1_26, %c0_27] : memref<8x8x128xf32, #tpu.memory_space<vmem>>, vector<8x1x128xf32>
    %73 = vector.shape_cast %72 : vector<8x1x128xf32> to vector<8x128xf32>
    %74 = vector.shape_cast %71 : vector<8x128xf32> to vector<8x1x128xf32>
    tpu.vector_store %arg6[%c0_25, %c1_26, %c0_27], %74 {strides = array<i32>} : memref<8x8x128xf32, #tpu.memory_space<vmem>>, vector<8x1x128xf32>,
    %c2 = arith.constant 2 : index
    %c0_28 = arith.constant 0 : index
    %c0_29 = arith.constant 0 : index
    %75 = vector.load %arg2[%c2, %c0_28, %c0_29] : memref<8x8x384xf32, #tpu.memory_space<vmem>>, vector<1x8x384xf32>
    %76 = vector.shape_cast %75 : vector<1x8x384xf32> to vector<8x384xf32>
    %cst_30 = arith.constant dense<0.000000e+00> : vector<8x128xf32>
    %77 = tpu.matmul %71, %5, %cst_30 {dimension_numbers = #tpu.dot_dimension_numbers<[1], [0], [0], [1], [0, 0, 1, 1], [], []>} : vector<8x128xf32>, vector<128x128xf32>, vector<8x128xf32> -> vector<8x128xf32>
    %78 = vector.extract_strided_slice %76 {offsets = [0, 0], sizes = [8, 128], strides = [1, 1]} : vector<8x384xf32> to vector<8x128xf32>
    %79 = arith.addf %78, %77 : vector<8x128xf32>
    %80 = arith.negf %79 : vector<8x128xf32>
    %81 = math.exp %80 : vector<8x128xf32>
    %cst_31 = arith.constant 1.000000e+00 : f32
    %82 = vector.broadcast %cst_31 : f32 to vector<8x128xf32>
    %83 = arith.addf %82, %81 : vector<8x128xf32>
    %84 = arith.divf %82, %83 : vector<8x128xf32>
    %cst_32 = arith.constant dense<0.000000e+00> : vector<8x128xf32>
    %85 = tpu.matmul %71, %6, %cst_32 {dimension_numbers = #tpu.dot_dimension_numbers<[1], [0], [0], [1], [0, 0, 1, 1], [], []>} : vector<8x128xf32>, vector<128x128xf32>, vector<8x128xf32> -> vector<8x128xf32>
    %86 = vector.extract_strided_slice %76 {offsets = [0, 128], sizes = [8, 128], strides = [1, 1]} : vector<8x384xf32> to vector<8x128xf32>
    %87 = arith.addf %86, %85 : vector<8x128xf32>
    %88 = arith.negf %87 : vector<8x128xf32>
    %89 = math.exp %88 : vector<8x128xf32>
    %cst_33 = arith.constant 1.000000e+00 : f32
    %90 = vector.broadcast %cst_33 : f32 to vector<8x128xf32>
    %91 = arith.addf %90, %89 : vector<8x128xf32>
    %92 = arith.divf %90, %91 : vector<8x128xf32>
    %cst_34 = arith.constant dense<0.000000e+00> : vector<8x128xf32>
    %93 = tpu.matmul %71, %7, %cst_34 {dimension_numbers = #tpu.dot_dimension_numbers<[1], [0], [0], [1], [0, 0, 1, 1], [], []>} : vector<8x128xf32>, vector<128x128xf32>, vector<8x128xf32> -> vector<8x128xf32>
    %94 = vector.extract_strided_slice %76 {offsets = [0, 256], sizes = [8, 128], strides = [1, 1]} : vector<8x384xf32> to vector<8x128xf32>
    %95 = arith.addf %93, %10 : vector<8x128xf32>
    %96 = arith.mulf %84, %95 : vector<8x128xf32>
    %97 = arith.addf %94, %96 : vector<8x128xf32>
    %98 = math.tanh %97 : vector<8x128xf32>
    %cst_35 = arith.constant 1.000000e+00 : f32
    %99 = vector.broadcast %cst_35 : f32 to vector<8x128xf32>
    %100 = arith.subf %99, %92 : vector<8x128xf32>
    %101 = arith.mulf %100, %98 : vector<8x128xf32>
    %102 = arith.mulf %92, %71 : vector<8x128xf32>
    %103 = arith.addf %101, %102 : vector<8x128xf32>
    %c0_36 = arith.constant 0 : index
    %c2_37 = arith.constant 2 : index
    %c0_38 = arith.constant 0 : index
    %104 = vector.load %arg6[%c0_36, %c2_37, %c0_38] : memref<8x8x128xf32, #tpu.memory_space<vmem>>, vector<8x1x128xf32>
    %105 = vector.shape_cast %104 : vector<8x1x128xf32> to vector<8x128xf32>
    %106 = vector.shape_cast %103 : vector<8x128xf32> to vector<8x1x128xf32>
    tpu.vector_store %arg6[%c0_36, %c2_37, %c0_38], %106 {strides = array<i32>} : memref<8x8x128xf32, #tpu.memory_space<vmem>>, vector<8x1x128xf32>,
    %c3 = arith.constant 3 : index
    %c0_39 = arith.constant 0 : index
    %c0_40 = arith.constant 0 : index
    %107 = vector.load %arg2[%c3, %c0_39, %c0_40] : memref<8x8x384xf32, #tpu.memory_space<vmem>>, vector<1x8x384xf32>
    %108 = vector.shape_cast %107 : vector<1x8x384xf32> to vector<8x384xf32>
    %cst_41 = arith.constant dense<0.000000e+00> : vector<8x128xf32>
    %109 = tpu.matmul %103, %5, %cst_41 {dimension_numbers = #tpu.dot_dimension_numbers<[1], [0], [0], [1], [0, 0, 1, 1], [], []>} : vector<8x128xf32>, vector<128x128xf32>, vector<8x128xf32> -> vector<8x128xf32>
    %110 = vector.extract_strided_slice %108 {offsets = [0, 0], sizes = [8, 128], strides = [1, 1]} : vector<8x384xf32> to vector<8x128xf32>
    %111 = arith.addf %110, %109 : vector<8x128xf32>
    %112 = arith.negf %111 : vector<8x128xf32>
    %113 = math.exp %112 : vector<8x128xf32>
    %cst_42 = arith.constant 1.000000e+00 : f32
    %114 = vector.broadcast %cst_42 : f32 to vector<8x128xf32>
    %115 = arith.addf %114, %113 : vector<8x128xf32>
    %116 = arith.divf %114, %115 : vector<8x128xf32>
    %cst_43 = arith.constant dense<0.000000e+00> : vector<8x128xf32>
    %117 = tpu.matmul %103, %6, %cst_43 {dimension_numbers = #tpu.dot_dimension_numbers<[1], [0], [0], [1], [0, 0, 1, 1], [], []>} : vector<8x128xf32>, vector<128x128xf32>, vector<8x128xf32> -> vector<8x128xf32>
    %118 = vector.extract_strided_slice %108 {offsets = [0, 128], sizes = [8, 128], strides = [1, 1]} : vector<8x384xf32> to vector<8x128xf32>
    %119 = arith.addf %118, %117 : vector<8x128xf32>
    %120 = arith.negf %119 : vector<8x128xf32>
    %121 = math.exp %120 : vector<8x128xf32>
    %cst_44 = arith.constant 1.000000e+00 : f32
    %122 = vector.broadcast %cst_44 : f32 to vector<8x128xf32>
    %123 = arith.addf %122, %121 : vector<8x128xf32>
    %124 = arith.divf %122, %123 : vector<8x128xf32>
    %cst_45 = arith.constant dense<0.000000e+00> : vector<8x128xf32>
    %125 = tpu.matmul %103, %7, %cst_45 {dimension_numbers = #tpu.dot_dimension_numbers<[1], [0], [0], [1], [0, 0, 1, 1], [], []>} : vector<8x128xf32>, vector<128x128xf32>, vector<8x128xf32> -> vector<8x128xf32>
    %126 = vector.extract_strided_slice %108 {offsets = [0, 256], sizes = [8, 128], strides = [1, 1]} : vector<8x384xf32> to vector<8x128xf32>
    %127 = arith.addf %125, %10 : vector<8x128xf32>
    %128 = arith.mulf %116, %127 : vector<8x128xf32>
    %129 = arith.addf %126, %128 : vector<8x128xf32>
    %130 = math.tanh %129 : vector<8x128xf32>
    %cst_46 = arith.constant 1.000000e+00 : f32
    %131 = vector.broadcast %cst_46 : f32 to vector<8x128xf32>
    %132 = arith.subf %131, %124 : vector<8x128xf32>
    %133 = arith.mulf %132, %130 : vector<8x128xf32>
    %134 = arith.mulf %124, %103 : vector<8x128xf32>
    %135 = arith.addf %133, %134 : vector<8x128xf32>
    %c0_47 = arith.constant 0 : index
    %c3_48 = arith.constant 3 : index
    %c0_49 = arith.constant 0 : index
    %136 = vector.load %arg6[%c0_47, %c3_48, %c0_49] : memref<8x8x128xf32, #tpu.memory_space<vmem>>, vector<8x1x128xf32>
    %137 = vector.shape_cast %136 : vector<8x1x128xf32> to vector<8x128xf32>
    %138 = vector.shape_cast %135 : vector<8x128xf32> to vector<8x1x128xf32>
    tpu.vector_store %arg6[%c0_47, %c3_48, %c0_49], %138 {strides = array<i32>} : memref<8x8x128xf32, #tpu.memory_space<vmem>>, vector<8x1x128xf32>,
    %c4 = arith.constant 4 : index
    %c0_50 = arith.constant 0 : index
    %c0_51 = arith.constant 0 : index
    %139 = vector.load %arg2[%c4, %c0_50, %c0_51] : memref<8x8x384xf32, #tpu.memory_space<vmem>>, vector<1x8x384xf32>
    %140 = vector.shape_cast %139 : vector<1x8x384xf32> to vector<8x384xf32>
    %cst_52 = arith.constant dense<0.000000e+00> : vector<8x128xf32>
    %141 = tpu.matmul %135, %5, %cst_52 {dimension_numbers = #tpu.dot_dimension_numbers<[1], [0], [0], [1], [0, 0, 1, 1], [], []>} : vector<8x128xf32>, vector<128x128xf32>, vector<8x128xf32> -> vector<8x128xf32>
    %142 = vector.extract_strided_slice %140 {offsets = [0, 0], sizes = [8, 128], strides = [1, 1]} : vector<8x384xf32> to vector<8x128xf32>
    %143 = arith.addf %142, %141 : vector<8x128xf32>
    %144 = arith.negf %143 : vector<8x128xf32>
    %145 = math.exp %144 : vector<8x128xf32>
    %cst_53 = arith.constant 1.000000e+00 : f32
    %146 = vector.broadcast %cst_53 : f32 to vector<8x128xf32>
    %147 = arith.addf %146, %145 : vector<8x128xf32>
    %148 = arith.divf %146, %147 : vector<8x128xf32>
    %cst_54 = arith.constant dense<0.000000e+00> : vector<8x128xf32>
    %149 = tpu.matmul %135, %6, %cst_54 {dimension_numbers = #tpu.dot_dimension_numbers<[1], [0], [0], [1], [0, 0, 1, 1], [], []>} : vector<8x128xf32>, vector<128x128xf32>, vector<8x128xf32> -> vector<8x128xf32>
    %150 = vector.extract_strided_slice %140 {offsets = [0, 128], sizes = [8, 128], strides = [1, 1]} : vector<8x384xf32> to vector<8x128xf32>
    %151 = arith.addf %150, %149 : vector<8x128xf32>
    %152 = arith.negf %151 : vector<8x128xf32>
    %153 = math.exp %152 : vector<8x128xf32>
    %cst_55 = arith.constant 1.000000e+00 : f32
    %154 = vector.broadcast %cst_55 : f32 to vector<8x128xf32>
    %155 = arith.addf %154, %153 : vector<8x128xf32>
    %156 = arith.divf %154, %155 : vector<8x128xf32>
    %cst_56 = arith.constant dense<0.000000e+00> : vector<8x128xf32>
    %157 = tpu.matmul %135, %7, %cst_56 {dimension_numbers = #tpu.dot_dimension_numbers<[1], [0], [0], [1], [0, 0, 1, 1], [], []>} : vector<8x128xf32>, vector<128x128xf32>, vector<8x128xf32> -> vector<8x128xf32>
    %158 = vector.extract_strided_slice %140 {offsets = [0, 256], sizes = [8, 128], strides = [1, 1]} : vector<8x384xf32> to vector<8x128xf32>
    %159 = arith.addf %157, %10 : vector<8x128xf32>
    %160 = arith.mulf %148, %159 : vector<8x128xf32>
    %161 = arith.addf %158, %160 : vector<8x128xf32>
    %162 = math.tanh %161 : vector<8x128xf32>
    %cst_57 = arith.constant 1.000000e+00 : f32
    %163 = vector.broadcast %cst_57 : f32 to vector<8x128xf32>
    %164 = arith.subf %163, %156 : vector<8x128xf32>
    %165 = arith.mulf %164, %162 : vector<8x128xf32>
    %166 = arith.mulf %156, %135 : vector<8x128xf32>
    %167 = arith.addf %165, %166 : vector<8x128xf32>
    %c0_58 = arith.constant 0 : index
    %c4_59 = arith.constant 4 : index
    %c0_60 = arith.constant 0 : index
    %168 = vector.load %arg6[%c0_58, %c4_59, %c0_60] : memref<8x8x128xf32, #tpu.memory_space<vmem>>, vector<8x1x128xf32>
    %169 = vector.shape_cast %168 : vector<8x1x128xf32> to vector<8x128xf32>
    %170 = vector.shape_cast %167 : vector<8x128xf32> to vector<8x1x128xf32>
    tpu.vector_store %arg6[%c0_58, %c4_59, %c0_60], %170 {strides = array<i32>} : memref<8x8x128xf32, #tpu.memory_space<vmem>>, vector<8x1x128xf32>,
    %c5 = arith.constant 5 : index
    %c0_61 = arith.constant 0 : index
    %c0_62 = arith.constant 0 : index
    %171 = vector.load %arg2[%c5, %c0_61, %c0_62] : memref<8x8x384xf32, #tpu.memory_space<vmem>>, vector<1x8x384xf32>
    %172 = vector.shape_cast %171 : vector<1x8x384xf32> to vector<8x384xf32>
    %cst_63 = arith.constant dense<0.000000e+00> : vector<8x128xf32>
    %173 = tpu.matmul %167, %5, %cst_63 {dimension_numbers = #tpu.dot_dimension_numbers<[1], [0], [0], [1], [0, 0, 1, 1], [], []>} : vector<8x128xf32>, vector<128x128xf32>, vector<8x128xf32> -> vector<8x128xf32>
    %174 = vector.extract_strided_slice %172 {offsets = [0, 0], sizes = [8, 128], strides = [1, 1]} : vector<8x384xf32> to vector<8x128xf32>
    %175 = arith.addf %174, %173 : vector<8x128xf32>
    %176 = arith.negf %175 : vector<8x128xf32>
    %177 = math.exp %176 : vector<8x128xf32>
    %cst_64 = arith.constant 1.000000e+00 : f32
    %178 = vector.broadcast %cst_64 : f32 to vector<8x128xf32>
    %179 = arith.addf %178, %177 : vector<8x128xf32>
    %180 = arith.divf %178, %179 : vector<8x128xf32>
    %cst_65 = arith.constant dense<0.000000e+00> : vector<8x128xf32>
    %181 = tpu.matmul %167, %6, %cst_65 {dimension_numbers = #tpu.dot_dimension_numbers<[1], [0], [0], [1], [0, 0, 1, 1], [], []>} : vector<8x128xf32>, vector<128x128xf32>, vector<8x128xf32> -> vector<8x128xf32>
    %182 = vector.extract_strided_slice %172 {offsets = [0, 128], sizes = [8, 128], strides = [1, 1]} : vector<8x384xf32> to vector<8x128xf32>
    %183 = arith.addf %182, %181 : vector<8x128xf32>
    %184 = arith.negf %183 : vector<8x128xf32>
    %185 = math.exp %184 : vector<8x128xf32>
    %cst_66 = arith.constant 1.000000e+00 : f32
    %186 = vector.broadcast %cst_66 : f32 to vector<8x128xf32>
    %187 = arith.addf %186, %185 : vector<8x128xf32>
    %188 = arith.divf %186, %187 : vector<8x128xf32>
    %cst_67 = arith.constant dense<0.000000e+00> : vector<8x128xf32>
    %189 = tpu.matmul %167, %7, %cst_67 {dimension_numbers = #tpu.dot_dimension_numbers<[1], [0], [0], [1], [0, 0, 1, 1], [], []>} : vector<8x128xf32>, vector<128x128xf32>, vector<8x128xf32> -> vector<8x128xf32>
    %190 = vector.extract_strided_slice %172 {offsets = [0, 256], sizes = [8, 128], strides = [1, 1]} : vector<8x384xf32> to vector<8x128xf32>
    %191 = arith.addf %189, %10 : vector<8x128xf32>
    %192 = arith.mulf %180, %191 : vector<8x128xf32>
    %193 = arith.addf %190, %192 : vector<8x128xf32>
    %194 = math.tanh %193 : vector<8x128xf32>
    %cst_68 = arith.constant 1.000000e+00 : f32
    %195 = vector.broadcast %cst_68 : f32 to vector<8x128xf32>
    %196 = arith.subf %195, %188 : vector<8x128xf32>
    %197 = arith.mulf %196, %194 : vector<8x128xf32>
    %198 = arith.mulf %188, %167 : vector<8x128xf32>
    %199 = arith.addf %197, %198 : vector<8x128xf32>
    %c0_69 = arith.constant 0 : index
    %c5_70 = arith.constant 5 : index
    %c0_71 = arith.constant 0 : index
    %200 = vector.load %arg6[%c0_69, %c5_70, %c0_71] : memref<8x8x128xf32, #tpu.memory_space<vmem>>, vector<8x1x128xf32>
    %201 = vector.shape_cast %200 : vector<8x1x128xf32> to vector<8x128xf32>
    %202 = vector.shape_cast %199 : vector<8x128xf32> to vector<8x1x128xf32>
    tpu.vector_store %arg6[%c0_69, %c5_70, %c0_71], %202 {strides = array<i32>} : memref<8x8x128xf32, #tpu.memory_space<vmem>>, vector<8x1x128xf32>,
    %c6 = arith.constant 6 : index
    %c0_72 = arith.constant 0 : index
    %c0_73 = arith.constant 0 : index
    %203 = vector.load %arg2[%c6, %c0_72, %c0_73] : memref<8x8x384xf32, #tpu.memory_space<vmem>>, vector<1x8x384xf32>
    %204 = vector.shape_cast %203 : vector<1x8x384xf32> to vector<8x384xf32>
    %cst_74 = arith.constant dense<0.000000e+00> : vector<8x128xf32>
    %205 = tpu.matmul %199, %5, %cst_74 {dimension_numbers = #tpu.dot_dimension_numbers<[1], [0], [0], [1], [0, 0, 1, 1], [], []>} : vector<8x128xf32>, vector<128x128xf32>, vector<8x128xf32> -> vector<8x128xf32>
    %206 = vector.extract_strided_slice %204 {offsets = [0, 0], sizes = [8, 128], strides = [1, 1]} : vector<8x384xf32> to vector<8x128xf32>
    %207 = arith.addf %206, %205 : vector<8x128xf32>
    %208 = arith.negf %207 : vector<8x128xf32>
    %209 = math.exp %208 : vector<8x128xf32>
    %cst_75 = arith.constant 1.000000e+00 : f32
    %210 = vector.broadcast %cst_75 : f32 to vector<8x128xf32>
    %211 = arith.addf %210, %209 : vector<8x128xf32>
    %212 = arith.divf %210, %211 : vector<8x128xf32>
    %cst_76 = arith.constant dense<0.000000e+00> : vector<8x128xf32>
    %213 = tpu.matmul %199, %6, %cst_76 {dimension_numbers = #tpu.dot_dimension_numbers<[1], [0], [0], [1], [0, 0, 1, 1], [], []>} : vector<8x128xf32>, vector<128x128xf32>, vector<8x128xf32> -> vector<8x128xf32>
    %214 = vector.extract_strided_slice %204 {offsets = [0, 128], sizes = [8, 128], strides = [1, 1]} : vector<8x384xf32> to vector<8x128xf32>
    %215 = arith.addf %214, %213 : vector<8x128xf32>
    %216 = arith.negf %215 : vector<8x128xf32>
    %217 = math.exp %216 : vector<8x128xf32>
    %cst_77 = arith.constant 1.000000e+00 : f32
    %218 = vector.broadcast %cst_77 : f32 to vector<8x128xf32>
    %219 = arith.addf %218, %217 : vector<8x128xf32>
    %220 = arith.divf %218, %219 : vector<8x128xf32>
    %cst_78 = arith.constant dense<0.000000e+00> : vector<8x128xf32>
    %221 = tpu.matmul %199, %7, %cst_78 {dimension_numbers = #tpu.dot_dimension_numbers<[1], [0], [0], [1], [0, 0, 1, 1], [], []>} : vector<8x128xf32>, vector<128x128xf32>, vector<8x128xf32> -> vector<8x128xf32>
    %222 = vector.extract_strided_slice %204 {offsets = [0, 256], sizes = [8, 128], strides = [1, 1]} : vector<8x384xf32> to vector<8x128xf32>
    %223 = arith.addf %221, %10 : vector<8x128xf32>
    %224 = arith.mulf %212, %223 : vector<8x128xf32>
    %225 = arith.addf %222, %224 : vector<8x128xf32>
    %226 = math.tanh %225 : vector<8x128xf32>
    %cst_79 = arith.constant 1.000000e+00 : f32
    %227 = vector.broadcast %cst_79 : f32 to vector<8x128xf32>
    %228 = arith.subf %227, %220 : vector<8x128xf32>
    %229 = arith.mulf %228, %226 : vector<8x128xf32>
    %230 = arith.mulf %220, %199 : vector<8x128xf32>
    %231 = arith.addf %229, %230 : vector<8x128xf32>
    %c0_80 = arith.constant 0 : index
    %c6_81 = arith.constant 6 : index
    %c0_82 = arith.constant 0 : index
    %232 = vector.load %arg6[%c0_80, %c6_81, %c0_82] : memref<8x8x128xf32, #tpu.memory_space<vmem>>, vector<8x1x128xf32>
    %233 = vector.shape_cast %232 : vector<8x1x128xf32> to vector<8x128xf32>
    %234 = vector.shape_cast %231 : vector<8x128xf32> to vector<8x1x128xf32>
    tpu.vector_store %arg6[%c0_80, %c6_81, %c0_82], %234 {strides = array<i32>} : memref<8x8x128xf32, #tpu.memory_space<vmem>>, vector<8x1x128xf32>,
    %c7 = arith.constant 7 : index
    %c0_83 = arith.constant 0 : index
    %c0_84 = arith.constant 0 : index
    %235 = vector.load %arg2[%c7, %c0_83, %c0_84] : memref<8x8x384xf32, #tpu.memory_space<vmem>>, vector<1x8x384xf32>
    %236 = vector.shape_cast %235 : vector<1x8x384xf32> to vector<8x384xf32>
    %cst_85 = arith.constant dense<0.000000e+00> : vector<8x128xf32>
    %237 = tpu.matmul %231, %5, %cst_85 {dimension_numbers = #tpu.dot_dimension_numbers<[1], [0], [0], [1], [0, 0, 1, 1], [], []>} : vector<8x128xf32>, vector<128x128xf32>, vector<8x128xf32> -> vector<8x128xf32>
    %238 = vector.extract_strided_slice %236 {offsets = [0, 0], sizes = [8, 128], strides = [1, 1]} : vector<8x384xf32> to vector<8x128xf32>
    %239 = arith.addf %238, %237 : vector<8x128xf32>
    %240 = arith.negf %239 : vector<8x128xf32>
    %241 = math.exp %240 : vector<8x128xf32>
    %cst_86 = arith.constant 1.000000e+00 : f32
    %242 = vector.broadcast %cst_86 : f32 to vector<8x128xf32>
    %243 = arith.addf %242, %241 : vector<8x128xf32>
    %244 = arith.divf %242, %243 : vector<8x128xf32>
    %cst_87 = arith.constant dense<0.000000e+00> : vector<8x128xf32>
    %245 = tpu.matmul %231, %6, %cst_87 {dimension_numbers = #tpu.dot_dimension_numbers<[1], [0], [0], [1], [0, 0, 1, 1], [], []>} : vector<8x128xf32>, vector<128x128xf32>, vector<8x128xf32> -> vector<8x128xf32>
    %246 = vector.extract_strided_slice %236 {offsets = [0, 128], sizes = [8, 128], strides = [1, 1]} : vector<8x384xf32> to vector<8x128xf32>
    %247 = arith.addf %246, %245 : vector<8x128xf32>
    %248 = arith.negf %247 : vector<8x128xf32>
    %249 = math.exp %248 : vector<8x128xf32>
    %cst_88 = arith.constant 1.000000e+00 : f32
    %250 = vector.broadcast %cst_88 : f32 to vector<8x128xf32>
    %251 = arith.addf %250, %249 : vector<8x128xf32>
    %252 = arith.divf %250, %251 : vector<8x128xf32>
    %cst_89 = arith.constant dense<0.000000e+00> : vector<8x128xf32>
    %253 = tpu.matmul %231, %7, %cst_89 {dimension_numbers = #tpu.dot_dimension_numbers<[1], [0], [0], [1], [0, 0, 1, 1], [], []>} : vector<8x128xf32>, vector<128x128xf32>, vector<8x128xf32> -> vector<8x128xf32>
    %254 = vector.extract_strided_slice %236 {offsets = [0, 256], sizes = [8, 128], strides = [1, 1]} : vector<8x384xf32> to vector<8x128xf32>
    %255 = arith.addf %253, %10 : vector<8x128xf32>
    %256 = arith.mulf %244, %255 : vector<8x128xf32>
    %257 = arith.addf %254, %256 : vector<8x128xf32>
    %258 = math.tanh %257 : vector<8x128xf32>
    %cst_90 = arith.constant 1.000000e+00 : f32
    %259 = vector.broadcast %cst_90 : f32 to vector<8x128xf32>
    %260 = arith.subf %259, %252 : vector<8x128xf32>
    %261 = arith.mulf %260, %258 : vector<8x128xf32>
    %262 = arith.mulf %252, %231 : vector<8x128xf32>
    %263 = arith.addf %261, %262 : vector<8x128xf32>
    %c0_91 = arith.constant 0 : index
    %c7_92 = arith.constant 7 : index
    %c0_93 = arith.constant 0 : index
    %264 = vector.load %arg6[%c0_91, %c7_92, %c0_93] : memref<8x8x128xf32, #tpu.memory_space<vmem>>, vector<8x1x128xf32>
    %265 = vector.shape_cast %264 : vector<8x1x128xf32> to vector<8x128xf32>
    %266 = vector.shape_cast %263 : vector<8x128xf32> to vector<8x1x128xf32>
    tpu.vector_store %arg6[%c0_91, %c7_92, %c0_93], %266 {strides = array<i32>} : memref<8x8x128xf32, #tpu.memory_space<vmem>>, vector<8x1x128xf32>,
    %c0_94 = arith.constant 0 : index
    %c0_95 = arith.constant 0 : index
    %267 = vector.load %arg7[%c0_94, %c0_95] : memref<8x128xf32, #tpu.memory_space<vmem>>, vector<8x128xf32>
    tpu.vector_store %arg7[%c0_94, %c0_95], %263 {strides = array<i32>} : memref<8x128xf32, #tpu.memory_space<vmem>>, vector<8x128xf32>,
    return
  }
  func.func @transform_0(%arg0: i32, %arg1: i32) -> (i32, i32, i32) {
    %c0_i32 = arith.constant 0 : i32
    %c0_i32_0 = arith.constant 0 : i32
    return %arg1, %arg0, %c0_i32 : i32, i32, i32
  }
  func.func @transform_1(%arg0: i32, %arg1: i32) -> (i32, i32) {
    %c0_i32 = arith.constant 0 : i32
    %c0_i32_0 = arith.constant 0 : i32
    return %arg0, %c0_i32 : i32, i32
  }
  func.func @transform_2(%arg0: i32, %arg1: i32) -> (i32, i32) {
    %c0_i32 = arith.constant 0 : i32
    %c0_i32_0 = arith.constant 0 : i32
    %c0_i32_1 = arith.constant 0 : i32
    return %c0_i32, %c0_i32_0 : i32, i32
  }
  func.func @transform_3(%arg0: i32, %arg1: i32) -> (i32, i32) {
    %c0_i32 = arith.constant 0 : i32
    %c0_i32_0 = arith.constant 0 : i32
    %c0_i32_1 = arith.constant 0 : i32
    return %c0_i32, %c0_i32_0 : i32, i32
  }
  func.func @transform_4(%arg0: i32, %arg1: i32) -> (i32, i32, i32) {
    %c0_i32 = arith.constant 0 : i32
    %c0_i32_0 = arith.constant 0 : i32
    return %arg0, %arg1, %c0_i32 : i32, i32, i32
  }
  func.func @transform_5(%arg0: i32, %arg1: i32) -> (i32, i32) {
    %c0_i32 = arith.constant 0 : i32
    %c0_i32_0 = arith.constant 0 : i32
    return %arg0, %c0_i32 : i32, i32
  }
}

module attributes {stable_mosaic.version = 11 : i64} {
  func.func @_gru_recurrent_kernel(%arg0: i32, %arg1: i32, %arg2: memref<8x8x384xf32, #tpu.memory_space<vmem>>, %arg3: memref<8x128xf32, #tpu.memory_space<vmem>>, %arg4: memref<128x384xf32, #tpu.memory_space<vmem>>, %arg5: memref<1x128xf32, #tpu.memory_space<vmem>>, %arg6: memref<8x8x128xf32, #tpu.memory_space<vmem>>, %arg7: memref<8x128xf32, #tpu.memory_space<vmem>>) attributes {dimension_semantics = [#tpu.dimension_semantics<parallel>, #tpu.dimension_semantics<arbitrary>], iteration_bounds = array<i64: 1, 1>, scalar_prefetch = 0 : i64, scratch_operands = 0 : i64, tpu.core_type = #tpu.core_type<tc>, window_params = [{transform_indices = @transform_0, window_bounds = array<i64: 8, 8, 384>}, {transform_indices = @transform_1, window_bounds = array<i64: 8, 128>}, {pipeline_mode = #tpu.pipeline_mode<synchronous>, transform_indices = @transform_2, window_bounds = array<i64: 128, 384>}, {pipeline_mode = #tpu.pipeline_mode<synchronous>, transform_indices = @transform_3, window_bounds = array<i64: 1, 128>}, {transform_indices = @transform_4, window_bounds = array<i64: 8, 8, 128>}, {transform_indices = @transform_5, window_bounds = array<i64: 8, 128>}]} {
    %c0_i32 = arith.constant 0 : i32
    %0 = arith.cmpi eq, %arg1, %c0_i32 : i32
    %1 = arith.extui %0 : i1 to i32
    %c0_i32_0 = arith.constant 0 : i32
    %2 = arith.cmpi ne, %1, %c0_i32_0 : i32
    scf.if %2 {
      %c0_96 = arith.constant 0 : index
      %c0_97 = arith.constant 0 : index
      %268 = vector.load %arg3[%c0_96, %c0_97] : memref<8x128xf32, #tpu.memory_space<vmem>>, vector<8x128xf32>
      %c0_98 = arith.constant 0 : index
      %c0_99 = arith.constant 0 : index
      %269 = vector.load %arg7[%c0_98, %c0_99] : memref<8x128xf32, #tpu.memory_space<vmem>>, vector<8x128xf32>
      tpu.vector_store %arg7[%c0_98, %c0_99], %268 {strides = array<i32>} : memref<8x128xf32, #tpu.memory_space<vmem>>, vector<8x128xf32>,
    } else {
    }
    %c0 = arith.constant 0 : index
    %c0_1 = arith.constant 0 : index
    %3 = vector.load %arg7[%c0, %c0_1] : memref<8x128xf32, #tpu.memory_space<vmem>>, vector<8x128xf32>
    %c0_2 = arith.constant 0 : index
    %c0_3 = arith.constant 0 : index
    %4 = vector.load %arg4[%c0_2, %c0_3] : memref<128x384xf32, #tpu.memory_space<vmem>>, vector<128x384xf32>
    %5 = vector.extract_strided_slice %4 {offsets = [0, 0], sizes = [128, 128], strides = [1, 1]} : vector<128x384xf32> to vector<128x128xf32>
    %6 = vector.extract_strided_slice %4 {offsets = [0, 128], sizes = [128, 128], strides = [1, 1]} : vector<128x384xf32> to vector<128x128xf32>
    %7 = vector.extract_strided_slice %4 {offsets = [0, 256], sizes = [128, 128], strides = [1, 1]} : vector<128x384xf32> to vector<128x128xf32>
    %c0_4 = arith.constant 0 : index
    %c0_5 = arith.constant 0 : index
    %8 = vector.load %arg5[%c0_4, %c0_5] : memref<1x128xf32, #tpu.memory_space<vmem>>, vector<1x128xf32>
    %9 = vector.shape_cast %8 : vector<1x128xf32> to vector<1x128xf32>
    %10 = vector.broadcast %9 : vector<1x128xf32> to vector<8x128xf32>
    %c0_6 = arith.constant 0 : index
    %c0_7 = arith.constant 0 : index
    %c0_8 = arith.constant 0 : index
    %11 = vector.load %arg2[%c0_6, %c0_7, %c0_8] : memref<8x8x384xf32, #tpu.memory_space<vmem>>, vector<1x8x384xf32>
    %12 = vector.shape_cast %11 : vector<1x8x384xf32> to vector<8x384xf32>
    %cst = arith.constant dense<0.000000e+00> : vector<8x128xf32>
    %13 = tpu.matmul %3, %5, %cst {dimension_numbers = #tpu.dot_dimension_numbers<[1], [0], [0], [1], [0, 0, 1, 1], [], []>} : vector<8x128xf32>, vector<128x128xf32>, vector<8x128xf32> -> vector<8x128xf32>
    %14 = vector.extract_strided_slice %12 {offsets = [0, 0], sizes = [8, 128], strides = [1, 1]} : vector<8x384xf32> to vector<8x128xf32>
    %15 = arith.addf %14, %13 : vector<8x128xf32>
    %16 = arith.negf %15 : vector<8x128xf32>
    %17 = math.exp %16 : vector<8x128xf32>
    %cst_9 = arith.constant 1.000000e+00 : f32
    %18 = vector.broadcast %cst_9 : f32 to vector<8x128xf32>
    %19 = arith.addf %18, %17 : vector<8x128xf32>
    %20 = arith.divf %18, %19 : vector<8x128xf32>
    %cst_10 = arith.constant dense<0.000000e+00> : vector<8x128xf32>
    %21 = tpu.matmul %3, %6, %cst_10 {dimension_numbers = #tpu.dot_dimension_numbers<[1], [0], [0], [1], [0, 0, 1, 1], [], []>} : vector<8x128xf32>, vector<128x128xf32>, vector<8x128xf32> -> vector<8x128xf32>
    %22 = vector.extract_strided_slice %12 {offsets = [0, 128], sizes = [8, 128], strides = [1, 1]} : vector<8x384xf32> to vector<8x128xf32>
    %23 = arith.addf %22, %21 : vector<8x128xf32>
    %24 = arith.negf %23 : vector<8x128xf32>
    %25 = math.exp %24 : vector<8x128xf32>
    %cst_11 = arith.constant 1.000000e+00 : f32
    %26 = vector.broadcast %cst_11 : f32 to vector<8x128xf32>
    %27 = arith.addf %26, %25 : vector<8x128xf32>
    %28 = arith.divf %26, %27 : vector<8x128xf32>
    %cst_12 = arith.constant dense<0.000000e+00> : vector<8x128xf32>
    %29 = tpu.matmul %3, %7, %cst_12 {dimension_numbers = #tpu.dot_dimension_numbers<[1], [0], [0], [1], [0, 0, 1, 1], [], []>} : vector<8x128xf32>, vector<128x128xf32>, vector<8x128xf32> -> vector<8x128xf32>
    %30 = vector.extract_strided_slice %12 {offsets = [0, 256], sizes = [8, 128], strides = [1, 1]} : vector<8x384xf32> to vector<8x128xf32>
    %31 = arith.addf %29, %10 : vector<8x128xf32>
    %32 = arith.mulf %20, %31 : vector<8x128xf32>
    %33 = arith.addf %30, %32 : vector<8x128xf32>
    %34 = math.tanh %33 : vector<8x128xf32>
    %cst_13 = arith.constant 1.000000e+00 : f32
    %35 = vector.broadcast %cst_13 : f32 to vector<8x128xf32>
    %36 = arith.subf %35, %28 : vector<8x128xf32>
    %37 = arith.mulf %36, %34 : vector<8x128xf32>
    %38 = arith.mulf %28, %3 : vector<8x128xf32>
    %39 = arith.addf %37, %38 : vector<8x128xf32>
    %c0_14 = arith.constant 0 : index
    %c0_15 = arith.constant 0 : index
    %c0_16 = arith.constant 0 : index
    %40 = vector.load %arg6[%c0_14, %c0_15, %c0_16] : memref<8x8x128xf32, #tpu.memory_space<vmem>>, vector<8x1x128xf32>
    %41 = vector.shape_cast %40 : vector<8x1x128xf32> to vector<8x128xf32>
    %42 = vector.shape_cast %39 : vector<8x128xf32> to vector<8x1x128xf32>
    tpu.vector_store %arg6[%c0_14, %c0_15, %c0_16], %42 {strides = array<i32>} : memref<8x8x128xf32, #tpu.memory_space<vmem>>, vector<8x1x128xf32>,
    %c1 = arith.constant 1 : index
    %c0_17 = arith.constant 0 : index
    %c0_18 = arith.constant 0 : index
    %43 = vector.load %arg2[%c1, %c0_17, %c0_18] : memref<8x8x384xf32, #tpu.memory_space<vmem>>, vector<1x8x384xf32>
    %44 = vector.shape_cast %43 : vector<1x8x384xf32> to vector<8x384xf32>
    %cst_19 = arith.constant dense<0.000000e+00> : vector<8x128xf32>
    %45 = tpu.matmul %39, %5, %cst_19 {dimension_numbers = #tpu.dot_dimension_numbers<[1], [0], [0], [1], [0, 0, 1, 1], [], []>} : vector<8x128xf32>, vector<128x128xf32>, vector<8x128xf32> -> vector<8x128xf32>
    %46 = vector.extract_strided_slice %44 {offsets = [0, 0], sizes = [8, 128], strides = [1, 1]} : vector<8x384xf32> to vector<8x128xf32>
    %47 = arith.addf %46, %45 : vector<8x128xf32>
    %48 = arith.negf %47 : vector<8x128xf32>
    %49 = math.exp %48 : vector<8x128xf32>
    %cst_20 = arith.constant 1.000000e+00 : f32
    %50 = vector.broadcast %cst_20 : f32 to vector<8x128xf32>
    %51 = arith.addf %50, %49 : vector<8x128xf32>
    %52 = arith.divf %50, %51 : vector<8x128xf32>
    %cst_21 = arith.constant dense<0.000000e+00> : vector<8x128xf32>
    %53 = tpu.matmul %39, %6, %cst_21 {dimension_numbers = #tpu.dot_dimension_numbers<[1], [0], [0], [1], [0, 0, 1, 1], [], []>} : vector<8x128xf32>, vector<128x128xf32>, vector<8x128xf32> -> vector<8x128xf32>
    %54 = vector.extract_strided_slice %44 {offsets = [0, 128], sizes = [8, 128], strides = [1, 1]} : vector<8x384xf32> to vector<8x128xf32>
    %55 = arith.addf %54, %53 : vector<8x128xf32>
    %56 = arith.negf %55 : vector<8x128xf32>
    %57 = math.exp %56 : vector<8x128xf32>
    %cst_22 = arith.constant 1.000000e+00 : f32
    %58 = vector.broadcast %cst_22 : f32 to vector<8x128xf32>
    %59 = arith.addf %58, %57 : vector<8x128xf32>
    %60 = arith.divf %58, %59 : vector<8x128xf32>
    %cst_23 = arith.constant dense<0.000000e+00> : vector<8x128xf32>
    %61 = tpu.matmul %39, %7, %cst_23 {dimension_numbers = #tpu.dot_dimension_numbers<[1], [0], [0], [1], [0, 0, 1, 1], [], []>} : vector<8x128xf32>, vector<128x128xf32>, vector<8x128xf32> -> vector<8x128xf32>
    %62 = vector.extract_strided_slice %44 {offsets = [0, 256], sizes = [8, 128], strides = [1, 1]} : vector<8x384xf32> to vector<8x128xf32>
    %63 = arith.addf %61, %10 : vector<8x128xf32>
    %64 = arith.mulf %52, %63 : vector<8x128xf32>
    %65 = arith.addf %62, %64 : vector<8x128xf32>
    %66 = math.tanh %65 : vector<8x128xf32>
    %cst_24 = arith.constant 1.000000e+00 : f32
    %67 = vector.broadcast %cst_24 : f32 to vector<8x128xf32>
    %68 = arith.subf %67, %60 : vector<8x128xf32>
    %69 = arith.mulf %68, %66 : vector<8x128xf32>
    %70 = arith.mulf %60, %39 : vector<8x128xf32>
    %71 = arith.addf %69, %70 : vector<8x128xf32>
    %c0_25 = arith.constant 0 : index
    %c1_26 = arith.constant 1 : index
    %c0_27 = arith.constant 0 : index
    %72 = vector.load %arg6[%c0_25, %c1_26, %c0_27] : memref<8x8x128xf32, #tpu.memory_space<vmem>>, vector<8x1x128xf32>
    %73 = vector.shape_cast %72 : vector<8x1x128xf32> to vector<8x128xf32>
    %74 = vector.shape_cast %71 : vector<8x128xf32> to vector<8x1x128xf32>
    tpu.vector_store %arg6[%c0_25, %c1_26, %c0_27], %74 {strides = array<i32>} : memref<8x8x128xf32, #tpu.memory_space<vmem>>, vector<8x1x128xf32>,
    %c2 = arith.constant 2 : index
    %c0_28 = arith.constant 0 : index
    %c0_29 = arith.constant 0 : index
    %75 = vector.load %arg2[%c2, %c0_28, %c0_29] : memref<8x8x384xf32, #tpu.memory_space<vmem>>, vector<1x8x384xf32>
    %76 = vector.shape_cast %75 : vector<1x8x384xf32> to vector<8x384xf32>
    %cst_30 = arith.constant dense<0.000000e+00> : vector<8x128xf32>
    %77 = tpu.matmul %71, %5, %cst_30 {dimension_numbers = #tpu.dot_dimension_numbers<[1], [0], [0], [1], [0, 0, 1, 1], [], []>} : vector<8x128xf32>, vector<128x128xf32>, vector<8x128xf32> -> vector<8x128xf32>
    %78 = vector.extract_strided_slice %76 {offsets = [0, 0], sizes = [8, 128], strides = [1, 1]} : vector<8x384xf32> to vector<8x128xf32>
    %79 = arith.addf %78, %77 : vector<8x128xf32>
    %80 = arith.negf %79 : vector<8x128xf32>
    %81 = math.exp %80 : vector<8x128xf32>
    %cst_31 = arith.constant 1.000000e+00 : f32
    %82 = vector.broadcast %cst_31 : f32 to vector<8x128xf32>
    %83 = arith.addf %82, %81 : vector<8x128xf32>
    %84 = arith.divf %82, %83 : vector<8x128xf32>
    %cst_32 = arith.constant dense<0.000000e+00> : vector<8x128xf32>
    %85 = tpu.matmul %71, %6, %cst_32 {dimension_numbers = #tpu.dot_dimension_numbers<[1], [0], [0], [1], [0, 0, 1, 1], [], []>} : vector<8x128xf32>, vector<128x128xf32>, vector<8x128xf32> -> vector<8x128xf32>
    %86 = vector.extract_strided_slice %76 {offsets = [0, 128], sizes = [8, 128], strides = [1, 1]} : vector<8x384xf32> to vector<8x128xf32>
    %87 = arith.addf %86, %85 : vector<8x128xf32>
    %88 = arith.negf %87 : vector<8x128xf32>
    %89 = math.exp %88 : vector<8x128xf32>
    %cst_33 = arith.constant 1.000000e+00 : f32
    %90 = vector.broadcast %cst_33 : f32 to vector<8x128xf32>
    %91 = arith.addf %90, %89 : vector<8x128xf32>
    %92 = arith.divf %90, %91 : vector<8x128xf32>
    %cst_34 = arith.constant dense<0.000000e+00> : vector<8x128xf32>
    %93 = tpu.matmul %71, %7, %cst_34 {dimension_numbers = #tpu.dot_dimension_numbers<[1], [0], [0], [1], [0, 0, 1, 1], [], []>} : vector<8x128xf32>, vector<128x128xf32>, vector<8x128xf32> -> vector<8x128xf32>
    %94 = vector.extract_strided_slice %76 {offsets = [0, 256], sizes = [8, 128], strides = [1, 1]} : vector<8x384xf32> to vector<8x128xf32>
    %95 = arith.addf %93, %10 : vector<8x128xf32>
    %96 = arith.mulf %84, %95 : vector<8x128xf32>
    %97 = arith.addf %94, %96 : vector<8x128xf32>
    %98 = math.tanh %97 : vector<8x128xf32>
    %cst_35 = arith.constant 1.000000e+00 : f32
    %99 = vector.broadcast %cst_35 : f32 to vector<8x128xf32>
    %100 = arith.subf %99, %92 : vector<8x128xf32>
    %101 = arith.mulf %100, %98 : vector<8x128xf32>
    %102 = arith.mulf %92, %71 : vector<8x128xf32>
    %103 = arith.addf %101, %102 : vector<8x128xf32>
    %c0_36 = arith.constant 0 : index
    %c2_37 = arith.constant 2 : index
    %c0_38 = arith.constant 0 : index
    %104 = vector.load %arg6[%c0_36, %c2_37, %c0_38] : memref<8x8x128xf32, #tpu.memory_space<vmem>>, vector<8x1x128xf32>
    %105 = vector.shape_cast %104 : vector<8x1x128xf32> to vector<8x128xf32>
    %106 = vector.shape_cast %103 : vector<8x128xf32> to vector<8x1x128xf32>
    tpu.vector_store %arg6[%c0_36, %c2_37, %c0_38], %106 {strides = array<i32>} : memref<8x8x128xf32, #tpu.memory_space<vmem>>, vector<8x1x128xf32>,
    %c3 = arith.constant 3 : index
    %c0_39 = arith.constant 0 : index
    %c0_40 = arith.constant 0 : index
    %107 = vector.load %arg2[%c3, %c0_39, %c0_40] : memref<8x8x384xf32, #tpu.memory_space<vmem>>, vector<1x8x384xf32>
    %108 = vector.shape_cast %107 : vector<1x8x384xf32> to vector<8x384xf32>
    %cst_41 = arith.constant dense<0.000000e+00> : vector<8x128xf32>
    %109 = tpu.matmul %103, %5, %cst_41 {dimension_numbers = #tpu.dot_dimension_numbers<[1], [0], [0], [1], [0, 0, 1, 1], [], []>} : vector<8x128xf32>, vector<128x128xf32>, vector<8x128xf32> -> vector<8x128xf32>
    %110 = vector.extract_strided_slice %108 {offsets = [0, 0], sizes = [8, 128], strides = [1, 1]} : vector<8x384xf32> to vector<8x128xf32>
    %111 = arith.addf %110, %109 : vector<8x128xf32>
    %112 = arith.negf %111 : vector<8x128xf32>
    %113 = math.exp %112 : vector<8x128xf32>
    %cst_42 = arith.constant 1.000000e+00 : f32
    %114 = vector.broadcast %cst_42 : f32 to vector<8x128xf32>
    %115 = arith.addf %114, %113 : vector<8x128xf32>
    %116 = arith.divf %114, %115 : vector<8x128xf32>
    %cst_43 = arith.constant dense<0.000000e+00> : vector<8x128xf32>
    %117 = tpu.matmul %103, %6, %cst_43 {dimension_numbers = #tpu.dot_dimension_numbers<[1], [0], [0], [1], [0, 0, 1, 1], [], []>} : vector<8x128xf32>, vector<128x128xf32>, vector<8x128xf32> -> vector<8x128xf32>
    %118 = vector.extract_strided_slice %108 {offsets = [0, 128], sizes = [8, 128], strides = [1, 1]} : vector<8x384xf32> to vector<8x128xf32>
    %119 = arith.addf %118, %117 : vector<8x128xf32>
    %120 = arith.negf %119 : vector<8x128xf32>
    %121 = math.exp %120 : vector<8x128xf32>
    %cst_44 = arith.constant 1.000000e+00 : f32
    %122 = vector.broadcast %cst_44 : f32 to vector<8x128xf32>
    %123 = arith.addf %122, %121 : vector<8x128xf32>
    %124 = arith.divf %122, %123 : vector<8x128xf32>
    %cst_45 = arith.constant dense<0.000000e+00> : vector<8x128xf32>
    %125 = tpu.matmul %103, %7, %cst_45 {dimension_numbers = #tpu.dot_dimension_numbers<[1], [0], [0], [1], [0, 0, 1, 1], [], []>} : vector<8x128xf32>, vector<128x128xf32>, vector<8x128xf32> -> vector<8x128xf32>
    %126 = vector.extract_strided_slice %108 {offsets = [0, 256], sizes = [8, 128], strides = [1, 1]} : vector<8x384xf32> to vector<8x128xf32>
    %127 = arith.addf %125, %10 : vector<8x128xf32>
    %128 = arith.mulf %116, %127 : vector<8x128xf32>
    %129 = arith.addf %126, %128 : vector<8x128xf32>
    %130 = math.tanh %129 : vector<8x128xf32>
    %cst_46 = arith.constant 1.000000e+00 : f32
    %131 = vector.broadcast %cst_46 : f32 to vector<8x128xf32>
    %132 = arith.subf %131, %124 : vector<8x128xf32>
    %133 = arith.mulf %132, %130 : vector<8x128xf32>
    %134 = arith.mulf %124, %103 : vector<8x128xf32>
    %135 = arith.addf %133, %134 : vector<8x128xf32>
    %c0_47 = arith.constant 0 : index
    %c3_48 = arith.constant 3 : index
    %c0_49 = arith.constant 0 : index
    %136 = vector.load %arg6[%c0_47, %c3_48, %c0_49] : memref<8x8x128xf32, #tpu.memory_space<vmem>>, vector<8x1x128xf32>
    %137 = vector.shape_cast %136 : vector<8x1x128xf32> to vector<8x128xf32>
    %138 = vector.shape_cast %135 : vector<8x128xf32> to vector<8x1x128xf32>
    tpu.vector_store %arg6[%c0_47, %c3_48, %c0_49], %138 {strides = array<i32>} : memref<8x8x128xf32, #tpu.memory_space<vmem>>, vector<8x1x128xf32>,
    %c4 = arith.constant 4 : index
    %c0_50 = arith.constant 0 : index
    %c0_51 = arith.constant 0 : index
    %139 = vector.load %arg2[%c4, %c0_50, %c0_51] : memref<8x8x384xf32, #tpu.memory_space<vmem>>, vector<1x8x384xf32>
    %140 = vector.shape_cast %139 : vector<1x8x384xf32> to vector<8x384xf32>
    %cst_52 = arith.constant dense<0.000000e+00> : vector<8x128xf32>
    %141 = tpu.matmul %135, %5, %cst_52 {dimension_numbers = #tpu.dot_dimension_numbers<[1], [0], [0], [1], [0, 0, 1, 1], [], []>} : vector<8x128xf32>, vector<128x128xf32>, vector<8x128xf32> -> vector<8x128xf32>
    %142 = vector.extract_strided_slice %140 {offsets = [0, 0], sizes = [8, 128], strides = [1, 1]} : vector<8x384xf32> to vector<8x128xf32>
    %143 = arith.addf %142, %141 : vector<8x128xf32>
    %144 = arith.negf %143 : vector<8x128xf32>
    %145 = math.exp %144 : vector<8x128xf32>
    %cst_53 = arith.constant 1.000000e+00 : f32
    %146 = vector.broadcast %cst_53 : f32 to vector<8x128xf32>
    %147 = arith.addf %146, %145 : vector<8x128xf32>
    %148 = arith.divf %146, %147 : vector<8x128xf32>
    %cst_54 = arith.constant dense<0.000000e+00> : vector<8x128xf32>
    %149 = tpu.matmul %135, %6, %cst_54 {dimension_numbers = #tpu.dot_dimension_numbers<[1], [0], [0], [1], [0, 0, 1, 1], [], []>} : vector<8x128xf32>, vector<128x128xf32>, vector<8x128xf32> -> vector<8x128xf32>
    %150 = vector.extract_strided_slice %140 {offsets = [0, 128], sizes = [8, 128], strides = [1, 1]} : vector<8x384xf32> to vector<8x128xf32>
    %151 = arith.addf %150, %149 : vector<8x128xf32>
    %152 = arith.negf %151 : vector<8x128xf32>
    %153 = math.exp %152 : vector<8x128xf32>
    %cst_55 = arith.constant 1.000000e+00 : f32
    %154 = vector.broadcast %cst_55 : f32 to vector<8x128xf32>
    %155 = arith.addf %154, %153 : vector<8x128xf32>
    %156 = arith.divf %154, %155 : vector<8x128xf32>
    %cst_56 = arith.constant dense<0.000000e+00> : vector<8x128xf32>
    %157 = tpu.matmul %135, %7, %cst_56 {dimension_numbers = #tpu.dot_dimension_numbers<[1], [0], [0], [1], [0, 0, 1, 1], [], []>} : vector<8x128xf32>, vector<128x128xf32>, vector<8x128xf32> -> vector<8x128xf32>
    %158 = vector.extract_strided_slice %140 {offsets = [0, 256], sizes = [8, 128], strides = [1, 1]} : vector<8x384xf32> to vector<8x128xf32>
    %159 = arith.addf %157, %10 : vector<8x128xf32>
    %160 = arith.mulf %148, %159 : vector<8x128xf32>
    %161 = arith.addf %158, %160 : vector<8x128xf32>
    %162 = math.tanh %161 : vector<8x128xf32>
    %cst_57 = arith.constant 1.000000e+00 : f32
    %163 = vector.broadcast %cst_57 : f32 to vector<8x128xf32>
    %164 = arith.subf %163, %156 : vector<8x128xf32>
    %165 = arith.mulf %164, %162 : vector<8x128xf32>
    %166 = arith.mulf %156, %135 : vector<8x128xf32>
    %167 = arith.addf %165, %166 : vector<8x128xf32>
    %c0_58 = arith.constant 0 : index
    %c4_59 = arith.constant 4 : index
    %c0_60 = arith.constant 0 : index
    %168 = vector.load %arg6[%c0_58, %c4_59, %c0_60] : memref<8x8x128xf32, #tpu.memory_space<vmem>>, vector<8x1x128xf32>
    %169 = vector.shape_cast %168 : vector<8x1x128xf32> to vector<8x128xf32>
    %170 = vector.shape_cast %167 : vector<8x128xf32> to vector<8x1x128xf32>
    tpu.vector_store %arg6[%c0_58, %c4_59, %c0_60], %170 {strides = array<i32>} : memref<8x8x128xf32, #tpu.memory_space<vmem>>, vector<8x1x128xf32>,
    %c5 = arith.constant 5 : index
    %c0_61 = arith.constant 0 : index
    %c0_62 = arith.constant 0 : index
    %171 = vector.load %arg2[%c5, %c0_61, %c0_62] : memref<8x8x384xf32, #tpu.memory_space<vmem>>, vector<1x8x384xf32>
    %172 = vector.shape_cast %171 : vector<1x8x384xf32> to vector<8x384xf32>
    %cst_63 = arith.constant dense<0.000000e+00> : vector<8x128xf32>
    %173 = tpu.matmul %167, %5, %cst_63 {dimension_numbers = #tpu.dot_dimension_numbers<[1], [0], [0], [1], [0, 0, 1, 1], [], []>} : vector<8x128xf32>, vector<128x128xf32>, vector<8x128xf32> -> vector<8x128xf32>
    %174 = vector.extract_strided_slice %172 {offsets = [0, 0], sizes = [8, 128], strides = [1, 1]} : vector<8x384xf32> to vector<8x128xf32>
    %175 = arith.addf %174, %173 : vector<8x128xf32>
    %176 = arith.negf %175 : vector<8x128xf32>
    %177 = math.exp %176 : vector<8x128xf32>
    %cst_64 = arith.constant 1.000000e+00 : f32
    %178 = vector.broadcast %cst_64 : f32 to vector<8x128xf32>
    %179 = arith.addf %178, %177 : vector<8x128xf32>
    %180 = arith.divf %178, %179 : vector<8x128xf32>
    %cst_65 = arith.constant dense<0.000000e+00> : vector<8x128xf32>
    %181 = tpu.matmul %167, %6, %cst_65 {dimension_numbers = #tpu.dot_dimension_numbers<[1], [0], [0], [1], [0, 0, 1, 1], [], []>} : vector<8x128xf32>, vector<128x128xf32>, vector<8x128xf32> -> vector<8x128xf32>
    %182 = vector.extract_strided_slice %172 {offsets = [0, 128], sizes = [8, 128], strides = [1, 1]} : vector<8x384xf32> to vector<8x128xf32>
    %183 = arith.addf %182, %181 : vector<8x128xf32>
    %184 = arith.negf %183 : vector<8x128xf32>
    %185 = math.exp %184 : vector<8x128xf32>
    %cst_66 = arith.constant 1.000000e+00 : f32
    %186 = vector.broadcast %cst_66 : f32 to vector<8x128xf32>
    %187 = arith.addf %186, %185 : vector<8x128xf32>
    %188 = arith.divf %186, %187 : vector<8x128xf32>
    %cst_67 = arith.constant dense<0.000000e+00> : vector<8x128xf32>
    %189 = tpu.matmul %167, %7, %cst_67 {dimension_numbers = #tpu.dot_dimension_numbers<[1], [0], [0], [1], [0, 0, 1, 1], [], []>} : vector<8x128xf32>, vector<128x128xf32>, vector<8x128xf32> -> vector<8x128xf32>
    %190 = vector.extract_strided_slice %172 {offsets = [0, 256], sizes = [8, 128], strides = [1, 1]} : vector<8x384xf32> to vector<8x128xf32>
    %191 = arith.addf %189, %10 : vector<8x128xf32>
    %192 = arith.mulf %180, %191 : vector<8x128xf32>
    %193 = arith.addf %190, %192 : vector<8x128xf32>
    %194 = math.tanh %193 : vector<8x128xf32>
    %cst_68 = arith.constant 1.000000e+00 : f32
    %195 = vector.broadcast %cst_68 : f32 to vector<8x128xf32>
    %196 = arith.subf %195, %188 : vector<8x128xf32>
    %197 = arith.mulf %196, %194 : vector<8x128xf32>
    %198 = arith.mulf %188, %167 : vector<8x128xf32>
    %199 = arith.addf %197, %198 : vector<8x128xf32>
    %c0_69 = arith.constant 0 : index
    %c5_70 = arith.constant 5 : index
    %c0_71 = arith.constant 0 : index
    %200 = vector.load %arg6[%c0_69, %c5_70, %c0_71] : memref<8x8x128xf32, #tpu.memory_space<vmem>>, vector<8x1x128xf32>
    %201 = vector.shape_cast %200 : vector<8x1x128xf32> to vector<8x128xf32>
    %202 = vector.shape_cast %199 : vector<8x128xf32> to vector<8x1x128xf32>
    tpu.vector_store %arg6[%c0_69, %c5_70, %c0_71], %202 {strides = array<i32>} : memref<8x8x128xf32, #tpu.memory_space<vmem>>, vector<8x1x128xf32>,
    %c6 = arith.constant 6 : index
    %c0_72 = arith.constant 0 : index
    %c0_73 = arith.constant 0 : index
    %203 = vector.load %arg2[%c6, %c0_72, %c0_73] : memref<8x8x384xf32, #tpu.memory_space<vmem>>, vector<1x8x384xf32>
    %204 = vector.shape_cast %203 : vector<1x8x384xf32> to vector<8x384xf32>
    %cst_74 = arith.constant dense<0.000000e+00> : vector<8x128xf32>
    %205 = tpu.matmul %199, %5, %cst_74 {dimension_numbers = #tpu.dot_dimension_numbers<[1], [0], [0], [1], [0, 0, 1, 1], [], []>} : vector<8x128xf32>, vector<128x128xf32>, vector<8x128xf32> -> vector<8x128xf32>
    %206 = vector.extract_strided_slice %204 {offsets = [0, 0], sizes = [8, 128], strides = [1, 1]} : vector<8x384xf32> to vector<8x128xf32>
    %207 = arith.addf %206, %205 : vector<8x128xf32>
    %208 = arith.negf %207 : vector<8x128xf32>
    %209 = math.exp %208 : vector<8x128xf32>
    %cst_75 = arith.constant 1.000000e+00 : f32
    %210 = vector.broadcast %cst_75 : f32 to vector<8x128xf32>
    %211 = arith.addf %210, %209 : vector<8x128xf32>
    %212 = arith.divf %210, %211 : vector<8x128xf32>
    %cst_76 = arith.constant dense<0.000000e+00> : vector<8x128xf32>
    %213 = tpu.matmul %199, %6, %cst_76 {dimension_numbers = #tpu.dot_dimension_numbers<[1], [0], [0], [1], [0, 0, 1, 1], [], []>} : vector<8x128xf32>, vector<128x128xf32>, vector<8x128xf32> -> vector<8x128xf32>
    %214 = vector.extract_strided_slice %204 {offsets = [0, 128], sizes = [8, 128], strides = [1, 1]} : vector<8x384xf32> to vector<8x128xf32>
    %215 = arith.addf %214, %213 : vector<8x128xf32>
    %216 = arith.negf %215 : vector<8x128xf32>
    %217 = math.exp %216 : vector<8x128xf32>
    %cst_77 = arith.constant 1.000000e+00 : f32
    %218 = vector.broadcast %cst_77 : f32 to vector<8x128xf32>
    %219 = arith.addf %218, %217 : vector<8x128xf32>
    %220 = arith.divf %218, %219 : vector<8x128xf32>
    %cst_78 = arith.constant dense<0.000000e+00> : vector<8x128xf32>
    %221 = tpu.matmul %199, %7, %cst_78 {dimension_numbers = #tpu.dot_dimension_numbers<[1], [0], [0], [1], [0, 0, 1, 1], [], []>} : vector<8x128xf32>, vector<128x128xf32>, vector<8x128xf32> -> vector<8x128xf32>
    %222 = vector.extract_strided_slice %204 {offsets = [0, 256], sizes = [8, 128], strides = [1, 1]} : vector<8x384xf32> to vector<8x128xf32>
    %223 = arith.addf %221, %10 : vector<8x128xf32>
    %224 = arith.mulf %212, %223 : vector<8x128xf32>
    %225 = arith.addf %222, %224 : vector<8x128xf32>
    %226 = math.tanh %225 : vector<8x128xf32>
    %cst_79 = arith.constant 1.000000e+00 : f32
    %227 = vector.broadcast %cst_79 : f32 to vector<8x128xf32>
    %228 = arith.subf %227, %220 : vector<8x128xf32>
    %229 = arith.mulf %228, %226 : vector<8x128xf32>
    %230 = arith.mulf %220, %199 : vector<8x128xf32>
    %231 = arith.addf %229, %230 : vector<8x128xf32>
    %c0_80 = arith.constant 0 : index
    %c6_81 = arith.constant 6 : index
    %c0_82 = arith.constant 0 : index
    %232 = vector.load %arg6[%c0_80, %c6_81, %c0_82] : memref<8x8x128xf32, #tpu.memory_space<vmem>>, vector<8x1x128xf32>
    %233 = vector.shape_cast %232 : vector<8x1x128xf32> to vector<8x128xf32>
    %234 = vector.shape_cast %231 : vector<8x128xf32> to vector<8x1x128xf32>
    tpu.vector_store %arg6[%c0_80, %c6_81, %c0_82], %234 {strides = array<i32>} : memref<8x8x128xf32, #tpu.memory_space<vmem>>, vector<8x1x128xf32>,
    %c7 = arith.constant 7 : index
    %c0_83 = arith.constant 0 : index
    %c0_84 = arith.constant 0 : index
    %235 = vector.load %arg2[%c7, %c0_83, %c0_84] : memref<8x8x384xf32, #tpu.memory_space<vmem>>, vector<1x8x384xf32>
    %236 = vector.shape_cast %235 : vector<1x8x384xf32> to vector<8x384xf32>
    %cst_85 = arith.constant dense<0.000000e+00> : vector<8x128xf32>
    %237 = tpu.matmul %231, %5, %cst_85 {dimension_numbers = #tpu.dot_dimension_numbers<[1], [0], [0], [1], [0, 0, 1, 1], [], []>} : vector<8x128xf32>, vector<128x128xf32>, vector<8x128xf32> -> vector<8x128xf32>
    %238 = vector.extract_strided_slice %236 {offsets = [0, 0], sizes = [8, 128], strides = [1, 1]} : vector<8x384xf32> to vector<8x128xf32>
    %239 = arith.addf %238, %237 : vector<8x128xf32>
    %240 = arith.negf %239 : vector<8x128xf32>
    %241 = math.exp %240 : vector<8x128xf32>
    %cst_86 = arith.constant 1.000000e+00 : f32
    %242 = vector.broadcast %cst_86 : f32 to vector<8x128xf32>
    %243 = arith.addf %242, %241 : vector<8x128xf32>
    %244 = arith.divf %242, %243 : vector<8x128xf32>
    %cst_87 = arith.constant dense<0.000000e+00> : vector<8x128xf32>
    %245 = tpu.matmul %231, %6, %cst_87 {dimension_numbers = #tpu.dot_dimension_numbers<[1], [0], [0], [1], [0, 0, 1, 1], [], []>} : vector<8x128xf32>, vector<128x128xf32>, vector<8x128xf32> -> vector<8x128xf32>
    %246 = vector.extract_strided_slice %236 {offsets = [0, 128], sizes = [8, 128], strides = [1, 1]} : vector<8x384xf32> to vector<8x128xf32>
    %247 = arith.addf %246, %245 : vector<8x128xf32>
    %248 = arith.negf %247 : vector<8x128xf32>
    %249 = math.exp %248 : vector<8x128xf32>
    %cst_88 = arith.constant 1.000000e+00 : f32
    %250 = vector.broadcast %cst_88 : f32 to vector<8x128xf32>
    %251 = arith.addf %250, %249 : vector<8x128xf32>
    %252 = arith.divf %250, %251 : vector<8x128xf32>
    %cst_89 = arith.constant dense<0.000000e+00> : vector<8x128xf32>
    %253 = tpu.matmul %231, %7, %cst_89 {dimension_numbers = #tpu.dot_dimension_numbers<[1], [0], [0], [1], [0, 0, 1, 1], [], []>} : vector<8x128xf32>, vector<128x128xf32>, vector<8x128xf32> -> vector<8x128xf32>
    %254 = vector.extract_strided_slice %236 {offsets = [0, 256], sizes = [8, 128], strides = [1, 1]} : vector<8x384xf32> to vector<8x128xf32>
    %255 = arith.addf %253, %10 : vector<8x128xf32>
    %256 = arith.mulf %244, %255 : vector<8x128xf32>
    %257 = arith.addf %254, %256 : vector<8x128xf32>
    %258 = math.tanh %257 : vector<8x128xf32>
    %cst_90 = arith.constant 1.000000e+00 : f32
    %259 = vector.broadcast %cst_90 : f32 to vector<8x128xf32>
    %260 = arith.subf %259, %252 : vector<8x128xf32>
    %261 = arith.mulf %260, %258 : vector<8x128xf32>
    %262 = arith.mulf %252, %231 : vector<8x128xf32>
    %263 = arith.addf %261, %262 : vector<8x128xf32>
    %c0_91 = arith.constant 0 : index
    %c7_92 = arith.constant 7 : index
    %c0_93 = arith.constant 0 : index
    %264 = vector.load %arg6[%c0_91, %c7_92, %c0_93] : memref<8x8x128xf32, #tpu.memory_space<vmem>>, vector<8x1x128xf32>
    %265 = vector.shape_cast %264 : vector<8x1x128xf32> to vector<8x128xf32>
    %266 = vector.shape_cast %263 : vector<8x128xf32> to vector<8x1x128xf32>
    tpu.vector_store %arg6[%c0_91, %c7_92, %c0_93], %266 {strides = array<i32>} : memref<8x8x128xf32, #tpu.memory_space<vmem>>, vector<8x1x128xf32>,
    %c0_94 = arith.constant 0 : index
    %c0_95 = arith.constant 0 : index
    %267 = vector.load %arg7[%c0_94, %c0_95] : memref<8x128xf32, #tpu.memory_space<vmem>>, vector<8x128xf32>
    tpu.vector_store %arg7[%c0_94, %c0_95], %263 {strides = array<i32>} : memref<8x128xf32, #tpu.memory_space<vmem>>, vector<8x128xf32>,
    return
  }
  func.func @transform_0(%arg0: i32, %arg1: i32) -> (i32, i32, i32) {
    %c0_i32 = arith.constant 0 : i32
    %c0_i32_0 = arith.constant 0 : i32
    return %arg1, %arg0, %c0_i32 : i32, i32, i32
  }
  func.func @transform_1(%arg0: i32, %arg1: i32) -> (i32, i32) {
    %c0_i32 = arith.constant 0 : i32
    %c0_i32_0 = arith.constant 0 : i32
    return %arg0, %c0_i32 : i32, i32
  }
  func.func @transform_2(%arg0: i32, %arg1: i32) -> (i32, i32) {
    %c0_i32 = arith.constant 0 : i32
    %c0_i32_0 = arith.constant 0 : i32
    %c0_i32_1 = arith.constant 0 : i32
    return %c0_i32, %c0_i32_0 : i32, i32
  }
  func.func @transform_3(%arg0: i32, %arg1: i32) -> (i32, i32) {
    %c0_i32 = arith.constant 0 : i32
    %c0_i32_0 = arith.constant 0 : i32
    %c0_i32_1 = arith.constant 0 : i32
    return %c0_i32, %c0_i32_0 : i32, i32
  }
  func.func @transform_4(%arg0: i32, %arg1: i32) -> (i32, i32, i32) {
    %c0_i32 = arith.constant 0 : i32
    %c0_i32_0 = arith.constant 0 : i32
    return %arg0, %arg1, %c0_i32 : i32, i32, i32
  }
  func.func @transform_5(%arg0: i32, %arg1: i32) -> (i32, i32) {
    %c0_i32 = arith.constant 0 : i32
    %c0_i32_0 = arith.constant 0 : i32
    return %arg0, %c0_i32 : i32, i32
  }
}

</mosaic_0001>

<bundles_post_ra>
// kernel: tpu_custom_call.1
= control target key start
LH: loop header
LB: loop body
LE: loop exit
PB: predicated region body
PF: predicated region fallthrough
CT: control target
= control target key end

     0   :  { %11 = vsyncpa [#allocation3], 0  ;;  %s5310_s0 = inlined_call_operand.hbm [shape: f32[8,8,384], index: 0, kind: input, shape index: {}]   ;;  %s5311_s1 = inlined_call_operand.hbm [shape: f32[8,128], index: 1, kind: input, shape index: {}]   ;;  %s5312_s2 = inlined_call_operand.hbm [shape: f32[128,384], index: 2, kind: input, shape index: {}]   ;;  %s5313_s3 = inlined_call_operand.vmem [shape: f32[1,128], index: 3, kind: input, shape index: {}]   ;;  %s5314_s4 = inlined_call_operand.hbm [shape: f32[8,8,128], index: 4, kind: output, shape index: {0}]   ;;  %s5315_s5 = inlined_call_operand.hbm [shape: f32[8,128], index: 5, kind: output, shape index: {1}]  }
   0x1   :  { %12 = vsyncpa [#allocation6], 0 }
   0x2   :  { %13 = vsyncpa [#allocation4], 0 }
   0x3   :  { %14 = vsyncpa [#allocation10], 0  ;;  %s4108_s18 = smov [#allocation5]   ;;  %s4109_s20 = smov [#allocation2]  }
   0x4   :  { %s33_s19 = sshll.u32 %s4108_s18, 4  ;;  %s20_s21 = sshll.u32 %s4109_s20, 4  ;;  %s34_s19 = int_to_ptr.vmem [resolvable:$true] %s33_s19  ;;  %s21_s21 = int_to_ptr.vmem [resolvable:$true] %s20_s21 }
   0x5   :  { %s4008_s22 = scalar_lea.vmem %s34_s19, 128  ;;  %p4013_p1 = scmp.lt.s32.totalorder %s34_s19, %s34_s19 }
   0x6   :  { %p4009_p0 = scmp.ne.s32.totalorder %s34_s19, %s4008_s22  ;;  %p4014_p2 = scmp.lt.s32.totalorder %s4008_s22, %s4008_s22 }
   0x8   :  { %p4015_p3 = por %p4014_p2, %p4013_p1 }
   0xa   :  { %p4016_p4 = pnand %p4015_p3, %p4009_p0 }
   0xc   :  { %4019 = shalt.err (!%p4016_p4)
}
   0xd   :  { %36 = dma.hbm_to_vmem [thread:$0]  %s5311_s1, 128, %s34_s19, [#allocation6]  }
   0xe   :  { %s4028_s25 = scalar_lea.vmem %s21_s21, 3072  ;;  %p4033_p6 = scmp.lt.s32.totalorder %s21_s21, %s21_s21 }
   0xf   :  { %p4029_p5 = scmp.ne.s32.totalorder %s21_s21, %s4028_s25  ;;  %p4034_p7 = scmp.lt.s32.totalorder %s4028_s25, %s4028_s25 }
  0x11   :  { %p4035_p8 = por %p4034_p7, %p4033_p6 }
  0x13   :  { %p4036_p9 = pnand %p4035_p8, %p4029_p5 }
  0x15   :  { %4039 = shalt.err (!%p4036_p9)
}
  0x16   :  { %s4110_s26 = smov 384   ;;  %s4111_s27 = smov 24  }
  0x17   :  { %26 = dma.hbm_to_vmem [thread:$0]  %s5310_s0, 3072, %s21_s21, [#allocation3], %s4110_s26, %s4110_s26, %s4111_s27  }
  0x18   :  { %s4112_s30 = smov [#allocation7]  }
  0x19   :  { %s42_s6 = sshll.u32 %s4112_s30, 4  ;;  %s43_s6 = int_to_ptr.vmem [resolvable:$true] %s42_s6 }
  0x1a   :  { %s4048_s7 = scalar_lea.vmem %s43_s6, 6144  ;;  %p4053_p11 = scmp.lt.s32.totalorder %s43_s6, %s43_s6 }
  0x1b   :  { %p4049_p10 = scmp.ne.s32.totalorder %s43_s6, %s4048_s7  ;;  %p4054_p12 = scmp.lt.s32.totalorder %s4048_s7, %s4048_s7 }
  0x1d   :  { %p4055_p13 = por %p4054_p12, %p4053_p11 }
  0x1f   :  { %p4056_p0 = pnand %p4055_p13, %p4049_p10 }
  0x21   :  { %4059 = shalt.err (!%p4056_p0)
}
  0x22   :  { %48 = dma.hbm_to_vmem [thread:$0]  %s5312_s2, 6144, %s43_s6, [#allocation6], %s4110_s26, %s4110_s26, %s4111_s27  }
  0x23   :  { %4100 = dma.done.wait [#allocation3], 3072  }
  0x24   :  { %4101 = vsyncadd [#allocation3], 4294964224 }
  0x25   :  { %4102 = dma.done.wait [#allocation6], 6272  }
  0x26   :  { %4103 = vsyncadd [#allocation6], 4294961024  ;;  %v5316_v0 = vmov 0.0   ;;  %vm4114_vm0 = vmmov 0   ;;  %v4165_v1 = vld [vmem:[#allocation7 + $0x168] sm:$0xff]  ;;  %v4167_v2 = vld [vmem:[#allocation7 + $0x150] sm:$0xff] }
  0x27   :  { %3019 = vmatprep.subr.mxu0 %v5316_v0  ;;  %3054 = vmatprep.subr.mxu1 %v5316_v0  ;;  %v4171_v3 = vld [vmem:[#allocation7 + $0x138] sm:$0xff]  ;;  %v4173_v4 = vld [vmem:[#allocation7 + $0x170] sm:$0xff]  ;;  %v4180_v6 = vld [vmem:[#allocation7 + $0x120] sm:$0xff] }
  0x28   :  { %3051 = vmatprep.mubr.msk.f32.mxu0 %vm4114_vm0, %v5316_v0  ;;  %3086 = vmatprep.mubr.msk.f32.mxu1 %vm4114_vm0, %v5316_v0  ;;  %v4177_v5 = vld [vmem:[#allocation7 + $0x158] sm:$0xff]  ;;  %v4183_v7 = vld [vmem:[#allocation7 + $0x140] sm:$0xff]  ;;  %v4188_v8 = vld [vmem:[#allocation7 + $0x108] sm:$0xff] }
  0x29   :  { %3020 = vmatpush3.msra.mxu0 %v4165_v1  ;;  %3055 = vmatpush3.msra.mxu1 %v4173_v4  ;;  %v4191_v9 = vld [vmem:[#allocation7 + $0x128] sm:$0xff]  ;;  %v4196_v10 = vld [vmem:[#allocation7 + $0xf0] sm:$0xff]  ;;  %v4204_v12 = vld [vmem:[#allocation7 + $0xd8] sm:$0xff] }
  0x2a   :  { %3021 = vmatprep.subr.mxu0 %v5316_v0  ;;  %3056 = vmatprep.subr.mxu1 %v5316_v0  ;;  %v4199_v11 = vld [vmem:[#allocation7 + $0x110] sm:$0xff]  ;;  %v4207_v13 = vld [vmem:[#allocation7 + $0xf8] sm:$0xff]  ;;  %v4212_v14 = vld [vmem:[#allocation7 + $0xc0] sm:$0xff] }
  0x2b   :  { %3022 = vmatpush3.msra.mxu0 %v4167_v2  ;;  %3057 = vmatpush3.msra.mxu1 %v4177_v5  ;;  %v4215_v15 = vld [vmem:[#allocation7 + $0xe0] sm:$0xff]  ;;  %v4220_v16 = vld [vmem:[#allocation7 + $0xa8] sm:$0xff]  ;;  %v4228_v18 = vld [vmem:[#allocation7 + $0x90] sm:$0xff] }
  0x2c   :  { %3023 = vmatprep.subr.mxu0 %v5316_v0  ;;  %3058 = vmatprep.subr.mxu1 %v5316_v0  ;;  %v4223_v17 = vld [vmem:[#allocation7 + $0xc8] sm:$0xff]  ;;  %v4231_v19 = vld [vmem:[#allocation7 + $0xb0] sm:$0xff]  ;;  %v4236_v20 = vld [vmem:[#allocation7 + $0x78] sm:$0xff] }
  0x2d   :  { %3024 = vmatpush3.msra.mxu0 %v4171_v3  ;;  %3059 = vmatpush3.msra.mxu1 %v4183_v7  ;;  %v4239_v21 = vld [vmem:[#allocation7 + $0x98] sm:$0xff]  ;;  %v4244_v22 = vld [vmem:[#allocation7 + $0x60] sm:$0xff]  ;;  %v4252_v24 = vld [vmem:[#allocation7 + $0x48] sm:$0xff] }
  0x2e   :  { %3025 = vmatprep.subr.mxu0 %v5316_v0  ;;  %3060 = vmatprep.subr.mxu1 %v5316_v0  ;;  %5339 = vst [vmem:[#allocation15_spill] sm:$0xff] %v4239_v21  ;;  %v4247_v23 = vld [vmem:[#allocation7 + $0x80] sm:$0xff]  ;;  %v4255_v25 = vld [vmem:[#allocation7 + $0x68] sm:$0xff]  ;;  %v4260_v26 = vld [vmem:[#allocation7 + $0x30] sm:$0xff] }
  0x2f   :  { %3026 = vmatpush3.msra.mxu0 %v4180_v6  ;;  %3061 = vmatpush3.msra.mxu1 %v4191_v9  ;;  %5340 = vst [vmem:[#allocation16_spill] sm:$0xff] %v4247_v23  ;;  %5341 = vst [vmem:[#allocation17_spill] sm:$0xff] %v4255_v25  ;;  %v4263_v27 = vld [vmem:[#allocation7 + $0x50] sm:$0xff]  ;;  %v4268_v28 = vld [vmem:[#allocation7 + $0x18] sm:$0xff] }
  0x30   :  { %3027 = vmatprep.subr.mxu0 %v5316_v0  ;;  %3062 = vmatprep.subr.mxu1 %v5316_v0  ;;  %5342 = vst [vmem:[#allocation18_spill] sm:$0xff] %v4263_v27  ;;  %v4271_v29 = vld [vmem:[#allocation7 + $0x38] sm:$0xff]  ;;  %v4276_v30 = vld [vmem:[#allocation7] sm:$0xff]  ;;  %v4291_v34 = vld [vmem:[#allocation7 + $0x8] sm:$0xff] }
  0x31   :  { %3028 = vmatpush3.msra.mxu0 %v4188_v8  ;;  %3063 = vmatpush3.msra.mxu1 %v4199_v11  ;;  %5343 = vst [vmem:[#allocation19_spill] sm:$0xff] %v4271_v29  ;;  %v4279_v31 = vld [vmem:[#allocation7 + $0x20] sm:$0xff]  ;;  %v4282_v32 = vld [vmem:[#allocation5] sm:$0xff]  ;;  %5345 = vst [vmem:[#allocation21_spill] sm:$0xff] %v4291_v34 }
  0x32   :  { %3029 = vmatprep.subr.mxu0 %v5316_v0  ;;  %3064 = vmatprep.subr.mxu1 %v5316_v0  ;;  %5344 = vst [vmem:[#allocation20_spill] sm:$0xff] %v4279_v31  ;;  %v4286_v33 = vld [vmem:[#allocation7 + $0x178] sm:$0xff]  ;;  %v4295_v35 = vld [vmem:[#allocation7 + $0x160] sm:$0xff]  ;;  %v4300_v36 = vld [vmem:[#allocation7 + $0x148] sm:$0xff] }
  0x33   :  { %3030 = vmatpush3.msra.mxu0 %v4196_v10  ;;  %3065 = vmatpush3.msra.mxu1 %v4207_v13  ;;  %v4306_v37 = vld [vmem:[#allocation7 + $0x130] sm:$0xff]  ;;  %v4313_v38 = vld [vmem:[#allocation7 + $0x118] sm:$0xff]  ;;  %v4319_v39 = vld [vmem:[#allocation7 + $0x100] sm:$0xff] }
  0x34   :  { %3031 = vmatprep.subr.mxu0 %v5316_v0  ;;  %3066 = vmatprep.subr.mxu1 %v5316_v0  ;;  %v4325_v40 = vld [vmem:[#allocation7 + $0xe8] sm:$0xff]  ;;  %v4331_v41 = vld [vmem:[#allocation7 + $0xd0] sm:$0xff]  ;;  %v4337_v42 = vld [vmem:[#allocation7 + $0xb8] sm:$0xff] }
  0x35   :  { %3032 = vmatpush3.msra.mxu0 %v4204_v12  ;;  %3067 = vmatpush3.msra.mxu1 %v4215_v15  ;;  %v4343_v43 = vld [vmem:[#allocation7 + $0xa0] sm:$0xff]  ;;  %v4349_v44 = vld [vmem:[#allocation7 + $0x88] sm:$0xff]  ;;  %v4355_v45 = vld [vmem:[#allocation7 + $0x70] sm:$0xff] }
  0x36   :  { %3033 = vmatprep.subr.mxu0 %v5316_v0  ;;  %3068 = vmatprep.subr.mxu1 %v5316_v0  ;;  %v4361_v46 = vld [vmem:[#allocation7 + $0x58] sm:$0xff]  ;;  %v4367_v47 = vld [vmem:[#allocation7 + $0x40] sm:$0xff]  ;;  %v4373_v48 = vld [vmem:[#allocation7 + $0x28] sm:$0xff] }
  0x37   :  { %3034 = vmatpush3.msra.mxu0 %v4212_v14  ;;  %3069 = vmatpush3.msra.mxu1 %v4223_v17  ;;  %v4379_v49 = vld [vmem:[#allocation7 + $0x10] sm:$0xff]  ;;  %v122_v50 = vld [vmem:[#allocation2] sm:$0xff]  ;;  %v123_v54 = vld [vmem:[#allocation2 + $0x8] sm:$0xff] }
  0x38   :  { %3035 = vmatprep.subr.mxu0 %v5316_v0  ;;  %3070 = vmatprep.subr.mxu1 %v5316_v0 }
  0x39   :  { %3036 = vmatpush3.msra.mxu0 %v4220_v16  ;;  %3071 = vmatpush3.msra.mxu1 %v4231_v19 }
  0x3a   :  { %3037 = vmatprep.subr.mxu0 %v5316_v0  ;;  %3072 = vmatprep.subr.mxu1 %v5316_v0 }
  0x3b   :  { %3038 = vmatpush3.msra.mxu0 %v4228_v18  ;;  %3073 = vmatpush3.msra.mxu1 %v4239_v21 }
  0x3c   :  { %3039 = vmatprep.subr.mxu0 %v5316_v0  ;;  %3074 = vmatprep.subr.mxu1 %v5316_v0 }
  0x3d   :  { %3040 = vmatpush3.msra.mxu0 %v4236_v20  ;;  %3075 = vmatpush3.msra.mxu1 %v4247_v23 }
  0x3e   :  { %3041 = vmatprep.subr.mxu0 %v5316_v0  ;;  %3076 = vmatprep.subr.mxu1 %v5316_v0 }
  0x3f   :  { %3042 = vmatpush3.msra.mxu0 %v4244_v22  ;;  %3077 = vmatpush3.msra.mxu1 %v4255_v25 }
  0x40   :  { %3043 = vmatprep.subr.mxu0 %v5316_v0  ;;  %3078 = vmatprep.subr.mxu1 %v5316_v0 }
  0x41   :  { %3044 = vmatpush3.msra.mxu0 %v4252_v24  ;;  %3079 = vmatpush3.msra.mxu1 %v4263_v27 }
  0x42   :  { %3045 = vmatprep.subr.mxu0 %v5316_v0  ;;  %3080 = vmatprep.subr.mxu1 %v5316_v0 }
  0x43   :  { %3046 = vmatpush3.msra.mxu0 %v4260_v26  ;;  %3081 = vmatpush3.msra.mxu1 %v4271_v29 }
  0x44   :  { %3047 = vmatprep.subr.mxu0 %v5316_v0  ;;  %3082 = vmatprep.subr.mxu1 %v5316_v0 }
  0x45   :  { %3048 = vmatpush3.msra.mxu0 %v4268_v28  ;;  %3083 = vmatpush3.msra.mxu1 %v4279_v31 }
  0x46   :  { %3049 = vmatprep.subr.mxu0 %v5316_v0  ;;  %3084 = vmatprep.subr.mxu1 %v5316_v0 }
  0x47   :  { %3050 = vmatpush3.msra.mxu0 %v4276_v30  ;;  %3085 = vmatpush3.msra.mxu1 %v4291_v34 }
  0x48   :  { %3052 = vmatmul.mubr.f32.vlgmr.msra.gmra.mxu0 %v4282_v32  ;;  %3089 = vmatprep.subr.mxu0 %v5316_v0 }
  0x49   :  { %3090 = vmatpush3.msra.mxu0 %v4286_v33  ;;  %3087 = vmatmul.mubr.f32.vlgmr.msra.gmra.mxu1 %v4282_v32 }
  0x4a   :  { %3091 = vmatprep.subr.mxu0 %v5316_v0  ;;  %3121 = vmatprep.mubr.msk.f32.mxu0 %vm4114_vm0, %v5316_v0 }
  0x4b   :  { %3092 = vmatpush3.msra.mxu0 %v4295_v35  ;;  %3124 = vmatprep.subr.mxu1 %v5316_v0 }
  0x4c   :  { %3093 = vmatprep.subr.mxu0 %v5316_v0  ;;  %3125 = vmatpush3.msra.mxu1 %v4165_v1 }
  0x4d   :  { %3094 = vmatpush3.msra.mxu0 %v4300_v36  ;;  %3126 = vmatprep.subr.mxu1 %v5316_v0 }
  0x4e   :  { %3095 = vmatprep.subr.mxu0 %v5316_v0  ;;  %3127 = vmatpush3.msra.mxu1 %v4167_v2 }
  0x4f   :  { %3096 = vmatpush3.msra.mxu0 %v4306_v37  ;;  %3128 = vmatprep.subr.mxu1 %v5316_v0 }
  0x50   :  { %3097 = vmatprep.subr.mxu0 %v5316_v0  ;;  %3129 = vmatpush3.msra.mxu1 %v4171_v3 }
  0x51   :  { %3098 = vmatpush3.msra.mxu0 %v4313_v38  ;;  %3130 = vmatprep.subr.mxu1 %v5316_v0 }
  0x52   :  { %3099 = vmatprep.subr.mxu0 %v5316_v0  ;;  %3131 = vmatpush3.msra.mxu1 %v4180_v6 }
  0x53   :  { %3100 = vmatpush3.msra.mxu0 %v4319_v39  ;;  %3132 = vmatprep.subr.mxu1 %v5316_v0 }
  0x54   :  { %3101 = vmatprep.subr.mxu0 %v5316_v0  ;;  %3133 = vmatpush3.msra.mxu1 %v4188_v8 }
  0x55   :  { %3102 = vmatpush3.msra.mxu0 %v4325_v40  ;;  %3134 = vmatprep.subr.mxu1 %v5316_v0 }
  0x56   :  { %3103 = vmatprep.subr.mxu0 %v5316_v0  ;;  %3135 = vmatpush3.msra.mxu1 %v4196_v10 }
  0x57   :  { %3104 = vmatpush3.msra.mxu0 %v4331_v41  ;;  %3136 = vmatprep.subr.mxu1 %v5316_v0 }
  0x58   :  { %3105 = vmatprep.subr.mxu0 %v5316_v0  ;;  %3137 = vmatpush3.msra.mxu1 %v4204_v12 }
  0x59   :  { %3106 = vmatpush3.msra.mxu0 %v4337_v42  ;;  %3138 = vmatprep.subr.mxu1 %v5316_v0 }
  0x5a   :  { %3107 = vmatprep.subr.mxu0 %v5316_v0  ;;  %3139 = vmatpush3.msra.mxu1 %v4212_v14 }
  0x5b   :  { %3108 = vmatpush3.msra.mxu0 %v4343_v43  ;;  %3140 = vmatprep.subr.mxu1 %v5316_v0 }
  0x5c   :  { %3109 = vmatprep.subr.mxu0 %v5316_v0  ;;  %3141 = vmatpush3.msra.mxu1 %v4220_v16 }
  0x5d   :  { %3110 = vmatpush3.msra.mxu0 %v4349_v44  ;;  %3142 = vmatprep.subr.mxu1 %v5316_v0 }
  0x5e   :  { %3111 = vmatprep.subr.mxu0 %v5316_v0  ;;  %3143 = vmatpush3.msra.mxu1 %v4228_v18 }
  0x5f   :  { %3112 = vmatpush3.msra.mxu0 %v4355_v45  ;;  %3144 = vmatprep.subr.mxu1 %v5316_v0 }
  0x60   :  { %3113 = vmatprep.subr.mxu0 %v5316_v0  ;;  %3145 = vmatpush3.msra.mxu1 %v4236_v20 }
  0x61   :  { %3114 = vmatpush3.msra.mxu0 %v4361_v46  ;;  %3146 = vmatprep.subr.mxu1 %v5316_v0 }
  0x62   :  { %3115 = vmatprep.subr.mxu0 %v5316_v0  ;;  %3147 = vmatpush3.msra.mxu1 %v4244_v22 }
  0x63   :  { %3116 = vmatpush3.msra.mxu0 %v4367_v47  ;;  %3148 = vmatprep.subr.mxu1 %v5316_v0 }
  0x64   :  { %3117 = vmatprep.subr.mxu0 %v5316_v0  ;;  %3149 = vmatpush3.msra.mxu1 %v4252_v24 }
  0x65   :  { %3118 = vmatpush3.msra.mxu0 %v4373_v48  ;;  %3150 = vmatprep.subr.mxu1 %v5316_v0 }
  0x66   :  { %3119 = vmatprep.subr.mxu0 %v5316_v0  ;;  %3151 = vmatpush3.msra.mxu1 %v4260_v26 }
  0x67   :  { %3120 = vmatpush3.msra.mxu0 %v4379_v49  ;;  %3152 = vmatprep.subr.mxu1 %v5316_v0 }
  0x68   :  { %3122 = vmatmul.mubr.f32.vlgmr.msra.gmra.mxu0 %v4282_v32  ;;  %3159 = vmatprep.subr.mxu0 %v5316_v0 }
  0x69   :  { %3160 = vmatpush3.msra.mxu0 %v4173_v4  ;;  %3153 = vmatpush3.msra.mxu1 %v4268_v28 }
  0x6a   :  { %3161 = vmatprep.subr.mxu0 %v5316_v0  ;;  %3154 = vmatprep.subr.mxu1 %v5316_v0 }
  0x6b   :  { %3162 = vmatpush3.msra.mxu0 %v4177_v5  ;;  %3155 = vmatpush3.msra.mxu1 %v4276_v30 }
  0x6c   :  { %3163 = vmatprep.subr.mxu0 %v5316_v0  ;;  %3156 = vmatprep.mubr.msk.f32.mxu1 %vm4114_vm0, %v5316_v0 }
  0x6d   :  { %3164 = vmatpush3.msra.mxu0 %v4183_v7  ;;  %3191 = vmatprep.mubr.msk.f32.mxu0 %vm4114_vm0, %v5316_v0 }
  0x6e   :  { %3165 = vmatprep.subr.mxu0 %v5316_v0  ;;  %3194 = vmatprep.subr.mxu1 %v5316_v0 }
  0x6f   :  { %3166 = vmatpush3.msra.mxu0 %v4191_v9 }
  0x70   :  { %3167 = vmatprep.subr.mxu0 %v5316_v0 }
  0x71   :  { %3168 = vmatpush3.msra.mxu0 %v4199_v11 }
  0x72   :  { %3169 = vmatprep.subr.mxu0 %v5316_v0 }
  0x73   :  { %3170 = vmatpush3.msra.mxu0 %v4207_v13 }
  0x74   :  { %3171 = vmatprep.subr.mxu0 %v5316_v0 }
  0x75   :  { %3172 = vmatpush3.msra.mxu0 %v4215_v15 }
  0x76   :  { %3173 = vmatprep.subr.mxu0 %v5316_v0 }
  0x77   :  { %3174 = vmatpush3.msra.mxu0 %v4223_v17 }
  0x78   :  { %3175 = vmatprep.subr.mxu0 %v5316_v0 }
  0x79   :  { %3176 = vmatpush3.msra.mxu0 %v4231_v19 }
  0x7a   :  { %3177 = vmatprep.subr.mxu0 %v5316_v0 }
  0x7b   :  { %3178 = vmatpush3.msra.mxu0 %v4239_v21 }
  0x7c   :  { %3179 = vmatprep.subr.mxu0 %v5316_v0 }
  0x7d   :  { %3180 = vmatpush3.msra.mxu0 %v4247_v23 }
  0x7e   :  { %3181 = vmatprep.subr.mxu0 %v5316_v0 }
  0x7f   :  { %3182 = vmatpush3.msra.mxu0 %v4255_v25 }
  0x80   :  { %3183 = vmatprep.subr.mxu0 %v5316_v0 }
  0x81   :  { %3184 = vmatpush3.msra.mxu0 %v4263_v27 }
  0x82   :  { %3185 = vmatprep.subr.mxu0 %v5316_v0 }
  0x83   :  { %3186 = vmatpush3.msra.mxu0 %v4271_v29 }
  0x84   :  { %3187 = vmatprep.subr.mxu0 %v5316_v0 }
  0x85   :  { %3188 = vmatpush3.msra.mxu0 %v4279_v31 }
  0x86   :  { %3189 = vmatprep.subr.mxu0 %v5316_v0 }
  0x87   :  { %3190 = vmatpush3.msra.mxu0 %v4291_v34 }
  0x88   :  { %3229 = vmatprep.subr.mxu0 %v5316_v0  ;;  %v4435_v0 = vld [vmem:[%s5313_s3] ss:$0 sm:$0xff] }
 0x108   :  { %v191_v51 = vpop.f32.mrf.mxu0 }
 0x109   :  { %v195_v52 = vadd.f32 %v191_v51, %v122_v50  ;;  %v268_v56 = vpop.f32.mrf.mxu1 }
 0x10a   :  { %v3053_v53 = vpop.f32.mrf.mxu0  ;;  %v272_v57 = vadd.f32 %v268_v56, %v123_v54 }
 0x10b   :  { %v2563_v55 = vmul.f32 -1.442695, %v195_v52  ;;  %v3088_v58 = vpop.f32.mrf.mxu1  ;;  %v124_v53 = vld [vmem:[#allocation2 + $0x10] sm:$0xff] }
 0x10c   :  { %v2564_v59 = vmul.f32 -1.442695, %v272_v57  ;;  %v4115_v57 = vmov 1966171168  }
 0x10d   :  { %3871 = vpow2.f32 %v2563_v55  ;;  %v359_v58 = vunpack.c.l.s4 %v4115_v57 }
 0x10e   :  { %3873 = vpow2.f32 %v2564_v59  ;;  %v361_v59 = vlaneseq }
 0x110   :  { %v362_v34 = vshrl.u32 %v361_v59, 7 }
 0x11a   :  { %v3872_v60 = vpop.eup %3871 }
 0x11b   :  { %v199_v61 = vadd.f32 1.0, %v3872_v60  ;;  %v3874_v62 = vpop.eup %3873 }
 0x11c   :  { %v276_v63 = vadd.f32 1.0, %v3874_v62  ;;  %v360_v62 = vunpack.c.0.s8 %v359_v58 }
 0x11d   :  { %3875 = vrcp.f32 %v199_v61 }
 0x11e   :  { %3877 = vrcp.f32 %v276_v63  ;;  %v4439_v63 = vsub.s32 %v360_v62, %v362_v34  ;;  %v5349_v62 = vld [vmem:[#allocation20_spill] sm:$0xff] }
 0x128   :  { %v345_v50 = vpop.f32.mrf.mxu0 }
 0x129   :  { %v346_v51 = vadd.f32 %v4435_v0, %v345_v50 }
 0x12a   :  { %v3876_v52 = vpop.eup %3875  ;;  %v3123_v54 = vpop.f32.mrf.mxu0 }
 0x12b   :  { %v349_v55 = vmul.f32 %v3876_v52, %v346_v51  ;;  %v3878_v60 = vpop.eup %3877 }
 0x12c   :  { %v352_v61 = vsub.f32 1.0, %v3878_v60  ;;  %v354_v27 = vmul.f32 %v3878_v60, %v4282_v32  ;;  %v5347_v60 = vld [vmem:[#allocation18_spill] sm:$0xff] }
 0x12d   :  { %v350_v56 = vadd.f32 %v349_v55, %v124_v53  ;;  %v5346_v53 = vmov 0.0  }
 0x12f   :  { %3879 = vtanh.f32 %v350_v56 }
 0x13c   :  { %v3880_v31 = vpop.eup %3879 }
 0x13d   :  { %v353_v29 = vmul.f32 %v3880_v31, %v352_v61  ;;  %v5348_v61 = vld [vmem:[#allocation19_spill] sm:$0xff] }
 0x13f   :  { %v4441_v50 = vadd.f32 %v354_v27, %v353_v29 }
 0x141   :  { %v357_v51 = vcombine.high %v4441_v50, %v4441_v50  ;;  %v364_v52 = vrot.slane %v4441_v50, %v4439_v63  ;;  %3157 = vmatmul.mubr.f32.vlgmr.msra.gmra.mxu1 %v4441_v50  ;;  %3192 = vmatmul.mubr.f32.vlgmr.msra.gmra.mxu0 %v4441_v50 }
 0x142   :  { %3195 = vmatpush3.msra.mxu1 %v4286_v33  ;;  %3226 = vmatprep.mubr.msk.f32.mxu1 %vm4114_vm0, %v5346_v53 }
 0x143   :  { %v371_v31 = vrot.slane %v357_v51, %v4439_v63  ;;  %v372_v32 = vcombine.high %v364_v52, %v364_v52  ;;  %v380_v27 = vrot.slane %v364_v52, %v4439_v63  ;;  %2565 = vst.sshfl [vmem:[#allocation8] sm:$0x1 pattern:$0x73625140] %v364_v52  ;;  %3196 = vmatprep.subr.mxu1 %v5346_v53  ;;  %v5350_v51 = vld [vmem:[#allocation21_spill] sm:$0xff]  ;;  %v423_v52 = vld [vmem:[#allocation2 + $0x18] sm:$0xff] }
 0x144   :  { %3230 = vmatpush3.msra.mxu0 %v4165_v1  ;;  %3197 = vmatpush3.msra.mxu1 %v4295_v35 }
 0x145   :  { %3231 = vmatprep.subr.mxu0 %v5346_v53  ;;  %v373_v29 = vcombine.high %v371_v31, %v371_v31  ;;  %v387_v34 = vrot.slane %v371_v31, %v4439_v63  ;;  %v394_v54 = vrot.slane %v372_v32, %v4439_v63  ;;  %v402_v55 = vcombine.high %v380_v27, %v380_v27 }
 0x146   :  { %2566 = vst.sshfl [vmem:[#allocation8 + $0x8] sm:$0x1 pattern:$0x73625140] %v372_v32  ;;  %3198 = vmatprep.subr.mxu1 %v5346_v53  ;;  %3232 = vmatpush3.msra.mxu0 %v4167_v2 }
 0x147   :  { %2567 = vst.sshfl [vmem:[#allocation8 + $0x20] sm:$0x1 pattern:$0x73625140] %v371_v31  ;;  %3199 = vmatpush3.msra.mxu1 %v4300_v36  ;;  %v401_v56 = vrot.slane %v373_v29, %v4439_v63  ;;  %v403_v57 = vcombine.high %v387_v34, %v387_v34  ;;  %v404_v58 = vcombine.high %v394_v54, %v394_v54  ;;  %416 = vst [vmem:[#allocation8 + $0x10] sm:$0x1] %v402_v55 }
 0x148   :  { %2568 = vst.sshfl [vmem:[#allocation8 + $0x28] sm:$0x1 pattern:$0x73625140] %v373_v29  ;;  %3200 = vmatprep.subr.mxu1 %v5346_v53  ;;  %3233 = vmatprep.subr.mxu0 %v5346_v53  ;;  %v424_v55 = vld [vmem:[#allocation2 + $0x20] sm:$0xff] }
 0x149   :  { %3201 = vmatpush3.msra.mxu1 %v4306_v37  ;;  %3234 = vmatpush3.msra.mxu0 %v4171_v3  ;;  %v405_v59 = vcombine.high %v401_v56, %v401_v56  ;;  %417 = vst [vmem:[#allocation8 + $0x18] sm:$0x1] %v404_v58  ;;  %420 = vst [vmem:[#allocation8 + $0x30] sm:$0x1] %v403_v57 }
 0x14a   :  { %3202 = vmatprep.subr.mxu1 %v5346_v53  ;;  %3235 = vmatprep.subr.mxu0 %v5346_v53 }
 0x14b   :  { %3203 = vmatpush3.msra.mxu1 %v4313_v38  ;;  %3236 = vmatpush3.msra.mxu0 %v4180_v6  ;;  %421 = vst [vmem:[#allocation8 + $0x38] sm:$0x1] %v405_v59 }
 0x14c   :  { %3204 = vmatprep.subr.mxu1 %v5346_v53  ;;  %3237 = vmatprep.subr.mxu0 %v5346_v53 }
 0x14d   :  { %3205 = vmatpush3.msra.mxu1 %v4319_v39  ;;  %3238 = vmatpush3.msra.mxu0 %v4188_v8 }
 0x14e   :  { %3206 = vmatprep.subr.mxu1 %v5346_v53  ;;  %3239 = vmatprep.subr.mxu0 %v5346_v53 }
 0x14f   :  { %3207 = vmatpush3.msra.mxu1 %v4325_v40  ;;  %3240 = vmatpush3.msra.mxu0 %v4196_v10 }
 0x150   :  { %3208 = vmatprep.subr.mxu1 %v5346_v53  ;;  %3241 = vmatprep.subr.mxu0 %v5346_v53 }
 0x151   :  { %3209 = vmatpush3.msra.mxu1 %v4331_v41  ;;  %3242 = vmatpush3.msra.mxu0 %v4204_v12 }
 0x152   :  { %3210 = vmatprep.subr.mxu1 %v5346_v53  ;;  %3243 = vmatprep.subr.mxu0 %v5346_v53 }
 0x153   :  { %3211 = vmatpush3.msra.mxu1 %v4337_v42  ;;  %3244 = vmatpush3.msra.mxu0 %v4212_v14 }
 0x154   :  { %3212 = vmatprep.subr.mxu1 %v5346_v53  ;;  %3245 = vmatprep.subr.mxu0 %v5346_v53 }
 0x155   :  { %3213 = vmatpush3.msra.mxu1 %v4343_v43  ;;  %3246 = vmatpush3.msra.mxu0 %v4220_v16 }
 0x156   :  { %3214 = vmatprep.subr.mxu1 %v5346_v53  ;;  %3247 = vmatprep.subr.mxu0 %v5346_v53 }
 0x157   :  { %3215 = vmatpush3.msra.mxu1 %v4349_v44  ;;  %3248 = vmatpush3.msra.mxu0 %v4228_v18 }
 0x158   :  { %3216 = vmatprep.subr.mxu1 %v5346_v53  ;;  %3249 = vmatprep.subr.mxu0 %v5346_v53 }
 0x159   :  { %3217 = vmatpush3.msra.mxu1 %v4355_v45  ;;  %3250 = vmatpush3.msra.mxu0 %v4236_v20 }
 0x15a   :  { %3218 = vmatprep.subr.mxu1 %v5346_v53  ;;  %3251 = vmatprep.subr.mxu0 %v5346_v53 }
 0x15b   :  { %3219 = vmatpush3.msra.mxu1 %v4361_v46  ;;  %3252 = vmatpush3.msra.mxu0 %v4244_v22 }
 0x15c   :  { %3220 = vmatprep.subr.mxu1 %v5346_v53  ;;  %3253 = vmatprep.subr.mxu0 %v5346_v53 }
 0x15d   :  { %3221 = vmatpush3.msra.mxu1 %v4367_v47  ;;  %3254 = vmatpush3.msra.mxu0 %v4252_v24 }
 0x15e   :  { %3222 = vmatprep.subr.mxu1 %v5346_v53  ;;  %3255 = vmatprep.subr.mxu0 %v5346_v53 }
 0x15f   :  { %3223 = vmatpush3.msra.mxu1 %v4373_v48  ;;  %3256 = vmatpush3.msra.mxu0 %v4260_v26 }
 0x160   :  { %3224 = vmatprep.subr.mxu1 %v5346_v53  ;;  %3257 = vmatprep.subr.mxu0 %v5346_v53 }
 0x161   :  { %3225 = vmatpush3.msra.mxu1 %v4379_v49  ;;  %3258 = vmatpush3.msra.mxu0 %v4268_v28 }
 0x162   :  { %3227 = vmatmul.mubr.f32.vlgmr.msra.gmra.mxu1 %v4441_v50  ;;  %3264 = vmatprep.subr.mxu1 %v5346_v53 }
 0x163   :  { %3265 = vmatpush3.msra.mxu1 %v4173_v4  ;;  %3259 = vmatprep.subr.mxu0 %v5346_v53 }
 0x164   :  { %3266 = vmatprep.subr.mxu1 %v5346_v53  ;;  %3260 = vmatpush3.msra.mxu0 %v4276_v30 }
 0x165   :  { %3267 = vmatpush3.msra.mxu1 %v4177_v5  ;;  %3261 = vmatprep.mubr.msk.f32.mxu0 %vm4114_vm0, %v5346_v53 }
 0x166   :  { %3268 = vmatprep.subr.mxu1 %v5346_v53  ;;  %3296 = vmatprep.mubr.msk.f32.mxu1 %vm4114_vm0, %v5346_v53 }
 0x167   :  { %3269 = vmatpush3.msra.mxu1 %v4183_v7  ;;  %3299 = vmatprep.subr.mxu0 %v5346_v53 }
 0x168   :  { %3270 = vmatprep.subr.mxu1 %v5346_v53 }
 0x169   :  { %3271 = vmatpush3.msra.mxu1 %v4191_v9 }
 0x16a   :  { %3272 = vmatprep.subr.mxu1 %v5346_v53 }
 0x16b   :  { %3273 = vmatpush3.msra.mxu1 %v4199_v11 }
 0x16c   :  { %3274 = vmatprep.subr.mxu1 %v5346_v53 }
 0x16d   :  { %3275 = vmatpush3.msra.mxu1 %v4207_v13 }
 0x16e   :  { %3276 = vmatprep.subr.mxu1 %v5346_v53 }
 0x16f   :  { %3277 = vmatpush3.msra.mxu1 %v4215_v15 }
 0x170   :  { %3278 = vmatprep.subr.mxu1 %v5346_v53 }
 0x171   :  { %3279 = vmatpush3.msra.mxu1 %v4223_v17 }
 0x172   :  { %3280 = vmatprep.subr.mxu1 %v5346_v53 }
 0x173   :  { %3281 = vmatpush3.msra.mxu1 %v4231_v19 }
 0x174   :  { %3282 = vmatprep.subr.mxu1 %v5346_v53 }
 0x175   :  { %3283 = vmatpush3.msra.mxu1 %v4239_v21 }
 0x176   :  { %3284 = vmatprep.subr.mxu1 %v5346_v53 }
 0x177   :  { %3285 = vmatpush3.msra.mxu1 %v4247_v23  ;;  %v425_v23 = vld [vmem:[#allocation2 + $0x28] sm:$0xff] }
 0x178   :  { %3286 = vmatprep.subr.mxu1 %v5346_v53 }
 0x179   :  { %3287 = vmatpush3.msra.mxu1 %v4255_v25 }
 0x17a   :  { %3288 = vmatprep.subr.mxu1 %v5346_v53 }
 0x17b   :  { %3289 = vmatpush3.msra.mxu1 %v5347_v60 }
 0x17c   :  { %3290 = vmatprep.subr.mxu1 %v5346_v53 }
 0x17d   :  { %3291 = vmatpush3.msra.mxu1 %v5348_v61 }
 0x17e   :  { %3292 = vmatprep.subr.mxu1 %v5346_v53 }
 0x17f   :  { %3293 = vmatpush3.msra.mxu1 %v5349_v62 }
 0x180   :  { %3294 = vmatprep.subr.mxu1 %v5346_v53 }
 0x181   :  { %3295 = vmatpush3.msra.mxu1 %v5350_v51 }
 0x182   :  { %3334 = vmatprep.subr.mxu1 %v5346_v53 }
 0x201   :  { %v492_v31 = vpop.f32.mrf.mxu1  ;;  %v569_v32 = vpop.f32.mrf.mxu0 }
 0x202   :  { %v496_v27 = vadd.f32 %v492_v31, %v423_v52  ;;  %v573_v56 = vadd.f32 %v569_v32, %v424_v55 }
 0x203   :  { %v3158_v29 = vpop.f32.mrf.mxu1  ;;  %v3193_v34 = vpop.f32.mrf.mxu0 }
 0x204   :  { %v2569_v54 = vmul.f32 -1.442695, %v496_v27  ;;  %v2570_v57 = vmul.f32 -1.442695, %v573_v56 }
 0x206   :  { %3881 = vpow2.f32 %v2569_v54 }
 0x207   :  { %3883 = vpow2.f32 %v2570_v57 }
 0x213   :  { %v3882_v58 = vpop.eup %3881 }
 0x214   :  { %v500_v59 = vadd.f32 1.0, %v3882_v58  ;;  %v3884_v62 = vpop.eup %3883 }
 0x215   :  { %v577_v61 = vadd.f32 1.0, %v3884_v62 }
 0x216   :  { %3885 = vrcp.f32 %v500_v59 }
 0x217   :  { %3887 = vrcp.f32 %v577_v61 }
 0x222   :  { %v646_v51 = vpop.f32.mrf.mxu1 }
 0x223   :  { %v647_v60 = vadd.f32 %v4435_v0, %v646_v51  ;;  %v3886_v25 = vpop.eup %3885 }
 0x224   :  { %v3228_v21 = vpop.f32.mrf.mxu1  ;;  %v3888_v27 = vpop.eup %3887 }
 0x225   :  { %v650_v52 = vmul.f32 %v3886_v25, %v647_v60  ;;  %v653_v29 = vsub.f32 1.0, %v3888_v27  ;;  %v655_v54 = vmul.f32 %v3888_v27, %v4441_v50 }
 0x227   :  { %v651_v31 = vadd.f32 %v650_v52, %v425_v23  ;;  %v726_v52 = vld [vmem:[#allocation2 + $0x40] sm:$0xff] }
 0x229   :  { %3889 = vtanh.f32 %v651_v31 }
 0x236   :  { %v3890_v32 = vpop.eup %3889 }
 0x237   :  { %v654_v34 = vmul.f32 %v3890_v32, %v653_v29 }
 0x239   :  { %v4559_v55 = vadd.f32 %v655_v54, %v654_v34 }
 0x23b   :  { %v658_v62 = vcombine.high %v4559_v55, %v4559_v55  ;;  %v665_v51 = vrot.slane %v4559_v55, %v4439_v63  ;;  %3262 = vmatmul.mubr.f32.vlgmr.msra.gmra.mxu0 %v4559_v55  ;;  %3297 = vmatmul.mubr.f32.vlgmr.msra.gmra.mxu1 %v4559_v55 }
 0x23c   :  { %3300 = vmatpush3.msra.mxu0 %v4286_v33  ;;  %3331 = vmatprep.mubr.msk.f32.mxu0 %vm4114_vm0, %v5346_v53 }
 0x23d   :  { %v672_v21 = vrot.slane %v658_v62, %v4439_v63  ;;  %v673_v23 = vcombine.high %v665_v51, %v665_v51  ;;  %v681_v25 = vrot.slane %v665_v51, %v4439_v63  ;;  %2571 = vst.sshfl [vmem:[#allocation8 + $0x1] sm:$0x1 pattern:$0x73625140] %v665_v51  ;;  %3301 = vmatprep.subr.mxu0 %v5346_v53 }
 0x23e   :  { %3335 = vmatpush3.msra.mxu1 %v4165_v1  ;;  %3302 = vmatpush3.msra.mxu0 %v4295_v35 }
 0x23f   :  { %3336 = vmatprep.subr.mxu1 %v5346_v53  ;;  %v674_v50 = vcombine.high %v672_v21, %v672_v21  ;;  %v688_v60 = vrot.slane %v672_v21, %v4439_v63  ;;  %v695_v61 = vrot.slane %v673_v23, %v4439_v63  ;;  %v703_v56 = vcombine.high %v681_v25, %v681_v25 }
 0x240   :  { %2572 = vst.sshfl [vmem:[#allocation8 + $0x9] sm:$0x1 pattern:$0x73625140] %v673_v23  ;;  %3303 = vmatprep.subr.mxu0 %v5346_v53  ;;  %3337 = vmatpush3.msra.mxu1 %v4167_v2  ;;  %v5351_v2 = vld [vmem:[#allocation15_spill] sm:$0xff] }
 0x241   :  { %2573 = vst.sshfl [vmem:[#allocation8 + $0x21] sm:$0x1 pattern:$0x73625140] %v672_v21  ;;  %3304 = vmatpush3.msra.mxu0 %v4300_v36  ;;  %v702_v1 = vrot.slane %v674_v50, %v4439_v63  ;;  %v704_v57 = vcombine.high %v688_v60, %v688_v60  ;;  %v705_v58 = vcombine.high %v695_v61, %v695_v61  ;;  %717 = vst [vmem:[#allocation8 + $0x11] sm:$0x1] %v703_v56 }
 0x242   :  { %2574 = vst.sshfl [vmem:[#allocation8 + $0x29] sm:$0x1 pattern:$0x73625140] %v674_v50  ;;  %3305 = vmatprep.subr.mxu0 %v5346_v53  ;;  %3338 = vmatprep.subr.mxu1 %v5346_v53  ;;  %v4691_v61 = vld [vmem:[#allocation7 + $0x168] sm:$0xff] }
 0x243   :  { %3306 = vmatpush3.msra.mxu0 %v4306_v37  ;;  %3339 = vmatpush3.msra.mxu1 %v4171_v3  ;;  %v706_v59 = vcombine.high %v702_v1, %v702_v1  ;;  %718 = vst [vmem:[#allocation8 + $0x19] sm:$0x1] %v705_v58  ;;  %721 = vst [vmem:[#allocation8 + $0x31] sm:$0x1] %v704_v57  ;;  %v5352_v3 = vld [vmem:[#allocation16_spill] sm:$0xff] }
 0x244   :  { %3307 = vmatprep.subr.mxu0 %v5346_v53  ;;  %3340 = vmatprep.subr.mxu1 %v5346_v53  ;;  %v4700_v58 = vld [vmem:[#allocation7 + $0x150] sm:$0xff] }
 0x245   :  { %3308 = vmatpush3.msra.mxu0 %v4313_v38  ;;  %3341 = vmatpush3.msra.mxu1 %v4180_v6  ;;  %722 = vst [vmem:[#allocation8 + $0x39] sm:$0x1] %v706_v59  ;;  %v5355_v6 = vld [vmem:[#allocation19_spill] sm:$0xff] }
 0x246   :  { %3309 = vmatprep.subr.mxu0 %v5346_v53  ;;  %3342 = vmatprep.subr.mxu1 %v5346_v53 }
 0x247   :  { %3310 = vmatpush3.msra.mxu0 %v4319_v39  ;;  %3343 = vmatpush3.msra.mxu1 %v4188_v8  ;;  %v5357_v8 = vld [vmem:[#allocation21_spill] sm:$0xff] }
 0x248   :  { %3311 = vmatprep.subr.mxu0 %v5346_v53  ;;  %3344 = vmatprep.subr.mxu1 %v5346_v53 }
 0x249   :  { %3312 = vmatpush3.msra.mxu0 %v4325_v40  ;;  %3345 = vmatpush3.msra.mxu1 %v4196_v10 }
 0x24a   :  { %3313 = vmatprep.subr.mxu0 %v5346_v53  ;;  %3346 = vmatprep.subr.mxu1 %v5346_v53 }
 0x24b   :  { %3314 = vmatpush3.msra.mxu0 %v4331_v41  ;;  %3347 = vmatpush3.msra.mxu1 %v4204_v12 }
 0x24c   :  { %3315 = vmatprep.subr.mxu0 %v5346_v53  ;;  %3348 = vmatprep.subr.mxu1 %v5346_v53 }
 0x24d   :  { %3316 = vmatpush3.msra.mxu0 %v4337_v42  ;;  %3349 = vmatpush3.msra.mxu1 %v4212_v14 }
 0x24e   :  { %3317 = vmatprep.subr.mxu0 %v5346_v53  ;;  %3350 = vmatprep.subr.mxu1 %v5346_v53 }
 0x24f   :  { %3318 = vmatpush3.msra.mxu0 %v4343_v43  ;;  %3351 = vmatpush3.msra.mxu1 %v4220_v16  ;;  %v725_v16 = vld [vmem:[#allocation2 + $0x38] sm:$0xff] }
 0x250   :  { %3319 = vmatprep.subr.mxu0 %v5346_v53  ;;  %3352 = vmatprep.subr.mxu1 %v5346_v53 }
 0x251   :  { %3320 = vmatpush3.msra.mxu0 %v4349_v44  ;;  %3353 = vmatpush3.msra.mxu1 %v4228_v18 }
 0x252   :  { %3321 = vmatprep.subr.mxu0 %v5346_v53  ;;  %3354 = vmatprep.subr.mxu1 %v5346_v53 }
 0x253   :  { %3322 = vmatpush3.msra.mxu0 %v4355_v45  ;;  %3355 = vmatpush3.msra.mxu1 %v4236_v20 }
 0x254   :  { %3323 = vmatprep.subr.mxu0 %v5346_v53  ;;  %3356 = vmatprep.subr.mxu1 %v5346_v53 }
 0x255   :  { %3324 = vmatpush3.msra.mxu0 %v4361_v46  ;;  %3357 = vmatpush3.msra.mxu1 %v4244_v22 }
 0x256   :  { %3325 = vmatprep.subr.mxu0 %v5346_v53  ;;  %3358 = vmatprep.subr.mxu1 %v5346_v53 }
 0x257   :  { %3326 = vmatpush3.msra.mxu0 %v4367_v47  ;;  %3359 = vmatpush3.msra.mxu1 %v4252_v24 }
 0x258   :  { %3327 = vmatprep.subr.mxu0 %v5346_v53  ;;  %3360 = vmatprep.subr.mxu1 %v5346_v53 }
 0x259   :  { %3328 = vmatpush3.msra.mxu0 %v4373_v48  ;;  %3361 = vmatpush3.msra.mxu1 %v4260_v26 }
 0x25a   :  { %3329 = vmatprep.subr.mxu0 %v5346_v53  ;;  %3362 = vmatprep.subr.mxu1 %v5346_v53 }
 0x25b   :  { %3330 = vmatpush3.msra.mxu0 %v4379_v49  ;;  %3363 = vmatpush3.msra.mxu1 %v4268_v28 }
 0x25c   :  { %3332 = vmatmul.mubr.f32.vlgmr.msra.gmra.mxu0 %v4559_v55  ;;  %3369 = vmatprep.subr.mxu0 %v5346_v53 }
 0x25d   :  { %3370 = vmatpush3.msra.mxu0 %v4173_v4  ;;  %3364 = vmatprep.subr.mxu1 %v5346_v53  ;;  %v5353_v4 = vld [vmem:[#allocation17_spill] sm:$0xff] }
 0x25e   :  { %3371 = vmatprep.subr.mxu0 %v5346_v53  ;;  %3365 = vmatpush3.msra.mxu1 %v4276_v30 }
 0x25f   :  { %3372 = vmatpush3.msra.mxu0 %v4177_v5  ;;  %3366 = vmatprep.mubr.msk.f32.mxu1 %vm4114_vm0, %v5346_v53  ;;  %v5354_v5 = vld [vmem:[#allocation18_spill] sm:$0xff] }
 0x260   :  { %3373 = vmatprep.subr.mxu0 %v5346_v53  ;;  %3401 = vmatprep.mubr.msk.f32.mxu0 %vm4114_vm0, %v5346_v53 }
 0x261   :  { %3374 = vmatpush3.msra.mxu0 %v4183_v7  ;;  %3404 = vmatprep.subr.mxu1 %v5346_v53  ;;  %v5356_v7 = vld [vmem:[#allocation20_spill] sm:$0xff] }
 0x262   :  { %3375 = vmatprep.subr.mxu0 %v5346_v53 }
 0x263   :  { %3376 = vmatpush3.msra.mxu0 %v4191_v9  ;;  %v724_v9 = vld [vmem:[#allocation2 + $0x30] sm:$0xff] }
 0x264   :  { %3377 = vmatprep.subr.mxu0 %v5346_v53 }
 0x265   :  { %3378 = vmatpush3.msra.mxu0 %v4199_v11 }
 0x266   :  { %3379 = vmatprep.subr.mxu0 %v5346_v53 }
 0x267   :  { %3380 = vmatpush3.msra.mxu0 %v4207_v13 }
 0x268   :  { %3381 = vmatprep.subr.mxu0 %v5346_v53 }
 0x269   :  { %3382 = vmatpush3.msra.mxu0 %v4215_v15 }
 0x26a   :  { %3383 = vmatprep.subr.mxu0 %v5346_v53 }
 0x26b   :  { %3384 = vmatpush3.msra.mxu0 %v4223_v17 }
 0x26c   :  { %3385 = vmatprep.subr.mxu0 %v5346_v53 }
 0x26d   :  { %3386 = vmatpush3.msra.mxu0 %v4231_v19 }
 0x26e   :  { %3387 = vmatprep.subr.mxu0 %v5346_v53 }
 0x26f   :  { %3388 = vmatpush3.msra.mxu0 %v5351_v2 }
 0x270   :  { %3389 = vmatprep.subr.mxu0 %v5346_v53 }
 0x271   :  { %3390 = vmatpush3.msra.mxu0 %v5352_v3  ;;  %v4707_v3 = vld [vmem:[#allocation7 + $0x138] sm:$0xff] }
 0x272   :  { %3391 = vmatprep.subr.mxu0 %v5346_v53 }
 0x273   :  { %3392 = vmatpush3.msra.mxu0 %v5353_v4  ;;  %v4713_v4 = vld [vmem:[#allocation7 + $0x120] sm:$0xff] }
 0x274   :  { %3393 = vmatprep.subr.mxu0 %v5346_v53 }
 0x275   :  { %3394 = vmatpush3.msra.mxu0 %v5354_v5  ;;  %v4784_v5 = vld [vmem:[#allocation7 + $0x170] sm:$0xff] }
 0x276   :  { %3395 = vmatprep.subr.mxu0 %v5346_v53 }
 0x277   :  { %3396 = vmatpush3.msra.mxu0 %v5355_v6  ;;  %v4800_v6 = vld [vmem:[#allocation7 + $0x140] sm:$0xff] }
 0x278   :  { %3397 = vmatprep.subr.mxu0 %v5346_v53 }
 0x279   :  { %3398 = vmatpush3.msra.mxu0 %v5356_v7  ;;  %v4805_v7 = vld [vmem:[#allocation7 + $0x128] sm:$0xff] }
 0x27a   :  { %3399 = vmatprep.subr.mxu0 %v5346_v53 }
 0x27b   :  { %3400 = vmatpush3.msra.mxu0 %v5357_v8  ;;  %v4809_v8 = vld [vmem:[#allocation7 + $0x110] sm:$0xff] }
 0x27c   :  { %3439 = vmatprep.subr.mxu0 %v5346_v53 }
 0x2fb   :  { %v793_v10 = vpop.f32.mrf.mxu0  ;;  %v870_v11 = vpop.f32.mrf.mxu1 }
 0x2fc   :  { %v797_v12 = vadd.f32 %v793_v10, %v724_v9  ;;  %v874_v17 = vadd.f32 %v870_v11, %v725_v16  ;;  %v4813_v9 = vld [vmem:[#allocation7 + $0xf8] sm:$0xff]  ;;  %v4817_v10 = vld [vmem:[#allocation7 + $0xe0] sm:$0xff]  ;;  %v4821_v11 = vld [vmem:[#allocation7 + $0xc8] sm:$0xff] }
 0x2fd   :  { %v3263_v13 = vpop.f32.mrf.mxu0  ;;  %v3298_v14 = vpop.f32.mrf.mxu1  ;;  %v4841_v16 = vld [vmem:[#allocation7 + $0x50] sm:$0xff] }
 0x2fe   :  { %v2575_v15 = vmul.f32 -1.442695, %v797_v12  ;;  %v2576_v18 = vmul.f32 -1.442695, %v874_v17  ;;  %v4825_v12 = vld [vmem:[#allocation7 + $0xb0] sm:$0xff]  ;;  %v4829_v13 = vld [vmem:[#allocation7 + $0x98] sm:$0xff] }
 0x2ff   :  { %5358 = vst [vmem:[#allocation15_spill] sm:$0xff] %v4829_v13  ;;  %v4833_v14 = vld [vmem:[#allocation7 + $0x80] sm:$0xff]  ;;  %5361 = vst [vmem:[#allocation18_spill] sm:$0xff] %v4841_v16  ;;  %v4845_v17 = vld [vmem:[#allocation7 + $0x38] sm:$0xff] }
 0x300   :  { %3891 = vpow2.f32 %v2575_v15  ;;  %5359 = vst [vmem:[#allocation16_spill] sm:$0xff] %v4833_v14  ;;  %v4837_v15 = vld [vmem:[#allocation7 + $0x68] sm:$0xff]  ;;  %5362 = vst [vmem:[#allocation19_spill] sm:$0xff] %v4845_v17 }
 0x301   :  { %3893 = vpow2.f32 %v2576_v18  ;;  %5360 = vst [vmem:[#allocation17_spill] sm:$0xff] %v4837_v15  ;;  %v4849_v18 = vld [vmem:[#allocation7 + $0x20] sm:$0xff] }
 0x302   :  { %5363 = vst [vmem:[#allocation20_spill] sm:$0xff] %v4849_v18 }
 0x30d   :  { %v3892_v19 = vpop.eup %3891 }
 0x30e   :  { %v801_v20 = vadd.f32 1.0, %v3892_v19  ;;  %v3894_v22 = vpop.eup %3893  ;;  %v4853_v19 = vld [vmem:[#allocation7 + $0x8] sm:$0xff] }
 0x30f   :  { %v878_v24 = vadd.f32 1.0, %v3894_v22  ;;  %5364 = vst [vmem:[#allocation21_spill] sm:$0xff] %v4853_v19 }
 0x310   :  { %3895 = vrcp.f32 %v801_v20  ;;  %v1025_v20 = vld [vmem:[#allocation2 + $0x48] sm:$0xff] }
 0x311   :  { %3897 = vrcp.f32 %v878_v24 }
 0x31c   :  { %v947_v26 = vpop.f32.mrf.mxu0 }
 0x31d   :  { %v948_v28 = vadd.f32 %v4435_v0, %v947_v26  ;;  %v3896_v30 = vpop.eup %3895 }
 0x31e   :  { %v3333_v31 = vpop.f32.mrf.mxu0  ;;  %v3898_v32 = vpop.eup %3897 }
 0x31f   :  { %v951_v27 = vmul.f32 %v3896_v30, %v948_v28  ;;  %v954_v34 = vsub.f32 1.0, %v3898_v32  ;;  %v956_v51 = vmul.f32 %v3898_v32, %v4559_v55  ;;  %v1026_v31 = vld [vmem:[#allocation2 + $0x50] sm:$0xff] }
 0x321   :  { %v952_v29 = vadd.f32 %v951_v27, %v726_v52 }
 0x323   :  { %3899 = vtanh.f32 %v952_v29 }
 0x330   :  { %v3900_v54 = vpop.eup %3899 }
 0x331   :  { %v955_v62 = vmul.f32 %v3900_v54, %v954_v34 }
 0x333   :  { %v4677_v21 = vadd.f32 %v956_v51, %v955_v62 }
 0x335   :  { %v959_v23 = vcombine.high %v4677_v21, %v4677_v21  ;;  %v966_v25 = vrot.slane %v4677_v21, %v4439_v63  ;;  %3367 = vmatmul.mubr.f32.vlgmr.msra.gmra.mxu1 %v4677_v21  ;;  %3402 = vmatmul.mubr.f32.vlgmr.msra.gmra.mxu0 %v4677_v21 }
 0x336   :  { %3405 = vmatpush3.msra.mxu1 %v4286_v33  ;;  %3436 = vmatprep.mubr.msk.f32.mxu1 %vm4114_vm0, %v5346_v53 }
 0x337   :  { %v973_v50 = vrot.slane %v959_v23, %v4439_v63  ;;  %v974_v55 = vcombine.high %v966_v25, %v966_v25  ;;  %v982_v60 = vrot.slane %v966_v25, %v4439_v63  ;;  %2577 = vst.sshfl [vmem:[#allocation8 + $0x2] sm:$0x1 pattern:$0x73625140] %v966_v25  ;;  %3406 = vmatprep.subr.mxu1 %v5346_v53 }
 0x338   :  { %3440 = vmatpush3.msra.mxu0 %v4691_v61  ;;  %3407 = vmatpush3.msra.mxu1 %v4295_v35 }
 0x339   :  { %3441 = vmatprep.subr.mxu0 %v5346_v53  ;;  %v975_v33 = vcombine.high %v973_v50, %v973_v50  ;;  %v989_v56 = vrot.slane %v973_v50, %v4439_v63  ;;  %v996_v1 = vrot.slane %v974_v55, %v4439_v63  ;;  %v1004_v57 = vcombine.high %v982_v60, %v982_v60 }
 0x33a   :  { %2578 = vst.sshfl [vmem:[#allocation8 + $0xa] sm:$0x1 pattern:$0x73625140] %v974_v55  ;;  %3408 = vmatprep.subr.mxu1 %v5346_v53  ;;  %3442 = vmatpush3.msra.mxu0 %v4700_v58 }
 0x33b   :  { %2579 = vst.sshfl [vmem:[#allocation8 + $0x22] sm:$0x1 pattern:$0x73625140] %v973_v50  ;;  %3409 = vmatpush3.msra.mxu1 %v4300_v36  ;;  %v1003_v35 = vrot.slane %v975_v33, %v4439_v63  ;;  %v1005_v59 = vcombine.high %v989_v56, %v989_v56  ;;  %v1006_v2 = vcombine.high %v996_v1, %v996_v1  ;;  %1018 = vst [vmem:[#allocation8 + $0x12] sm:$0x1] %v1004_v57 }
 0x33c   :  { %2580 = vst.sshfl [vmem:[#allocation8 + $0x2a] sm:$0x1 pattern:$0x73625140] %v975_v33  ;;  %3410 = vmatprep.subr.mxu1 %v5346_v53  ;;  %3443 = vmatprep.subr.mxu0 %v5346_v53  ;;  %v1027_v50 = vld [vmem:[#allocation2 + $0x58] sm:$0xff] }
 0x33d   :  { %3411 = vmatpush3.msra.mxu1 %v4306_v37  ;;  %3444 = vmatpush3.msra.mxu0 %v4707_v3  ;;  %v1007_v36 = vcombine.high %v1003_v35, %v1003_v35  ;;  %1019 = vst [vmem:[#allocation8 + $0x1a] sm:$0x1] %v1006_v2  ;;  %1022 = vst [vmem:[#allocation8 + $0x32] sm:$0x1] %v1005_v59  ;;  %v4719_v37 = vld [vmem:[#allocation7 + $0x108] sm:$0xff] }
 0x33e   :  { %3412 = vmatprep.subr.mxu1 %v5346_v53  ;;  %3445 = vmatprep.subr.mxu0 %v5346_v53 }
 0x33f   :  { %3413 = vmatpush3.msra.mxu1 %v4313_v38  ;;  %3446 = vmatpush3.msra.mxu0 %v4713_v4  ;;  %1023 = vst [vmem:[#allocation8 + $0x3a] sm:$0x1] %v1007_v36  ;;  %v4725_v38 = vld [vmem:[#allocation7 + $0xf0] sm:$0xff] }
 0x340   :  { %3414 = vmatprep.subr.mxu1 %v5346_v53  ;;  %3447 = vmatprep.subr.mxu0 %v5346_v53 }
 0x341   :  { %3415 = vmatpush3.msra.mxu1 %v4319_v39  ;;  %3448 = vmatpush3.msra.mxu0 %v4719_v37  ;;  %v4731_v39 = vld [vmem:[#allocation7 + $0xd8] sm:$0xff] }
 0x342   :  { %3416 = vmatprep.subr.mxu1 %v5346_v53  ;;  %3449 = vmatprep.subr.mxu0 %v5346_v53 }
 0x343   :  { %3417 = vmatpush3.msra.mxu1 %v4325_v40  ;;  %3450 = vmatpush3.msra.mxu0 %v4725_v38  ;;  %v4737_v40 = vld [vmem:[#allocation7 + $0xc0] sm:$0xff] }
 0x344   :  { %3418 = vmatprep.subr.mxu1 %v5346_v53  ;;  %3451 = vmatprep.subr.mxu0 %v5346_v53 }
 0x345   :  { %3419 = vmatpush3.msra.mxu1 %v4331_v41  ;;  %3452 = vmatpush3.msra.mxu0 %v4731_v39  ;;  %v4743_v41 = vld [vmem:[#allocation7 + $0xa8] sm:$0xff] }
 0x346   :  { %3420 = vmatprep.subr.mxu1 %v5346_v53  ;;  %3453 = vmatprep.subr.mxu0 %v5346_v53 }
 0x347   :  { %3421 = vmatpush3.msra.mxu1 %v4337_v42  ;;  %3454 = vmatpush3.msra.mxu0 %v4737_v40  ;;  %v4749_v42 = vld [vmem:[#allocation7 + $0x90] sm:$0xff] }
 0x348   :  { %3422 = vmatprep.subr.mxu1 %v5346_v53  ;;  %3455 = vmatprep.subr.mxu0 %v5346_v53 }
 0x349   :  { %3423 = vmatpush3.msra.mxu1 %v4343_v43  ;;  %3456 = vmatpush3.msra.mxu0 %v4743_v41  ;;  %v4755_v43 = vld [vmem:[#allocation7 + $0x78] sm:$0xff] }
 0x34a   :  { %3424 = vmatprep.subr.mxu1 %v5346_v53  ;;  %3457 = vmatprep.subr.mxu0 %v5346_v53 }
 0x34b   :  { %3425 = vmatpush3.msra.mxu1 %v4349_v44  ;;  %3458 = vmatpush3.msra.mxu0 %v4749_v42  ;;  %v4761_v44 = vld [vmem:[#allocation7 + $0x60] sm:$0xff] }
 0x34c   :  { %3426 = vmatprep.subr.mxu1 %v5346_v53  ;;  %3459 = vmatprep.subr.mxu0 %v5346_v53 }
 0x34d   :  { %3427 = vmatpush3.msra.mxu1 %v4355_v45  ;;  %3460 = vmatpush3.msra.mxu0 %v4755_v43  ;;  %v4767_v45 = vld [vmem:[#allocation7 + $0x48] sm:$0xff] }
 0x34e   :  { %3428 = vmatprep.subr.mxu1 %v5346_v53  ;;  %3461 = vmatprep.subr.mxu0 %v5346_v53 }
 0x34f   :  { %3429 = vmatpush3.msra.mxu1 %v4361_v46  ;;  %3462 = vmatpush3.msra.mxu0 %v4761_v44  ;;  %v4773_v46 = vld [vmem:[#allocation7 + $0x30] sm:$0xff] }
 0x350   :  { %3430 = vmatprep.subr.mxu1 %v5346_v53  ;;  %3463 = vmatprep.subr.mxu0 %v5346_v53 }
 0x351   :  { %3431 = vmatpush3.msra.mxu1 %v4367_v47  ;;  %3464 = vmatpush3.msra.mxu0 %v4767_v45  ;;  %v4779_v47 = vld [vmem:[#allocation7 + $0x18] sm:$0xff] }
 0x352   :  { %3432 = vmatprep.subr.mxu1 %v5346_v53  ;;  %3465 = vmatprep.subr.mxu0 %v5346_v53 }
 0x353   :  { %3433 = vmatpush3.msra.mxu1 %v4373_v48  ;;  %3466 = vmatpush3.msra.mxu0 %v4773_v46  ;;  %v4789_v48 = vld [vmem:[#allocation7] sm:$0xff] }
 0x354   :  { %3434 = vmatprep.subr.mxu1 %v5346_v53  ;;  %3467 = vmatprep.subr.mxu0 %v5346_v53 }
 0x355   :  { %3435 = vmatpush3.msra.mxu1 %v4379_v49  ;;  %3468 = vmatpush3.msra.mxu0 %v4779_v47  ;;  %v4792_v49 = vld [vmem:[#allocation7 + $0x158] sm:$0xff] }
 0x356   :  { %3437 = vmatmul.mubr.f32.vlgmr.msra.gmra.mxu1 %v4677_v21  ;;  %3474 = vmatprep.subr.mxu1 %v5346_v53 }
 0x357   :  { %3475 = vmatpush3.msra.mxu1 %v4784_v5  ;;  %3469 = vmatprep.subr.mxu0 %v5346_v53 }
 0x358   :  { %3476 = vmatprep.subr.mxu1 %v5346_v53  ;;  %3470 = vmatpush3.msra.mxu0 %v4789_v48 }
 0x359   :  { %3477 = vmatpush3.msra.mxu1 %v4792_v49  ;;  %3471 = vmatprep.mubr.msk.f32.mxu0 %vm4114_vm0, %v5346_v53 }
 0x35a   :  { %3478 = vmatprep.subr.mxu1 %v5346_v53  ;;  %3506 = vmatprep.mubr.msk.f32.mxu1 %vm4114_vm0, %v5346_v53 }
 0x35b   :  { %3479 = vmatpush3.msra.mxu1 %v4800_v6  ;;  %3509 = vmatprep.subr.mxu0 %v5346_v53 }
 0x35c   :  { %3480 = vmatprep.subr.mxu1 %v5346_v53 }
 0x35d   :  { %3481 = vmatpush3.msra.mxu1 %v4805_v7 }
 0x35e   :  { %3482 = vmatprep.subr.mxu1 %v5346_v53 }
 0x35f   :  { %3483 = vmatpush3.msra.mxu1 %v4809_v8 }
 0x360   :  { %3484 = vmatprep.subr.mxu1 %v5346_v53 }
 0x361   :  { %3485 = vmatpush3.msra.mxu1 %v4813_v9 }
 0x362   :  { %3486 = vmatprep.subr.mxu1 %v5346_v53 }
 0x363   :  { %3487 = vmatpush3.msra.mxu1 %v4817_v10 }
 0x364   :  { %3488 = vmatprep.subr.mxu1 %v5346_v53 }
 0x365   :  { %3489 = vmatpush3.msra.mxu1 %v4821_v11 }
 0x366   :  { %3490 = vmatprep.subr.mxu1 %v5346_v53 }
 0x367   :  { %3491 = vmatpush3.msra.mxu1 %v4825_v12 }
 0x368   :  { %3492 = vmatprep.subr.mxu1 %v5346_v53 }
 0x369   :  { %3493 = vmatpush3.msra.mxu1 %v4829_v13 }
 0x36a   :  { %3494 = vmatprep.subr.mxu1 %v5346_v53 }
 0x36b   :  { %3495 = vmatpush3.msra.mxu1 %v4833_v14 }
 0x36c   :  { %3496 = vmatprep.subr.mxu1 %v5346_v53 }
 0x36d   :  { %3497 = vmatpush3.msra.mxu1 %v4837_v15 }
 0x36e   :  { %3498 = vmatprep.subr.mxu1 %v5346_v53 }
 0x36f   :  { %3499 = vmatpush3.msra.mxu1 %v4841_v16 }
 0x370   :  { %3500 = vmatprep.subr.mxu1 %v5346_v53 }
 0x371   :  { %3501 = vmatpush3.msra.mxu1 %v4845_v17 }
 0x372   :  { %3502 = vmatprep.subr.mxu1 %v5346_v53 }
 0x373   :  { %3503 = vmatpush3.msra.mxu1 %v4849_v18 }
 0x374   :  { %3504 = vmatprep.subr.mxu1 %v5346_v53 }
 0x375   :  { %3505 = vmatpush3.msra.mxu1 %v4853_v19 }
 0x376   :  { %3544 = vmatprep.subr.mxu1 %v5346_v53 }
 0x3f5   :  { %v1094_v22 = vpop.f32.mrf.mxu1  ;;  %v1171_v24 = vpop.f32.mrf.mxu0 }
 0x3f6   :  { %v1098_v26 = vadd.f32 %v1094_v22, %v1025_v20  ;;  %v1175_v27 = vadd.f32 %v1171_v24, %v1026_v31  ;;  %v4867_v20 = vld [vmem:[#allocation7 + $0x178] sm:$0xff] }
 0x3f7   :  { %v3368_v28 = vpop.f32.mrf.mxu1  ;;  %v3403_v30 = vpop.f32.mrf.mxu0 }
 0x3f8   :  { %v2581_v52 = vmul.f32 -1.442695, %v1098_v26  ;;  %v2582_v29 = vmul.f32 -1.442695, %v1175_v27  ;;  %v4876_v26 = vld [vmem:[#allocation7 + $0x160] sm:$0xff]  ;;  %v4883_v27 = vld [vmem:[#allocation7 + $0x148] sm:$0xff] }
 0x3fa   :  { %3901 = vpow2.f32 %v2581_v52 }
 0x3fb   :  { %3903 = vpow2.f32 %v2582_v29 }
 0x407   :  { %v3902_v32 = vpop.eup %3901 }
 0x408   :  { %v1102_v34 = vadd.f32 1.0, %v3902_v32  ;;  %v3904_v54 = vpop.eup %3903 }
 0x409   :  { %v1179_v62 = vadd.f32 1.0, %v3904_v54  ;;  %v4890_v54 = vld [vmem:[#allocation7 + $0x130] sm:$0xff] }
 0x40a   :  { %3905 = vrcp.f32 %v1102_v34 }
 0x40b   :  { %3907 = vrcp.f32 %v1179_v62 }
 0x416   :  { %v1248_v51 = vpop.f32.mrf.mxu1 }
 0x417   :  { %v1249_v23 = vadd.f32 %v4435_v0, %v1248_v51  ;;  %v3906_v25 = vpop.eup %3905  ;;  %v4896_v51 = vld [vmem:[#allocation7 + $0x118] sm:$0xff] }
 0x418   :  { %v3438_v55 = vpop.f32.mrf.mxu1  ;;  %v3908_v56 = vpop.eup %3907 }
 0x419   :  { %v1252_v60 = vmul.f32 %v3906_v25, %v1249_v23  ;;  %v1255_v1 = vsub.f32 1.0, %v3908_v56  ;;  %v1257_v59 = vmul.f32 %v3908_v56, %v4677_v21  ;;  %v4902_v23 = vld [vmem:[#allocation7 + $0x100] sm:$0xff]  ;;  %v4908_v25 = vld [vmem:[#allocation7 + $0xe8] sm:$0xff]  ;;  %v4920_v55 = vld [vmem:[#allocation7 + $0xb8] sm:$0xff] }
 0x41a   :  { %v4938_v56 = vld [vmem:[#allocation7 + $0x70] sm:$0xff] }
 0x41b   :  { %v1253_v33 = vadd.f32 %v1252_v60, %v1027_v50  ;;  %v4914_v50 = vld [vmem:[#allocation7 + $0xd0] sm:$0xff]  ;;  %v4926_v60 = vld [vmem:[#allocation7 + $0xa0] sm:$0xff] }
 0x41d   :  { %3909 = vtanh.f32 %v1253_v33  ;;  %v4932_v33 = vld [vmem:[#allocation7 + $0x88] sm:$0xff] }
 0x42a   :  { %v3910_v57 = vpop.eup %3909 }
 0x42b   :  { %v1256_v35 = vmul.f32 %v3910_v57, %v1255_v1  ;;  %v4944_v1 = vld [vmem:[#allocation7 + $0x58] sm:$0xff]  ;;  %v4950_v57 = vld [vmem:[#allocation7 + $0x40] sm:$0xff] }
 0x42d   :  { %v4859_v2 = vadd.f32 %v1257_v59, %v1256_v35  ;;  %v4956_v35 = vld [vmem:[#allocation7 + $0x28] sm:$0xff]  ;;  %v4962_v59 = vld [vmem:[#allocation7 + $0x10] sm:$0xff] }
 0x42f   :  { %v1260_v36 = vcombine.high %v4859_v2, %v4859_v2  ;;  %v1267_v0 = vrot.slane %v4859_v2, %v4439_v63  ;;  %3472 = vmatmul.mubr.f32.vlgmr.msra.gmra.mxu0 %v4859_v2  ;;  %3507 = vmatmul.mubr.f32.vlgmr.msra.gmra.mxu1 %v4859_v2 }
 0x430   :  { %3510 = vmatpush3.msra.mxu0 %v4867_v20  ;;  %3541 = vmatprep.mubr.msk.f32.mxu0 %vm4114_vm0, %v5346_v53 }
 0x431   :  { %v1274_v21 = vrot.slane %v1260_v36, %v4439_v63  ;;  %v1275_v22 = vcombine.high %v1267_v0, %v1267_v0  ;;  %v1283_v24 = vrot.slane %v1267_v0, %v4439_v63  ;;  %2583 = vst.sshfl [vmem:[#allocation8 + $0x3] sm:$0x1 pattern:$0x73625140] %v1267_v0  ;;  %3511 = vmatprep.subr.mxu0 %v5346_v53  ;;  %v1326_v36 = vld [vmem:[#allocation2 + $0x60] sm:$0xff] }
 0x432   :  { %3545 = vmatpush3.msra.mxu1 %v4691_v61  ;;  %3512 = vmatpush3.msra.mxu0 %v4876_v26 }
 0x433   :  { %3546 = vmatprep.subr.mxu1 %v5346_v53  ;;  %v1276_v28 = vcombine.high %v1274_v21, %v1274_v21  ;;  %v1290_v30 = vrot.slane %v1274_v21, %v4439_v63  ;;  %v1297_v52 = vrot.slane %v1275_v22, %v4439_v63  ;;  %v1305_v31 = vcombine.high %v1283_v24, %v1283_v24 }
 0x434   :  { %2584 = vst.sshfl [vmem:[#allocation8 + $0xb] sm:$0x1 pattern:$0x73625140] %v1275_v22  ;;  %3513 = vmatprep.subr.mxu0 %v5346_v53  ;;  %3547 = vmatpush3.msra.mxu1 %v4700_v58 }
 0x435   :  { %2585 = vst.sshfl [vmem:[#allocation8 + $0x23] sm:$0x1 pattern:$0x73625140] %v1274_v21  ;;  %3514 = vmatpush3.msra.mxu0 %v4883_v27  ;;  %v1304_v29 = vrot.slane %v1276_v28, %v4439_v63  ;;  %v1306_v32 = vcombine.high %v1290_v30, %v1290_v30  ;;  %v1307_v34 = vcombine.high %v1297_v52, %v1297_v52  ;;  %1319 = vst [vmem:[#allocation8 + $0x13] sm:$0x1] %v1305_v31 }
 0x436   :  { %2586 = vst.sshfl [vmem:[#allocation8 + $0x2b] sm:$0x1 pattern:$0x73625140] %v1276_v28  ;;  %3515 = vmatprep.subr.mxu0 %v5346_v53  ;;  %3548 = vmatprep.subr.mxu1 %v5346_v53  ;;  %v1327_v52 = vld [vmem:[#allocation2 + $0x68] sm:$0xff] }
 0x437   :  { %3516 = vmatpush3.msra.mxu0 %v4890_v54  ;;  %3549 = vmatpush3.msra.mxu1 %v4707_v3  ;;  %v1308_v62 = vcombine.high %v1304_v29, %v1304_v29  ;;  %1320 = vst [vmem:[#allocation8 + $0x1b] sm:$0x1] %v1307_v34  ;;  %1323 = vst [vmem:[#allocation8 + $0x33] sm:$0x1] %v1306_v32 }
 0x438   :  { %3517 = vmatprep.subr.mxu0 %v5346_v53  ;;  %3550 = vmatprep.subr.mxu1 %v5346_v53 }
 0x439   :  { %3518 = vmatpush3.msra.mxu0 %v4896_v51  ;;  %3551 = vmatpush3.msra.mxu1 %v4713_v4  ;;  %1324 = vst [vmem:[#allocation8 + $0x3b] sm:$0x1] %v1308_v62 }
 0x43a   :  { %3519 = vmatprep.subr.mxu0 %v5346_v53  ;;  %3552 = vmatprep.subr.mxu1 %v5346_v53 }
 0x43b   :  { %3520 = vmatpush3.msra.mxu0 %v4902_v23  ;;  %3553 = vmatpush3.msra.mxu1 %v4719_v37 }
 0x43c   :  { %3521 = vmatprep.subr.mxu0 %v5346_v53  ;;  %3554 = vmatprep.subr.mxu1 %v5346_v53 }
 0x43d   :  { %3522 = vmatpush3.msra.mxu0 %v4908_v25  ;;  %3555 = vmatpush3.msra.mxu1 %v4725_v38 }
 0x43e   :  { %3523 = vmatprep.subr.mxu0 %v5346_v53  ;;  %3556 = vmatprep.subr.mxu1 %v5346_v53 }
 0x43f   :  { %3524 = vmatpush3.msra.mxu0 %v4914_v50  ;;  %3557 = vmatpush3.msra.mxu1 %v4731_v39 }
 0x440   :  { %3525 = vmatprep.subr.mxu0 %v5346_v53  ;;  %3558 = vmatprep.subr.mxu1 %v5346_v53 }
 0x441   :  { %3526 = vmatpush3.msra.mxu0 %v4920_v55  ;;  %3559 = vmatpush3.msra.mxu1 %v4737_v40 }
 0x442   :  { %3527 = vmatprep.subr.mxu0 %v5346_v53  ;;  %3560 = vmatprep.subr.mxu1 %v5346_v53 }
 0x443   :  { %3528 = vmatpush3.msra.mxu0 %v4926_v60  ;;  %3561 = vmatpush3.msra.mxu1 %v4743_v41 }
 0x444   :  { %3529 = vmatprep.subr.mxu0 %v5346_v53  ;;  %3562 = vmatprep.subr.mxu1 %v5346_v53 }
 0x445   :  { %3530 = vmatpush3.msra.mxu0 %v4932_v33  ;;  %3563 = vmatpush3.msra.mxu1 %v4749_v42 }
 0x446   :  { %3531 = vmatprep.subr.mxu0 %v5346_v53  ;;  %3564 = vmatprep.subr.mxu1 %v5346_v53 }
 0x447   :  { %3532 = vmatpush3.msra.mxu0 %v4938_v56  ;;  %3565 = vmatpush3.msra.mxu1 %v4755_v43 }
 0x448   :  { %3533 = vmatprep.subr.mxu0 %v5346_v53  ;;  %3566 = vmatprep.subr.mxu1 %v5346_v53 }
 0x449   :  { %3534 = vmatpush3.msra.mxu0 %v4944_v1  ;;  %3567 = vmatpush3.msra.mxu1 %v4761_v44 }
 0x44a   :  { %3535 = vmatprep.subr.mxu0 %v5346_v53  ;;  %3568 = vmatprep.subr.mxu1 %v5346_v53 }
 0x44b   :  { %3536 = vmatpush3.msra.mxu0 %v4950_v57  ;;  %3569 = vmatpush3.msra.mxu1 %v4767_v45 }
 0x44c   :  { %3537 = vmatprep.subr.mxu0 %v5346_v53  ;;  %3570 = vmatprep.subr.mxu1 %v5346_v53 }
 0x44d   :  { %3538 = vmatpush3.msra.mxu0 %v4956_v35  ;;  %3571 = vmatpush3.msra.mxu1 %v4773_v46 }
 0x44e   :  { %3539 = vmatprep.subr.mxu0 %v5346_v53  ;;  %3572 = vmatprep.subr.mxu1 %v5346_v53 }
 0x44f   :  { %3540 = vmatpush3.msra.mxu0 %v4962_v59  ;;  %3573 = vmatpush3.msra.mxu1 %v4779_v47 }
 0x450   :  { %3542 = vmatmul.mubr.f32.vlgmr.msra.gmra.mxu0 %v4859_v2  ;;  %3579 = vmatprep.subr.mxu0 %v5346_v53 }
 0x451   :  { %3580 = vmatpush3.msra.mxu0 %v4784_v5  ;;  %3574 = vmatprep.subr.mxu1 %v5346_v53 }
 0x452   :  { %3581 = vmatprep.subr.mxu0 %v5346_v53  ;;  %3575 = vmatpush3.msra.mxu1 %v4789_v48 }
 0x453   :  { %3582 = vmatpush3.msra.mxu0 %v4792_v49  ;;  %3576 = vmatprep.mubr.msk.f32.mxu1 %vm4114_vm0, %v5346_v53 }
 0x454   :  { %3583 = vmatprep.subr.mxu0 %v5346_v53  ;;  %3611 = vmatprep.mubr.msk.f32.mxu0 %vm4114_vm0, %v5346_v53 }
 0x455   :  { %3584 = vmatpush3.msra.mxu0 %v4800_v6  ;;  %3614 = vmatprep.subr.mxu1 %v5346_v53 }
 0x456   :  { %3585 = vmatprep.subr.mxu0 %v5346_v53 }
 0x457   :  { %3586 = vmatpush3.msra.mxu0 %v4805_v7 }
 0x458   :  { %3587 = vmatprep.subr.mxu0 %v5346_v53 }
 0x459   :  { %3588 = vmatpush3.msra.mxu0 %v4809_v8 }
 0x45a   :  { %3589 = vmatprep.subr.mxu0 %v5346_v53 }
 0x45b   :  { %3590 = vmatpush3.msra.mxu0 %v4813_v9 }
 0x45c   :  { %3591 = vmatprep.subr.mxu0 %v5346_v53 }
 0x45d   :  { %3592 = vmatpush3.msra.mxu0 %v4817_v10 }
 0x45e   :  { %3593 = vmatprep.subr.mxu0 %v5346_v53 }
 0x45f   :  { %3594 = vmatpush3.msra.mxu0 %v4821_v11 }
 0x460   :  { %3595 = vmatprep.subr.mxu0 %v5346_v53 }
 0x461   :  { %3596 = vmatpush3.msra.mxu0 %v4825_v12 }
 0x462   :  { %3597 = vmatprep.subr.mxu0 %v5346_v53 }
 0x463   :  { %3598 = vmatpush3.msra.mxu0 %v4829_v13 }
 0x464   :  { %3599 = vmatprep.subr.mxu0 %v5346_v53 }
 0x465   :  { %3600 = vmatpush3.msra.mxu0 %v4833_v14 }
 0x466   :  { %3601 = vmatprep.subr.mxu0 %v5346_v53 }
 0x467   :  { %3602 = vmatpush3.msra.mxu0 %v4837_v15 }
 0x468   :  { %3603 = vmatprep.subr.mxu0 %v5346_v53 }
 0x469   :  { %3604 = vmatpush3.msra.mxu0 %v4841_v16 }
 0x46a   :  { %3605 = vmatprep.subr.mxu0 %v5346_v53 }
 0x46b   :  { %3606 = vmatpush3.msra.mxu0 %v4845_v17  ;;  %v5010_v17 = vld [vmem:[%s5313_s3] ss:$0 sm:$0xff]  ;;  %s4116_s3 = smov [#allocation9]  }
 0x46c   :  { %3607 = vmatprep.subr.mxu0 %v5346_v53  ;;  %s2548_s11 = sshll.u32 %s4116_s3, 4  ;;  %s2549_s11 = int_to_ptr.vmem [resolvable:$true] %s2548_s11 }
 0x46d   :  { %3608 = vmatpush3.msra.mxu0 %v4849_v18  ;;  %s4060_s12 = scalar_lea.vmem %s2549_s11, 128  ;;  %p4065_p2 = scmp.lt.s32.totalorder %s2549_s11, %s2549_s11 }
 0x46e   :  { %3609 = vmatprep.subr.mxu0 %v5346_v53  ;;  %p4061_p1 = scmp.ne.s32.totalorder %s2549_s11, %s4060_s12  ;;  %p4066_p3 = scmp.lt.s32.totalorder %s4060_s12, %s4060_s12 }
 0x46f   :  { %3610 = vmatpush3.msra.mxu0 %v4853_v19 }
 0x470   :  { %3649 = vmatprep.subr.mxu0 %v5346_v53  ;;  %p4067_p4 = por %p4066_p3, %p4065_p2 }
 0x472   :  { %p4068_p5 = pnand %p4067_p4, %p4061_p1 }
 0x4ef   :  { %v1395_v0 = vpop.f32.mrf.mxu0  ;;  %v1472_v21 = vpop.f32.mrf.mxu1 }
 0x4f0   :  { %v1399_v22 = vadd.f32 %v1395_v0, %v1326_v36  ;;  %v1476_v31 = vadd.f32 %v1472_v21, %v1327_v52 }
 0x4f1   :  { %v3473_v24 = vpop.f32.mrf.mxu0  ;;  %v3508_v28 = vpop.f32.mrf.mxu1 }
 0x4f2   :  { %v2587_v30 = vmul.f32 -1.442695, %v1399_v22  ;;  %v2588_v29 = vmul.f32 -1.442695, %v1476_v31  ;;  %v1328_v22 = vld [vmem:[#allocation2 + $0x70] sm:$0xff] }
 0x4f4   :  { %3911 = vpow2.f32 %v2587_v30 }
 0x4f5   :  { %3913 = vpow2.f32 %v2588_v29 }
 0x501   :  { %v3912_v32 = vpop.eup %3911 }
 0x502   :  { %v1403_v34 = vadd.f32 1.0, %v3912_v32  ;;  %v3914_v62 = vpop.eup %3913 }
 0x503   :  { %v1480_v18 = vadd.f32 1.0, %v3914_v62 }
 0x504   :  { %3915 = vrcp.f32 %v1403_v34 }
 0x505   :  { %3917 = vrcp.f32 %v1480_v18 }
 0x510   :  { %v1549_v19 = vpop.f32.mrf.mxu0 }
 0x511   :  { %v1550_v36 = vadd.f32 %v5010_v17, %v1549_v19  ;;  %v3916_v0 = vpop.eup %3915 }
 0x512   :  { %v3543_v24 = vpop.f32.mrf.mxu0  ;;  %v3918_v30 = vpop.eup %3917 }
 0x513   :  { %v1553_v21 = vmul.f32 %v3916_v0, %v1550_v36  ;;  %v1556_v52 = vsub.f32 1.0, %v3918_v30  ;;  %v1558_v32 = vmul.f32 %v3918_v30, %v4859_v2 }
 0x515   :  { %v1554_v28 = vadd.f32 %v1553_v21, %v1328_v22 }
 0x517   :  { %3919 = vtanh.f32 %v1554_v28 }
 0x524   :  { %v3920_v31 = vpop.eup %3919 }
 0x525   :  { %v1557_v29 = vmul.f32 %v3920_v31, %v1556_v52 }
 0x527   :  { %v5014_v34 = vadd.f32 %v1558_v32, %v1557_v29  ;;  %v5365_v29 = vld [vmem:[#allocation19_spill] sm:$0xff]  ;;  %v5366_v32 = vld [vmem:[#allocation20_spill] sm:$0xff] }
 0x529   :  { %v1561_v62 = vcombine.high %v5014_v34, %v5014_v34  ;;  %v1568_v19 = vrot.slane %v5014_v34, %v4439_v63  ;;  %3577 = vmatmul.mubr.f32.vlgmr.msra.gmra.mxu1 %v5014_v34  ;;  %3612 = vmatmul.mubr.f32.vlgmr.msra.gmra.mxu0 %v5014_v34 }
 0x52a   :  { %3615 = vmatpush3.msra.mxu1 %v4867_v20  ;;  %3646 = vmatprep.mubr.msk.f32.mxu1 %vm4114_vm0, %v5346_v53 }
 0x52b   :  { %v1575_v18 = vrot.slane %v1561_v62, %v4439_v63  ;;  %v1576_v2 = vcombine.high %v1568_v19, %v1568_v19  ;;  %v1584_v36 = vrot.slane %v1568_v19, %v4439_v63  ;;  %2589 = vst.sshfl [vmem:[#allocation8 + $0x4] sm:$0x1 pattern:$0x73625140] %v1568_v19  ;;  %3616 = vmatprep.subr.mxu1 %v5346_v53  ;;  %v5367_v62 = vld [vmem:[#allocation21_spill] sm:$0xff]  ;;  %v1627_v19 = vld [vmem:[#allocation2 + $0x78] sm:$0xff] }
 0x52c   :  { %3650 = vmatpush3.msra.mxu0 %v4691_v61  ;;  %3617 = vmatpush3.msra.mxu1 %v4876_v26 }
 0x52d   :  { %3651 = vmatprep.subr.mxu0 %v5346_v53  ;;  %v1577_v0 = vcombine.high %v1575_v18, %v1575_v18  ;;  %v1591_v22 = vrot.slane %v1575_v18, %v4439_v63  ;;  %v1598_v24 = vrot.slane %v1576_v2, %v4439_v63  ;;  %v1606_v21 = vcombine.high %v1584_v36, %v1584_v36 }
 0x52e   :  { %2590 = vst.sshfl [vmem:[#allocation8 + $0xc] sm:$0x1 pattern:$0x73625140] %v1576_v2  ;;  %3618 = vmatprep.subr.mxu1 %v5346_v53  ;;  %3652 = vmatpush3.msra.mxu0 %v4700_v58 }
 0x52f   :  { %2591 = vst.sshfl [vmem:[#allocation8 + $0x24] sm:$0x1 pattern:$0x73625140] %v1575_v18  ;;  %3619 = vmatpush3.msra.mxu1 %v4883_v27  ;;  %v1605_v28 = vrot.slane %v1577_v0, %v4439_v63  ;;  %v1607_v30 = vcombine.high %v1591_v22, %v1591_v22  ;;  %v1608_v52 = vcombine.high %v1598_v24, %v1598_v24  ;;  %1620 = vst [vmem:[#allocation8 + $0x14] sm:$0x1] %v1606_v21 }
 0x530   :  { %2592 = vst.sshfl [vmem:[#allocation8 + $0x2c] sm:$0x1 pattern:$0x73625140] %v1577_v0  ;;  %3620 = vmatprep.subr.mxu1 %v5346_v53  ;;  %3653 = vmatprep.subr.mxu0 %v5346_v53  ;;  %v1628_v21 = vld [vmem:[#allocation2 + $0x80] sm:$0xff] }
 0x531   :  { %3621 = vmatpush3.msra.mxu1 %v4890_v54  ;;  %3654 = vmatpush3.msra.mxu0 %v4707_v3  ;;  %v1609_v31 = vcombine.high %v1605_v28, %v1605_v28  ;;  %1621 = vst [vmem:[#allocation8 + $0x1c] sm:$0x1] %v1608_v52  ;;  %1624 = vst [vmem:[#allocation8 + $0x34] sm:$0x1] %v1607_v30 }
 0x532   :  { %3622 = vmatprep.subr.mxu1 %v5346_v53  ;;  %3655 = vmatprep.subr.mxu0 %v5346_v53 }
 0x533   :  { %3623 = vmatpush3.msra.mxu1 %v4896_v51  ;;  %3656 = vmatpush3.msra.mxu0 %v4713_v4  ;;  %1625 = vst [vmem:[#allocation8 + $0x3c] sm:$0x1] %v1609_v31 }
 0x534   :  { %3624 = vmatprep.subr.mxu1 %v5346_v53  ;;  %3657 = vmatprep.subr.mxu0 %v5346_v53 }
 0x535   :  { %3625 = vmatpush3.msra.mxu1 %v4902_v23  ;;  %3658 = vmatpush3.msra.mxu0 %v4719_v37 }
 0x536   :  { %3626 = vmatprep.subr.mxu1 %v5346_v53  ;;  %3659 = vmatprep.subr.mxu0 %v5346_v53 }
 0x537   :  { %3627 = vmatpush3.msra.mxu1 %v4908_v25  ;;  %3660 = vmatpush3.msra.mxu0 %v4725_v38 }
 0x538   :  { %3628 = vmatprep.subr.mxu1 %v5346_v53  ;;  %3661 = vmatprep.subr.mxu0 %v5346_v53 }
 0x539   :  { %3629 = vmatpush3.msra.mxu1 %v4914_v50  ;;  %3662 = vmatpush3.msra.mxu0 %v4731_v39 }
 0x53a   :  { %3630 = vmatprep.subr.mxu1 %v5346_v53  ;;  %3663 = vmatprep.subr.mxu0 %v5346_v53 }
 0x53b   :  { %3631 = vmatpush3.msra.mxu1 %v4920_v55  ;;  %3664 = vmatpush3.msra.mxu0 %v4737_v40 }
 0x53c   :  { %3632 = vmatprep.subr.mxu1 %v5346_v53  ;;  %3665 = vmatprep.subr.mxu0 %v5346_v53 }
 0x53d   :  { %3633 = vmatpush3.msra.mxu1 %v4926_v60  ;;  %3666 = vmatpush3.msra.mxu0 %v4743_v41 }
 0x53e   :  { %3634 = vmatprep.subr.mxu1 %v5346_v53  ;;  %3667 = vmatprep.subr.mxu0 %v5346_v53 }
 0x53f   :  { %3635 = vmatpush3.msra.mxu1 %v4932_v33  ;;  %3668 = vmatpush3.msra.mxu0 %v4749_v42 }
 0x540   :  { %3636 = vmatprep.subr.mxu1 %v5346_v53  ;;  %3669 = vmatprep.subr.mxu0 %v5346_v53 }
 0x541   :  { %3637 = vmatpush3.msra.mxu1 %v4938_v56  ;;  %3670 = vmatpush3.msra.mxu0 %v4755_v43 }
 0x542   :  { %3638 = vmatprep.subr.mxu1 %v5346_v53  ;;  %3671 = vmatprep.subr.mxu0 %v5346_v53 }
 0x543   :  { %3639 = vmatpush3.msra.mxu1 %v4944_v1  ;;  %3672 = vmatpush3.msra.mxu0 %v4761_v44 }
 0x544   :  { %3640 = vmatprep.subr.mxu1 %v5346_v53  ;;  %3673 = vmatprep.subr.mxu0 %v5346_v53 }
 0x545   :  { %3641 = vmatpush3.msra.mxu1 %v4950_v57  ;;  %3674 = vmatpush3.msra.mxu0 %v4767_v45 }
 0x546   :  { %3642 = vmatprep.subr.mxu1 %v5346_v53  ;;  %3675 = vmatprep.subr.mxu0 %v5346_v53 }
 0x547   :  { %3643 = vmatpush3.msra.mxu1 %v4956_v35  ;;  %3676 = vmatpush3.msra.mxu0 %v4773_v46 }
 0x548   :  { %3644 = vmatprep.subr.mxu1 %v5346_v53  ;;  %3677 = vmatprep.subr.mxu0 %v5346_v53 }
 0x549   :  { %3645 = vmatpush3.msra.mxu1 %v4962_v59  ;;  %3678 = vmatpush3.msra.mxu0 %v4779_v47 }
 0x54a   :  { %3647 = vmatmul.mubr.f32.vlgmr.msra.gmra.mxu1 %v5014_v34  ;;  %3684 = vmatprep.subr.mxu1 %v5346_v53 }
 0x54b   :  { %3685 = vmatpush3.msra.mxu1 %v4784_v5  ;;  %3679 = vmatprep.subr.mxu0 %v5346_v53 }
 0x54c   :  { %3686 = vmatprep.subr.mxu1 %v5346_v53  ;;  %3680 = vmatpush3.msra.mxu0 %v4789_v48 }
 0x54d   :  { %3687 = vmatpush3.msra.mxu1 %v4792_v49  ;;  %3681 = vmatprep.mubr.msk.f32.mxu0 %vm4114_vm0, %v5346_v53 }
 0x54e   :  { %3688 = vmatprep.subr.mxu1 %v5346_v53  ;;  %3716 = vmatprep.mubr.msk.f32.mxu1 %vm4114_vm0, %v5346_v53 }
 0x54f   :  { %3689 = vmatpush3.msra.mxu1 %v4800_v6  ;;  %3719 = vmatprep.subr.mxu0 %v5346_v53 }
 0x550   :  { %3690 = vmatprep.subr.mxu1 %v5346_v53 }
 0x551   :  { %3691 = vmatpush3.msra.mxu1 %v4805_v7 }
 0x552   :  { %3692 = vmatprep.subr.mxu1 %v5346_v53 }
 0x553   :  { %3693 = vmatpush3.msra.mxu1 %v4809_v8 }
 0x554   :  { %3694 = vmatprep.subr.mxu1 %v5346_v53 }
 0x555   :  { %3695 = vmatpush3.msra.mxu1 %v4813_v9 }
 0x556   :  { %3696 = vmatprep.subr.mxu1 %v5346_v53 }
 0x557   :  { %3697 = vmatpush3.msra.mxu1 %v4817_v10 }
 0x558   :  { %3698 = vmatprep.subr.mxu1 %v5346_v53 }
 0x559   :  { %3699 = vmatpush3.msra.mxu1 %v4821_v11 }
 0x55a   :  { %3700 = vmatprep.subr.mxu1 %v5346_v53 }
 0x55b   :  { %3701 = vmatpush3.msra.mxu1 %v4825_v12 }
 0x55c   :  { %3702 = vmatprep.subr.mxu1 %v5346_v53 }
 0x55d   :  { %3703 = vmatpush3.msra.mxu1 %v4829_v13 }
 0x55e   :  { %3704 = vmatprep.subr.mxu1 %v5346_v53 }
 0x55f   :  { %3705 = vmatpush3.msra.mxu1 %v4833_v14  ;;  %v1629_v14 = vld [vmem:[#allocation2 + $0x88] sm:$0xff] }
 0x560   :  { %3706 = vmatprep.subr.mxu1 %v5346_v53 }
 0x561   :  { %3707 = vmatpush3.msra.mxu1 %v4837_v15 }
 0x562   :  { %3708 = vmatprep.subr.mxu1 %v5346_v53 }
 0x563   :  { %3709 = vmatpush3.msra.mxu1 %v4841_v16 }
 0x564   :  { %3710 = vmatprep.subr.mxu1 %v5346_v53 }
 0x565   :  { %3711 = vmatpush3.msra.mxu1 %v5365_v29 }
 0x566   :  { %3712 = vmatprep.subr.mxu1 %v5346_v53 }
 0x567   :  { %3713 = vmatpush3.msra.mxu1 %v5366_v32 }
 0x568   :  { %3714 = vmatprep.subr.mxu1 %v5346_v53 }
 0x569   :  { %3715 = vmatpush3.msra.mxu1 %v5367_v62 }
 0x56a   :  { %3754 = vmatprep.subr.mxu1 %v5346_v53 }
 0x5e9   :  { %v1696_v18 = vpop.f32.mrf.mxu1  ;;  %v1773_v2 = vpop.f32.mrf.mxu0 }
 0x5ea   :  { %v1700_v36 = vadd.f32 %v1696_v18, %v1627_v19  ;;  %v1777_v28 = vadd.f32 %v1773_v2, %v1628_v21 }
 0x5eb   :  { %v3578_v0 = vpop.f32.mrf.mxu1  ;;  %v3613_v22 = vpop.f32.mrf.mxu0 }
 0x5ec   :  { %v2593_v24 = vmul.f32 -1.442695, %v1700_v36  ;;  %v2594_v30 = vmul.f32 -1.442695, %v1777_v28 }
 0x5ee   :  { %3921 = vpow2.f32 %v2593_v24 }
 0x5ef   :  { %3923 = vpow2.f32 %v2594_v30 }
 0x5fb   :  { %v3922_v52 = vpop.eup %3921 }
 0x5fc   :  { %v1704_v31 = vadd.f32 1.0, %v3922_v52  ;;  %v3924_v32 = vpop.eup %3923 }
 0x5fd   :  { %v1781_v29 = vadd.f32 1.0, %v3924_v32 }
 0x5fe   :  { %3925 = vrcp.f32 %v1704_v31 }
 0x5ff   :  { %3927 = vrcp.f32 %v1781_v29 }
 0x60a   :  { %v1850_v62 = vpop.f32.mrf.mxu1 }
 0x60b   :  { %v1851_v16 = vadd.f32 %v5010_v17, %v1850_v62  ;;  %v3926_v15 = vpop.eup %3925 }
 0x60c   :  { %v3648_v13 = vpop.f32.mrf.mxu1  ;;  %v3928_v36 = vpop.eup %3927 }
 0x60d   :  { %v1854_v19 = vmul.f32 %v3926_v15, %v1851_v16  ;;  %v1857_v0 = vsub.f32 1.0, %v3928_v36  ;;  %v1859_v24 = vmul.f32 %v3928_v36, %v5014_v34 }
 0x60f   :  { %v1855_v18 = vadd.f32 %v1854_v19, %v1629_v14  ;;  %v1930_v19 = vld [vmem:[#allocation2 + $0xa0] sm:$0xff] }
 0x611   :  { %3929 = vtanh.f32 %v1855_v18 }
 0x61e   :  { %v3930_v2 = vpop.eup %3929 }
 0x61f   :  { %v1858_v22 = vmul.f32 %v3930_v2, %v1857_v0 }
 0x621   :  { %v5132_v21 = vadd.f32 %v1859_v24, %v1858_v22 }
 0x623   :  { %v1862_v32 = vcombine.high %v5132_v21, %v5132_v21  ;;  %v1869_v62 = vrot.slane %v5132_v21, %v4439_v63  ;;  %3682 = vmatmul.mubr.f32.vlgmr.msra.gmra.mxu0 %v5132_v21  ;;  %3717 = vmatmul.mubr.f32.vlgmr.msra.gmra.mxu1 %v5132_v21 }
 0x624   :  { %3720 = vmatpush3.msra.mxu0 %v4867_v20  ;;  %3751 = vmatprep.mubr.msk.f32.mxu0 %vm4114_vm0, %v5346_v53 }
 0x625   :  { %v1876_v13 = vrot.slane %v1862_v32, %v4439_v63  ;;  %v1877_v14 = vcombine.high %v1869_v62, %v1869_v62  ;;  %v1885_v15 = vrot.slane %v1869_v62, %v4439_v63  ;;  %2595 = vst.sshfl [vmem:[#allocation8 + $0x5] sm:$0x1 pattern:$0x73625140] %v1869_v62  ;;  %3721 = vmatprep.subr.mxu0 %v5346_v53 }
 0x626   :  { %3755 = vmatpush3.msra.mxu1 %v4691_v61  ;;  %3722 = vmatpush3.msra.mxu0 %v4876_v26 }
 0x627   :  { %3756 = vmatprep.subr.mxu1 %v5346_v53  ;;  %v1878_v16 = vcombine.high %v1876_v13, %v1876_v13  ;;  %v1892_v34 = vrot.slane %v1876_v13, %v4439_v63  ;;  %v1899_v29 = vrot.slane %v1877_v14, %v4439_v63  ;;  %v1907_v28 = vcombine.high %v1885_v15, %v1885_v15 }
 0x628   :  { %2596 = vst.sshfl [vmem:[#allocation8 + $0xd] sm:$0x1 pattern:$0x73625140] %v1877_v14  ;;  %3723 = vmatprep.subr.mxu0 %v5346_v53  ;;  %3757 = vmatpush3.msra.mxu1 %v4700_v58  ;;  %v5368_v58 = vld [vmem:[#allocation15_spill] sm:$0xff] }
 0x629   :  { %2597 = vst.sshfl [vmem:[#allocation8 + $0x25] sm:$0x1 pattern:$0x73625140] %v1876_v13  ;;  %3724 = vmatpush3.msra.mxu0 %v4883_v27  ;;  %v1906_v61 = vrot.slane %v1878_v16, %v4439_v63  ;;  %v1908_v30 = vcombine.high %v1892_v34, %v1892_v34  ;;  %v1909_v52 = vcombine.high %v1899_v29, %v1899_v29  ;;  %1921 = vst [vmem:[#allocation8 + $0x15] sm:$0x1] %v1907_v28 }
 0x62a   :  { %2598 = vst.sshfl [vmem:[#allocation8 + $0x2d] sm:$0x1 pattern:$0x73625140] %v1878_v16  ;;  %3725 = vmatprep.subr.mxu0 %v5346_v53  ;;  %3758 = vmatprep.subr.mxu1 %v5346_v53 }
 0x62b   :  { %3726 = vmatpush3.msra.mxu0 %v4890_v54  ;;  %3759 = vmatpush3.msra.mxu1 %v4707_v3  ;;  %v1910_v31 = vcombine.high %v1906_v61, %v1906_v61  ;;  %1922 = vst [vmem:[#allocation8 + $0x1d] sm:$0x1] %v1909_v52  ;;  %1925 = vst [vmem:[#allocation8 + $0x35] sm:$0x1] %v1908_v30  ;;  %v5369_v3 = vld [vmem:[#allocation16_spill] sm:$0xff] }
 0x62c   :  { %3727 = vmatprep.subr.mxu0 %v5346_v53  ;;  %3760 = vmatprep.subr.mxu1 %v5346_v53 }
 0x62d   :  { %3728 = vmatpush3.msra.mxu0 %v4896_v51  ;;  %3761 = vmatpush3.msra.mxu1 %v4713_v4  ;;  %1926 = vst [vmem:[#allocation8 + $0x3d] sm:$0x1] %v1910_v31  ;;  %v5370_v4 = vld [vmem:[#allocation17_spill] sm:$0xff] }
 0x62e   :  { %3729 = vmatprep.subr.mxu0 %v5346_v53  ;;  %3762 = vmatprep.subr.mxu1 %v5346_v53 }
 0x62f   :  { %3730 = vmatpush3.msra.mxu0 %v4902_v23  ;;  %3763 = vmatpush3.msra.mxu1 %v4719_v37  ;;  %v5371_v37 = vld [vmem:[#allocation18_spill] sm:$0xff] }
 0x630   :  { %3731 = vmatprep.subr.mxu0 %v5346_v53  ;;  %3764 = vmatprep.subr.mxu1 %v5346_v53 }
 0x631   :  { %3732 = vmatpush3.msra.mxu0 %v4908_v25  ;;  %3765 = vmatpush3.msra.mxu1 %v4725_v38  ;;  %v5372_v38 = vld [vmem:[#allocation19_spill] sm:$0xff] }
 0x632   :  { %3733 = vmatprep.subr.mxu0 %v5346_v53  ;;  %3766 = vmatprep.subr.mxu1 %v5346_v53 }
 0x633   :  { %3734 = vmatpush3.msra.mxu0 %v4914_v50  ;;  %3767 = vmatpush3.msra.mxu1 %v4731_v39  ;;  %v5373_v39 = vld [vmem:[#allocation20_spill] sm:$0xff] }
 0x634   :  { %3735 = vmatprep.subr.mxu0 %v5346_v53  ;;  %3768 = vmatprep.subr.mxu1 %v5346_v53 }
 0x635   :  { %3736 = vmatpush3.msra.mxu0 %v4920_v55  ;;  %3769 = vmatpush3.msra.mxu1 %v4737_v40  ;;  %v5374_v40 = vld [vmem:[#allocation21_spill] sm:$0xff] }
 0x636   :  { %3737 = vmatprep.subr.mxu0 %v5346_v53  ;;  %3770 = vmatprep.subr.mxu1 %v5346_v53 }
 0x637   :  { %3738 = vmatpush3.msra.mxu0 %v4926_v60  ;;  %3771 = vmatpush3.msra.mxu1 %v4743_v41  ;;  %v1928_v41 = vld [vmem:[#allocation2 + $0x90] sm:$0xff] }
 0x638   :  { %3739 = vmatprep.subr.mxu0 %v5346_v53  ;;  %3772 = vmatprep.subr.mxu1 %v5346_v53 }
 0x639   :  { %3740 = vmatpush3.msra.mxu0 %v4932_v33  ;;  %3773 = vmatpush3.msra.mxu1 %v4749_v42 }
 0x63a   :  { %3741 = vmatprep.subr.mxu0 %v5346_v53  ;;  %3774 = vmatprep.subr.mxu1 %v5346_v53 }
 0x63b   :  { %3742 = vmatpush3.msra.mxu0 %v4938_v56  ;;  %3775 = vmatpush3.msra.mxu1 %v4755_v43 }
 0x63c   :  { %3743 = vmatprep.subr.mxu0 %v5346_v53  ;;  %3776 = vmatprep.subr.mxu1 %v5346_v53 }
 0x63d   :  { %3744 = vmatpush3.msra.mxu0 %v4944_v1  ;;  %3777 = vmatpush3.msra.mxu1 %v4761_v44 }
 0x63e   :  { %3745 = vmatprep.subr.mxu0 %v5346_v53  ;;  %3778 = vmatprep.subr.mxu1 %v5346_v53 }
 0x63f   :  { %3746 = vmatpush3.msra.mxu0 %v4950_v57  ;;  %3779 = vmatpush3.msra.mxu1 %v4767_v45 }
 0x640   :  { %3747 = vmatprep.subr.mxu0 %v5346_v53  ;;  %3780 = vmatprep.subr.mxu1 %v5346_v53 }
 0x641   :  { %3748 = vmatpush3.msra.mxu0 %v4956_v35  ;;  %3781 = vmatpush3.msra.mxu1 %v4773_v46 }
 0x642   :  { %3749 = vmatprep.subr.mxu0 %v5346_v53  ;;  %3782 = vmatprep.subr.mxu1 %v5346_v53 }
 0x643   :  { %3750 = vmatpush3.msra.mxu0 %v4962_v59  ;;  %3783 = vmatpush3.msra.mxu1 %v4779_v47 }
 0x644   :  { %3752 = vmatmul.mubr.f32.vlgmr.msra.gmra.mxu0 %v5132_v21  ;;  %3789 = vmatprep.subr.mxu0 %v5346_v53 }
 0x645   :  { %3790 = vmatpush3.msra.mxu0 %v4784_v5  ;;  %3784 = vmatprep.subr.mxu1 %v5346_v53  ;;  %v1929_v5 = vld [vmem:[#allocation2 + $0x98] sm:$0xff] }
 0x646   :  { %3791 = vmatprep.subr.mxu0 %v5346_v53  ;;  %3785 = vmatpush3.msra.mxu1 %v4789_v48 }
 0x647   :  { %3792 = vmatpush3.msra.mxu0 %v4792_v49  ;;  %3786 = vmatprep.mubr.msk.f32.mxu1 %vm4114_vm0, %v5346_v53 }
 0x648   :  { %3793 = vmatprep.subr.mxu0 %v5346_v53  ;;  %3821 = vmatprep.mubr.msk.f32.mxu0 %vm4114_vm0, %v5346_v53 }
 0x649   :  { %3794 = vmatpush3.msra.mxu0 %v4800_v6  ;;  %3824 = vmatprep.subr.mxu1 %v5346_v53 }
 0x64a   :  { %3795 = vmatprep.subr.mxu0 %v5346_v53 }
 0x64b   :  { %3796 = vmatpush3.msra.mxu0 %v4805_v7 }
 0x64c   :  { %3797 = vmatprep.subr.mxu0 %v5346_v53 }
 0x64d   :  { %3798 = vmatpush3.msra.mxu0 %v4809_v8 }
 0x64e   :  { %3799 = vmatprep.subr.mxu0 %v5346_v53 }
 0x64f   :  { %3800 = vmatpush3.msra.mxu0 %v4813_v9 }
 0x650   :  { %3801 = vmatprep.subr.mxu0 %v5346_v53 }
 0x651   :  { %3802 = vmatpush3.msra.mxu0 %v4817_v10 }
 0x652   :  { %3803 = vmatprep.subr.mxu0 %v5346_v53 }
 0x653   :  { %3804 = vmatpush3.msra.mxu0 %v4821_v11 }
 0x654   :  { %3805 = vmatprep.subr.mxu0 %v5346_v53 }
 0x655   :  { %3806 = vmatpush3.msra.mxu0 %v4825_v12 }
 0x656   :  { %3807 = vmatprep.subr.mxu0 %v5346_v53 }
 0x657   :  { %3808 = vmatpush3.msra.mxu0 %v5368_v58 }
 0x658   :  { %3809 = vmatprep.subr.mxu0 %v5346_v53 }
 0x659   :  { %3810 = vmatpush3.msra.mxu0 %v5369_v3 }
 0x65a   :  { %3811 = vmatprep.subr.mxu0 %v5346_v53 }
 0x65b   :  { %3812 = vmatpush3.msra.mxu0 %v5370_v4  ;;  %v2231_v4 = vld [vmem:[#allocation2 + $0xb8] sm:$0xff] }
 0x65c   :  { %3813 = vmatprep.subr.mxu0 %v5346_v53 }
 0x65d   :  { %3814 = vmatpush3.msra.mxu0 %v5371_v37 }
 0x65e   :  { %3815 = vmatprep.subr.mxu0 %v5346_v53 }
 0x65f   :  { %3816 = vmatpush3.msra.mxu0 %v5372_v38 }
 0x660   :  { %3817 = vmatprep.subr.mxu0 %v5346_v53 }
 0x661   :  { %3818 = vmatpush3.msra.mxu0 %v5373_v39 }
 0x662   :  { %3819 = vmatprep.subr.mxu0 %v5346_v53 }
 0x663   :  { %3820 = vmatpush3.msra.mxu0 %v5374_v40 }
 0x6e3   :  { %v1997_v42 = vpop.f32.mrf.mxu0  ;;  %v2074_v43 = vpop.f32.mrf.mxu1 }
 0x6e4   :  { %v2001_v44 = vadd.f32 %v1997_v42, %v1928_v41  ;;  %v2078_v48 = vadd.f32 %v2074_v43, %v1929_v5 }
 0x6e5   :  { %v3683_v45 = vpop.f32.mrf.mxu0  ;;  %v3718_v46 = vpop.f32.mrf.mxu1 }
 0x6e6   :  { %v2599_v47 = vmul.f32 -1.442695, %v2001_v44  ;;  %v2600_v49 = vmul.f32 -1.442695, %v2078_v48 }
 0x6e8   :  { %3931 = vpow2.f32 %v2599_v47 }
 0x6e9   :  { %3933 = vpow2.f32 %v2600_v49 }
 0x6f5   :  { %v3932_v6 = vpop.eup %3931 }
 0x6f6   :  { %v2005_v7 = vadd.f32 1.0, %v3932_v6  ;;  %v3934_v8 = vpop.eup %3933 }
 0x6f7   :  { %v2082_v9 = vadd.f32 1.0, %v3934_v8 }
 0x6f8   :  { %3935 = vrcp.f32 %v2005_v7 }
 0x6f9   :  { %3937 = vrcp.f32 %v2082_v9 }
 0x704   :  { %v2151_v10 = vpop.f32.mrf.mxu0 }
 0x705   :  { %v2152_v11 = vadd.f32 %v5010_v17, %v2151_v10  ;;  %v3936_v12 = vpop.eup %3935 }
 0x706   :  { %v3753_v18 = vpop.f32.mrf.mxu0  ;;  %v3938_v2 = vpop.eup %3937 }
 0x707   :  { %v2155_v36 = vmul.f32 %v3936_v12, %v2152_v11  ;;  %v2158_v22 = vsub.f32 1.0, %v3938_v2  ;;  %v2160_v62 = vmul.f32 %v3938_v2, %v5132_v21 }
 0x709   :  { %v2156_v0 = vadd.f32 %v2155_v36, %v1930_v19 }
 0x70b   :  { %3939 = vtanh.f32 %v2156_v0 }
 0x718   :  { %v3940_v24 = vpop.eup %3939 }
 0x719   :  { %v2159_v32 = vmul.f32 %v3940_v24, %v2158_v22 }
 0x71b   :  { %v5249_v13 = vadd.f32 %v2160_v62, %v2159_v32 }
 0x71d   :  { %v2163_v14 = vcombine.high %v5249_v13, %v5249_v13  ;;  %v2170_v15 = vrot.slane %v5249_v13, %v4439_v63  ;;  %3787 = vmatmul.mubr.f32.vlgmr.msra.gmra.mxu1 %v5249_v13  ;;  %3822 = vmatmul.mubr.f32.vlgmr.msra.gmra.mxu0 %v5249_v13 }
 0x71e   :  { %3825 = vmatpush3.msra.mxu1 %v4867_v20  ;;  %3856 = vmatprep.mubr.msk.f32.mxu1 %vm4114_vm0, %v5346_v53 }
 0x71f   :  { %v2177_v16 = vrot.slane %v2163_v14, %v4439_v63  ;;  %v2178_v21 = vcombine.high %v2170_v15, %v2170_v15  ;;  %v2186_v34 = vrot.slane %v2170_v15, %v4439_v63  ;;  %2601 = vst.sshfl [vmem:[#allocation8 + $0x6] sm:$0x1 pattern:$0x73625140] %v2170_v15  ;;  %3826 = vmatprep.subr.mxu1 %v5346_v53 }
 0x720   :  { %3827 = vmatpush3.msra.mxu1 %v4876_v26 }
 0x721   :  { %v2179_v29 = vcombine.high %v2177_v16, %v2177_v16  ;;  %v2193_v28 = vrot.slane %v2177_v16, %v4439_v63  ;;  %v2200_v61 = vrot.slane %v2178_v21, %v4439_v63  ;;  %v2208_v30 = vcombine.high %v2186_v34, %v2186_v34  ;;  %2602 = vst.sshfl [vmem:[#allocation8 + $0xe] sm:$0x1 pattern:$0x73625140] %v2178_v21 }
 0x722   :  { %2603 = vst.sshfl [vmem:[#allocation8 + $0x26] sm:$0x1 pattern:$0x73625140] %v2177_v16  ;;  %3828 = vmatprep.subr.mxu1 %v5346_v53 }
 0x723   :  { %3829 = vmatpush3.msra.mxu1 %v4883_v27  ;;  %v2207_v20 = vrot.slane %v2179_v29, %v4439_v63  ;;  %v2209_v52 = vcombine.high %v2193_v28, %v2193_v28  ;;  %v2210_v31 = vcombine.high %v2200_v61, %v2200_v61  ;;  %2222 = vst [vmem:[#allocation8 + $0x16] sm:$0x1] %v2208_v30  ;;  %2604 = vst.sshfl [vmem:[#allocation8 + $0x2e] sm:$0x1 pattern:$0x73625140] %v2179_v29 }
 0x724   :  { %3830 = vmatprep.subr.mxu1 %v5346_v53  ;;  %v2229_v27 = vld [vmem:[#allocation2 + $0xa8] sm:$0xff] }
 0x725   :  { %3831 = vmatpush3.msra.mxu1 %v4890_v54  ;;  %v2211_v26 = vcombine.high %v2207_v20, %v2207_v20  ;;  %2223 = vst [vmem:[#allocation8 + $0x1e] sm:$0x1] %v2210_v31  ;;  %2226 = vst [vmem:[#allocation8 + $0x36] sm:$0x1] %v2209_v52 }
 0x726   :  { %3832 = vmatprep.subr.mxu1 %v5346_v53 }
 0x727   :  { %3833 = vmatpush3.msra.mxu1 %v4896_v51  ;;  %2227 = vst [vmem:[#allocation8 + $0x3e] sm:$0x1] %v2211_v26 }
 0x728   :  { %3834 = vmatprep.subr.mxu1 %v5346_v53 }
 0x729   :  { %3835 = vmatpush3.msra.mxu1 %v4902_v23 }
 0x72a   :  { %3836 = vmatprep.subr.mxu1 %v5346_v53 }
 0x72b   :  { %3837 = vmatpush3.msra.mxu1 %v4908_v25 }
 0x72c   :  { %3838 = vmatprep.subr.mxu1 %v5346_v53 }
 0x72d   :  { %3839 = vmatpush3.msra.mxu1 %v4914_v50 }
 0x72e   :  { %3840 = vmatprep.subr.mxu1 %v5346_v53 }
 0x72f   :  { %3841 = vmatpush3.msra.mxu1 %v4920_v55 }
 0x730   :  { %3842 = vmatprep.subr.mxu1 %v5346_v53 }
 0x731   :  { %3843 = vmatpush3.msra.mxu1 %v4926_v60  ;;  %v2230_v60 = vld [vmem:[#allocation2 + $0xb0] sm:$0xff] }
 0x732   :  { %3844 = vmatprep.subr.mxu1 %v5346_v53 }
 0x733   :  { %3845 = vmatpush3.msra.mxu1 %v4932_v33 }
 0x734   :  { %3846 = vmatprep.subr.mxu1 %v5346_v53 }
 0x735   :  { %3847 = vmatpush3.msra.mxu1 %v4938_v56 }
 0x736   :  { %3848 = vmatprep.subr.mxu1 %v5346_v53 }
 0x737   :  { %3849 = vmatpush3.msra.mxu1 %v4944_v1 }
 0x738   :  { %3850 = vmatprep.subr.mxu1 %v5346_v53 }
 0x739   :  { %3851 = vmatpush3.msra.mxu1 %v4950_v57 }
 0x73a   :  { %3852 = vmatprep.subr.mxu1 %v5346_v53 }
 0x73b   :  { %3853 = vmatpush3.msra.mxu1 %v4956_v35 }
 0x73c   :  { %3854 = vmatprep.subr.mxu1 %v5346_v53 }
 0x73d   :  { %3855 = vmatpush3.msra.mxu1 %v4962_v59 }
 0x73e   :  { %3857 = vmatmul.mubr.f32.vlgmr.msra.gmra.mxu1 %v5249_v13 }
 0x7dd   :  { %v2298_v54 = vpop.f32.mrf.mxu1  ;;  %v2375_v51 = vpop.f32.mrf.mxu0 }
 0x7de   :  { %v2302_v23 = vadd.f32 %v2298_v54, %v2229_v27  ;;  %v2379_v33 = vadd.f32 %v2375_v51, %v2230_v60 }
 0x7df   :  { %v3788_v25 = vpop.f32.mrf.mxu1  ;;  %v3823_v50 = vpop.f32.mrf.mxu0 }
 0x7e0   :  { %v2605_v55 = vmul.f32 -1.442695, %v2302_v23  ;;  %v2606_v56 = vmul.f32 -1.442695, %v2379_v33 }
 0x7e2   :  { %3941 = vpow2.f32 %v2605_v55 }
 0x7e3   :  { %3943 = vpow2.f32 %v2606_v56 }
 0x7ef   :  { %v3942_v1 = vpop.eup %3941 }
 0x7f0   :  { %v2306_v57 = vadd.f32 1.0, %v3942_v1  ;;  %v3944_v53 = vpop.eup %3943 }
 0x7f1   :  { %v2383_v35 = vadd.f32 1.0, %v3944_v53 }
 0x7f2   :  { %3945 = vrcp.f32 %v2306_v57 }
 0x7f3   :  { %3947 = vrcp.f32 %v2383_v35 }
 0x7fe   :  { %v2452_v59 = vpop.f32.mrf.mxu1 }
 0x7ff   :  { %v2453_v58 = vadd.f32 %v5010_v17, %v2452_v59  ;;  %v3946_v3 = vpop.eup %3945 }
 0x800   :  { %v3858_v37 = vpop.f32.mrf.mxu1  ;;  %v3948_v40 = vpop.eup %3947 }
 0x801   :  { %v2456_v38 = vmul.f32 %v3946_v3, %v2453_v58  ;;  %v2459_v41 = vsub.f32 1.0, %v3948_v40  ;;  %v2461_v43 = vmul.f32 %v3948_v40, %v5249_v13 }
 0x803   :  { %v2457_v39 = vadd.f32 %v2456_v38, %v2231_v4 }
 0x805   :  { %3949 = vtanh.f32 %v2457_v39 }
 0x812   :  { %v3950_v42 = vpop.eup %3949 }
 0x813   :  { %v2460_v44 = vmul.f32 %v3950_v42, %v2459_v41 }
 0x815   :  { %v2462_v45 = vadd.f32 %v2461_v43, %v2460_v44 }
 0x817   :  { %v2464_v46 = vcombine.high %v2462_v45, %v2462_v45  ;;  %v2471_v17 = vrot.slane %v2462_v45, %v4439_v63  ;;  %2529 = vst [vmem:[#allocation9] sm:$0xff] %v2462_v45 }
 0x818   :  { %4071 = shalt.err (!%p4068_p5)
}
 0x819   :  { %2551 = dma.vmem_to_hbm [thread:$0]  %s2549_s11, 128, %s5315_s5, [#allocation10]   ;;  %v2478_v47 = vrot.slane %v2464_v46, %v4439_v63  ;;  %v2479_v5 = vcombine.high %v2471_v17, %v2471_v17  ;;  %v2487_v48 = vrot.slane %v2471_v17, %v4439_v63  ;;  %2607 = vst.sshfl [vmem:[#allocation8 + $0x7] sm:$0x1 pattern:$0x73625140] %v2471_v17 }
 0x81a   :  { %s4117_s15 = smov [#allocation8]  }
 0x81b   :  { %v2480_v49 = vcombine.high %v2478_v47, %v2478_v47  ;;  %v2494_v6 = vrot.slane %v2478_v47, %v4439_v63  ;;  %v2501_v7 = vrot.slane %v2479_v5, %v4439_v63  ;;  %v2509_v8 = vcombine.high %v2487_v48, %v2487_v48  ;;  %2608 = vst.sshfl [vmem:[#allocation8 + $0xf] sm:$0x1 pattern:$0x73625140] %v2479_v5  ;;  %s2535_s16 = sshll.u32 %s4117_s15, 4  ;;  %s2536_s16 = int_to_ptr.vmem [resolvable:$true] %s2535_s16 }
 0x81c   :  { %2609 = vst.sshfl [vmem:[#allocation8 + $0x27] sm:$0x1 pattern:$0x73625140] %v2478_v47  ;;  %s4080_s5 = scalar_lea.vmem %s2536_s16, 1024  ;;  %p4085_p7 = scmp.lt.s32.totalorder %s2536_s16, %s2536_s16 }
 0x81d   :  { %v2508_v9 = vrot.slane %v2480_v49, %v4439_v63  ;;  %v2510_v10 = vcombine.high %v2494_v6, %v2494_v6  ;;  %v2511_v11 = vcombine.high %v2501_v7, %v2501_v7  ;;  %2523 = vst [vmem:[#allocation8 + $0x17] sm:$0x1] %v2509_v8  ;;  %2610 = vst.sshfl [vmem:[#allocation8 + $0x2f] sm:$0x1 pattern:$0x73625140] %v2480_v49  ;;  %p4081_p6 = scmp.ne.s32.totalorder %s2536_s16, %s4080_s5  ;;  %p4086_p8 = scmp.lt.s32.totalorder %s4080_s5, %s4080_s5 }
 0x81f   :  { %v2512_v12 = vcombine.high %v2508_v9, %v2508_v9  ;;  %2524 = vst [vmem:[#allocation8 + $0x1f] sm:$0x1] %v2511_v11  ;;  %2527 = vst [vmem:[#allocation8 + $0x37] sm:$0x1] %v2510_v10  ;;  %p4087_p9 = por %p4086_p8, %p4085_p7 }
 0x821   :  { %2528 = vst [vmem:[#allocation8 + $0x3f] sm:$0x1] %v2512_v12  ;;  %p4088_p10 = pnand %p4087_p9, %p4081_p6 }
 0x823   :  { %4091 = shalt.err (!%p4088_p10)
}
 0x824   :  { %s4118_s17 = smov 128   ;;  %s4119_s18 = smov 8  }
 0x825   :  { %2541 = dma.vmem_to_hbm [thread:$0]  %s2536_s16, 1024, %s5314_s4, [#allocation4], %s4118_s17, %s4118_s17, %s4119_s18  }
 0x826   :  { %4104 = dma.done.wait [#allocation4], 1024  }
 0x827   :  { %4105 = vsyncadd [#allocation4], 4294966272 }
 0x828   :  { %4106 = dma.done.wait [#allocation10], 128  }
 0x829   :  { %4107 = vsyncadd [#allocation10], 4294967168 }
 0x82a   :  { %2558 = vsyncpa [#allocation3], 1 }
 0x82b   :  { %2559 = vsyncpa [#allocation6], 1 }
 0x82c   :  { %2560 = vsyncpa [#allocation4], 1 }
 0x82d   :  { %2561 = vsyncpa [#allocation10], 1 }

// kernel: tpu_custom_call.1
= control target key start
LH: loop header
LB: loop body
LE: loop exit
PB: predicated region body
PF: predicated region fallthrough
CT: control target
= control target key end

     0   :  { %11 = vsyncpa [#allocation3], 0  ;;  %s5310_s0 = inlined_call_operand.hbm [shape: f32[8,8,384], index: 0, kind: input, shape index: {}]   ;;  %s5311_s1 = inlined_call_operand.hbm [shape: f32[8,128], index: 1, kind: input, shape index: {}]   ;;  %s5312_s2 = inlined_call_operand.hbm [shape: f32[128,384], index: 2, kind: input, shape index: {}]   ;;  %s5313_s3 = inlined_call_operand.vmem [shape: f32[1,128], index: 3, kind: input, shape index: {}]   ;;  %s5314_s4 = inlined_call_operand.hbm [shape: f32[8,8,128], index: 4, kind: output, shape index: {0}]   ;;  %s5315_s5 = inlined_call_operand.hbm [shape: f32[8,128], index: 5, kind: output, shape index: {1}]  }
   0x1   :  { %12 = vsyncpa [#allocation6], 0 }
   0x2   :  { %13 = vsyncpa [#allocation4], 0 }
   0x3   :  { %14 = vsyncpa [#allocation10], 0  ;;  %s4108_s18 = smov [#allocation5]   ;;  %s4109_s20 = smov [#allocation2]  }
   0x4   :  { %s33_s19 = sshll.u32 %s4108_s18, 4  ;;  %s20_s21 = sshll.u32 %s4109_s20, 4  ;;  %s34_s19 = int_to_ptr.vmem [resolvable:$true] %s33_s19  ;;  %s21_s21 = int_to_ptr.vmem [resolvable:$true] %s20_s21 }
   0x5   :  { %s4008_s22 = scalar_lea.vmem %s34_s19, 128  ;;  %p4013_p1 = scmp.lt.s32.totalorder %s34_s19, %s34_s19 }
   0x6   :  { %p4009_p0 = scmp.ne.s32.totalorder %s34_s19, %s4008_s22  ;;  %p4014_p2 = scmp.lt.s32.totalorder %s4008_s22, %s4008_s22 }
   0x8   :  { %p4015_p3 = por %p4014_p2, %p4013_p1 }
   0xa   :  { %p4016_p4 = pnand %p4015_p3, %p4009_p0 }
   0xc   :  { %4019 = shalt.err (!%p4016_p4)
}
   0xd   :  { %36 = dma.hbm_to_vmem [thread:$0]  %s5311_s1, 128, %s34_s19, [#allocation6]  }
   0xe   :  { %s4028_s25 = scalar_lea.vmem %s21_s21, 3072  ;;  %p4033_p6 = scmp.lt.s32.totalorder %s21_s21, %s21_s21 }
   0xf   :  { %p4029_p5 = scmp.ne.s32.totalorder %s21_s21, %s4028_s25  ;;  %p4034_p7 = scmp.lt.s32.totalorder %s4028_s25, %s4028_s25 }
  0x11   :  { %p4035_p8 = por %p4034_p7, %p4033_p6 }
  0x13   :  { %p4036_p9 = pnand %p4035_p8, %p4029_p5 }
  0x15   :  { %4039 = shalt.err (!%p4036_p9)
}
  0x16   :  { %s4110_s26 = smov 384   ;;  %s4111_s27 = smov 24  }
  0x17   :  { %26 = dma.hbm_to_vmem [thread:$0]  %s5310_s0, 3072, %s21_s21, [#allocation3], %s4110_s26, %s4110_s26, %s4111_s27  }
  0x18   :  { %s4112_s30 = smov [#allocation7]  }
  0x19   :  { %s42_s6 = sshll.u32 %s4112_s30, 4  ;;  %s43_s6 = int_to_ptr.vmem [resolvable:$true] %s42_s6 }
  0x1a   :  { %s4048_s7 = scalar_lea.vmem %s43_s6, 6144  ;;  %p4053_p11 = scmp.lt.s32.totalorder %s43_s6, %s43_s6 }
  0x1b   :  { %p4049_p10 = scmp.ne.s32.totalorder %s43_s6, %s4048_s7  ;;  %p4054_p12 = scmp.lt.s32.totalorder %s4048_s7, %s4048_s7 }
  0x1d   :  { %p4055_p13 = por %p4054_p12, %p4053_p11 }
  0x1f   :  { %p4056_p0 = pnand %p4055_p13, %p4049_p10 }
  0x21   :  { %4059 = shalt.err (!%p4056_p0)
}
  0x22   :  { %48 = dma.hbm_to_vmem [thread:$0]  %s5312_s2, 6144, %s43_s6, [#allocation6], %s4110_s26, %s4110_s26, %s4111_s27  }
  0x23   :  { %4100 = dma.done.wait [#allocation3], 3072  }
  0x24   :  { %4101 = vsyncadd [#allocation3], 4294964224 }
  0x25   :  { %4102 = dma.done.wait [#allocation6], 6272  }
  0x26   :  { %4103 = vsyncadd [#allocation6], 4294961024  ;;  %v5316_v0 = vmov 0.0   ;;  %vm4114_vm0 = vmmov 0   ;;  %v4165_v1 = vld [vmem:[#allocation7 + $0x168] sm:$0xff]  ;;  %v4167_v2 = vld [vmem:[#allocation7 + $0x150] sm:$0xff] }
  0x27   :  { %3019 = vmatprep.subr.mxu0 %v5316_v0  ;;  %3054 = vmatprep.subr.mxu1 %v5316_v0  ;;  %v4171_v3 = vld [vmem:[#allocation7 + $0x138] sm:$0xff]  ;;  %v4173_v4 = vld [vmem:[#allocation7 + $0x170] sm:$0xff]  ;;  %v4180_v6 = vld [vmem:[#allocation7 + $0x120] sm:$0xff] }
  0x28   :  { %3051 = vmatprep.mubr.msk.f32.mxu0 %vm4114_vm0, %v5316_v0  ;;  %3086 = vmatprep.mubr.msk.f32.mxu1 %vm4114_vm0, %v5316_v0  ;;  %v4177_v5 = vld [vmem:[#allocation7 + $0x158] sm:$0xff]  ;;  %v4183_v7 = vld [vmem:[#allocation7 + $0x140] sm:$0xff]  ;;  %v4188_v8 = vld [vmem:[#allocation7 + $0x108] sm:$0xff] }
  0x29   :  { %3020 = vmatpush3.msra.mxu0 %v4165_v1  ;;  %3055 = vmatpush3.msra.mxu1 %v4173_v4  ;;  %v4191_v9 = vld [vmem:[#allocation7 + $0x128] sm:$0xff]  ;;  %v4196_v10 = vld [vmem:[#allocation7 + $0xf0] sm:$0xff]  ;;  %v4204_v12 = vld [vmem:[#allocation7 + $0xd8] sm:$0xff] }
  0x2a   :  { %3021 = vmatprep.subr.mxu0 %v5316_v0  ;;  %3056 = vmatprep.subr.mxu1 %v5316_v0  ;;  %v4199_v11 = vld [vmem:[#allocation7 + $0x110] sm:$0xff]  ;;  %v4207_v13 = vld [vmem:[#allocation7 + $0xf8] sm:$0xff]  ;;  %v4212_v14 = vld [vmem:[#allocation7 + $0xc0] sm:$0xff] }
  0x2b   :  { %3022 = vmatpush3.msra.mxu0 %v4167_v2  ;;  %3057 = vmatpush3.msra.mxu1 %v4177_v5  ;;  %v4215_v15 = vld [vmem:[#allocation7 + $0xe0] sm:$0xff]  ;;  %v4220_v16 = vld [vmem:[#allocation7 + $0xa8] sm:$0xff]  ;;  %v4228_v18 = vld [vmem:[#allocation7 + $0x90] sm:$0xff] }
  0x2c   :  { %3023 = vmatprep.subr.mxu0 %v5316_v0  ;;  %3058 = vmatprep.subr.mxu1 %v5316_v0  ;;  %v4223_v17 = vld [vmem:[#allocation7 + $0xc8] sm:$0xff]  ;;  %v4231_v19 = vld [vmem:[#allocation7 + $0xb0] sm:$0xff]  ;;  %v4236_v20 = vld [vmem:[#allocation7 + $0x78] sm:$0xff] }
  0x2d   :  { %3024 = vmatpush3.msra.mxu0 %v4171_v3  ;;  %3059 = vmatpush3.msra.mxu1 %v4183_v7  ;;  %v4239_v21 = vld [vmem:[#allocation7 + $0x98] sm:$0xff]  ;;  %v4244_v22 = vld [vmem:[#allocation7 + $0x60] sm:$0xff]  ;;  %v4252_v24 = vld [vmem:[#allocation7 + $0x48] sm:$0xff] }
  0x2e   :  { %3025 = vmatprep.subr.mxu0 %v5316_v0  ;;  %3060 = vmatprep.subr.mxu1 %v5316_v0  ;;  %5339 = vst [vmem:[#allocation15_spill] sm:$0xff] %v4239_v21  ;;  %v4247_v23 = vld [vmem:[#allocation7 + $0x80] sm:$0xff]  ;;  %v4255_v25 = vld [vmem:[#allocation7 + $0x68] sm:$0xff]  ;;  %v4260_v26 = vld [vmem:[#allocation7 + $0x30] sm:$0xff] }
  0x2f   :  { %3026 = vmatpush3.msra.mxu0 %v4180_v6  ;;  %3061 = vmatpush3.msra.mxu1 %v4191_v9  ;;  %5340 = vst [vmem:[#allocation16_spill] sm:$0xff] %v4247_v23  ;;  %5341 = vst [vmem:[#allocation17_spill] sm:$0xff] %v4255_v25  ;;  %v4263_v27 = vld [vmem:[#allocation7 + $0x50] sm:$0xff]  ;;  %v4268_v28 = vld [vmem:[#allocation7 + $0x18] sm:$0xff] }
  0x30   :  { %3027 = vmatprep.subr.mxu0 %v5316_v0  ;;  %3062 = vmatprep.subr.mxu1 %v5316_v0  ;;  %5342 = vst [vmem:[#allocation18_spill] sm:$0xff] %v4263_v27  ;;  %v4271_v29 = vld [vmem:[#allocation7 + $0x38] sm:$0xff]  ;;  %v4276_v30 = vld [vmem:[#allocation7] sm:$0xff]  ;;  %v4291_v34 = vld [vmem:[#allocation7 + $0x8] sm:$0xff] }
  0x31   :  { %3028 = vmatpush3.msra.mxu0 %v4188_v8  ;;  %3063 = vmatpush3.msra.mxu1 %v4199_v11  ;;  %5343 = vst [vmem:[#allocation19_spill] sm:$0xff] %v4271_v29  ;;  %v4279_v31 = vld [vmem:[#allocation7 + $0x20] sm:$0xff]  ;;  %v4282_v32 = vld [vmem:[#allocation5] sm:$0xff]  ;;  %5345 = vst [vmem:[#allocation21_spill] sm:$0xff] %v4291_v34 }
  0x32   :  { %3029 = vmatprep.subr.mxu0 %v5316_v0  ;;  %3064 = vmatprep.subr.mxu1 %v5316_v0  ;;  %5344 = vst [vmem:[#allocation20_spill] sm:$0xff] %v4279_v31  ;;  %v4286_v33 = vld [vmem:[#allocation7 + $0x178] sm:$0xff]  ;;  %v4295_v35 = vld [vmem:[#allocation7 + $0x160] sm:$0xff]  ;;  %v4300_v36 = vld [vmem:[#allocation7 + $0x148] sm:$0xff] }
  0x33   :  { %3030 = vmatpush3.msra.mxu0 %v4196_v10  ;;  %3065 = vmatpush3.msra.mxu1 %v4207_v13  ;;  %v4306_v37 = vld [vmem:[#allocation7 + $0x130] sm:$0xff]  ;;  %v4313_v38 = vld [vmem:[#allocation7 + $0x118] sm:$0xff]  ;;  %v4319_v39 = vld [vmem:[#allocation7 + $0x100] sm:$0xff] }
  0x34   :  { %3031 = vmatprep.subr.mxu0 %v5316_v0  ;;  %3066 = vmatprep.subr.mxu1 %v5316_v0  ;;  %v4325_v40 = vld [vmem:[#allocation7 + $0xe8] sm:$0xff]  ;;  %v4331_v41 = vld [vmem:[#allocation7 + $0xd0] sm:$0xff]  ;;  %v4337_v42 = vld [vmem:[#allocation7 + $0xb8] sm:$0xff] }
  0x35   :  { %3032 = vmatpush3.msra.mxu0 %v4204_v12  ;;  %3067 = vmatpush3.msra.mxu1 %v4215_v15  ;;  %v4343_v43 = vld [vmem:[#allocation7 + $0xa0] sm:$0xff]  ;;  %v4349_v44 = vld [vmem:[#allocation7 + $0x88] sm:$0xff]  ;;  %v4355_v45 = vld [vmem:[#allocation7 + $0x70] sm:$0xff] }
  0x36   :  { %3033 = vmatprep.subr.mxu0 %v5316_v0  ;;  %3068 = vmatprep.subr.mxu1 %v5316_v0  ;;  %v4361_v46 = vld [vmem:[#allocation7 + $0x58] sm:$0xff]  ;;  %v4367_v47 = vld [vmem:[#allocation7 + $0x40] sm:$0xff]  ;;  %v4373_v48 = vld [vmem:[#allocation7 + $0x28] sm:$0xff] }
  0x37   :  { %3034 = vmatpush3.msra.mxu0 %v4212_v14  ;;  %3069 = vmatpush3.msra.mxu1 %v4223_v17  ;;  %v4379_v49 = vld [vmem:[#allocation7 + $0x10] sm:$0xff]  ;;  %v122_v50 = vld [vmem:[#allocation2] sm:$0xff]  ;;  %v123_v54 = vld [vmem:[#allocation2 + $0x8] sm:$0xff] }
  0x38   :  { %3035 = vmatprep.subr.mxu0 %v5316_v0  ;;  %3070 = vmatprep.subr.mxu1 %v5316_v0 }
  0x39   :  { %3036 = vmatpush3.msra.mxu0 %v4220_v16  ;;  %3071 = vmatpush3.msra.mxu1 %v4231_v19 }
  0x3a   :  { %3037 = vmatprep.subr.mxu0 %v5316_v0  ;;  %3072 = vmatprep.subr.mxu1 %v5316_v0 }
  0x3b   :  { %3038 = vmatpush3.msra.mxu0 %v4228_v18  ;;  %3073 = vmatpush3.msra.mxu1 %v4239_v21 }
  0x3c   :  { %3039 = vmatprep.subr.mxu0 %v5316_v0  ;;  %3074 = vmatprep.subr.mxu1 %v5316_v0 }
  0x3d   :  { %3040 = vmatpush3.msra.mxu0 %v4236_v20  ;;  %3075 = vmatpush3.msra.mxu1 %v4247_v23 }
  0x3e   :  { %3041 = vmatprep.subr.mxu0 %v5316_v0  ;;  %3076 = vmatprep.subr.mxu1 %v5316_v0 }
  0x3f   :  { %3042 = vmatpush3.msra.mxu0 %v4244_v22  ;;  %3077 = vmatpush3.msra.mxu1 %v4255_v25 }
  0x40   :  { %3043 = vmatprep.subr.mxu0 %v5316_v0  ;;  %3078 = vmatprep.subr.mxu1 %v5316_v0 }
  0x41   :  { %3044 = vmatpush3.msra.mxu0 %v4252_v24  ;;  %3079 = vmatpush3.msra.mxu1 %v4263_v27 }
  0x42   :  { %3045 = vmatprep.subr.mxu0 %v5316_v0  ;;  %3080 = vmatprep.subr.mxu1 %v5316_v0 }
  0x43   :  { %3046 = vmatpush3.msra.mxu0 %v4260_v26  ;;  %3081 = vmatpush3.msra.mxu1 %v4271_v29 }
  0x44   :  { %3047 = vmatprep.subr.mxu0 %v5316_v0  ;;  %3082 = vmatprep.subr.mxu1 %v5316_v0 }
  0x45   :  { %3048 = vmatpush3.msra.mxu0 %v4268_v28  ;;  %3083 = vmatpush3.msra.mxu1 %v4279_v31 }
  0x46   :  { %3049 = vmatprep.subr.mxu0 %v5316_v0  ;;  %3084 = vmatprep.subr.mxu1 %v5316_v0 }
  0x47   :  { %3050 = vmatpush3.msra.mxu0 %v4276_v30  ;;  %3085 = vmatpush3.msra.mxu1 %v4291_v34 }
  0x48   :  { %3052 = vmatmul.mubr.f32.vlgmr.msra.gmra.mxu0 %v4282_v32  ;;  %3089 = vmatprep.subr.mxu0 %v5316_v0 }
  0x49   :  { %3090 = vmatpush3.msra.mxu0 %v4286_v33  ;;  %3087 = vmatmul.mubr.f32.vlgmr.msra.gmra.mxu1 %v4282_v32 }
  0x4a   :  { %3091 = vmatprep.subr.mxu0 %v5316_v0  ;;  %3121 = vmatprep.mubr.msk.f32.mxu0 %vm4114_vm0, %v5316_v0 }
  0x4b   :  { %3092 = vmatpush3.msra.mxu0 %v4295_v35  ;;  %3124 = vmatprep.subr.mxu1 %v5316_v0 }
  0x4c   :  { %3093 = vmatprep.subr.mxu0 %v5316_v0  ;;  %3125 = vmatpush3.msra.mxu1 %v4165_v1 }
  0x4d   :  { %3094 = vmatpush3.msra.mxu0 %v4300_v36  ;;  %3126 = vmatprep.subr.mxu1 %v5316_v0 }
  0x4e   :  { %3095 = vmatprep.subr.mxu0 %v5316_v0  ;;  %3127 = vmatpush3.msra.mxu1 %v4167_v2 }
  0x4f   :  { %3096 = vmatpush3.msra.mxu0 %v4306_v37  ;;  %3128 = vmatprep.subr.mxu1 %v5316_v0 }
  0x50   :  { %3097 = vmatprep.subr.mxu0 %v5316_v0  ;;  %3129 = vmatpush3.msra.mxu1 %v4171_v3 }
  0x51   :  { %3098 = vmatpush3.msra.mxu0 %v4313_v38  ;;  %3130 = vmatprep.subr.mxu1 %v5316_v0 }
  0x52   :  { %3099 = vmatprep.subr.mxu0 %v5316_v0  ;;  %3131 = vmatpush3.msra.mxu1 %v4180_v6 }
  0x53   :  { %3100 = vmatpush3.msra.mxu0 %v4319_v39  ;;  %3132 = vmatprep.subr.mxu1 %v5316_v0 }
  0x54   :  { %3101 = vmatprep.subr.mxu0 %v5316_v0  ;;  %3133 = vmatpush3.msra.mxu1 %v4188_v8 }
  0x55   :  { %3102 = vmatpush3.msra.mxu0 %v4325_v40  ;;  %3134 = vmatprep.subr.mxu1 %v5316_v0 }
  0x56   :  { %3103 = vmatprep.subr.mxu0 %v5316_v0  ;;  %3135 = vmatpush3.msra.mxu1 %v4196_v10 }
  0x57   :  { %3104 = vmatpush3.msra.mxu0 %v4331_v41  ;;  %3136 = vmatprep.subr.mxu1 %v5316_v0 }
  0x58   :  { %3105 = vmatprep.subr.mxu0 %v5316_v0  ;;  %3137 = vmatpush3.msra.mxu1 %v4204_v12 }
  0x59   :  { %3106 = vmatpush3.msra.mxu0 %v4337_v42  ;;  %3138 = vmatprep.subr.mxu1 %v5316_v0 }
  0x5a   :  { %3107 = vmatprep.subr.mxu0 %v5316_v0  ;;  %3139 = vmatpush3.msra.mxu1 %v4212_v14 }
  0x5b   :  { %3108 = vmatpush3.msra.mxu0 %v4343_v43  ;;  %3140 = vmatprep.subr.mxu1 %v5316_v0 }
  0x5c   :  { %3109 = vmatprep.subr.mxu0 %v5316_v0  ;;  %3141 = vmatpush3.msra.mxu1 %v4220_v16 }
  0x5d   :  { %3110 = vmatpush3.msra.mxu0 %v4349_v44  ;;  %3142 = vmatprep.subr.mxu1 %v5316_v0 }
  0x5e   :  { %3111 = vmatprep.subr.mxu0 %v5316_v0  ;;  %3143 = vmatpush3.msra.mxu1 %v4228_v18 }
  0x5f   :  { %3112 = vmatpush3.msra.mxu0 %v4355_v45  ;;  %3144 = vmatprep.subr.mxu1 %v5316_v0 }
  0x60   :  { %3113 = vmatprep.subr.mxu0 %v5316_v0  ;;  %3145 = vmatpush3.msra.mxu1 %v4236_v20 }
  0x61   :  { %3114 = vmatpush3.msra.mxu0 %v4361_v46  ;;  %3146 = vmatprep.subr.mxu1 %v5316_v0 }
  0x62   :  { %3115 = vmatprep.subr.mxu0 %v5316_v0  ;;  %3147 = vmatpush3.msra.mxu1 %v4244_v22 }
  0x63   :  { %3116 = vmatpush3.msra.mxu0 %v4367_v47  ;;  %3148 = vmatprep.subr.mxu1 %v5316_v0 }
  0x64   :  { %3117 = vmatprep.subr.mxu0 %v5316_v0  ;;  %3149 = vmatpush3.msra.mxu1 %v4252_v24 }
  0x65   :  { %3118 = vmatpush3.msra.mxu0 %v4373_v48  ;;  %3150 = vmatprep.subr.mxu1 %v5316_v0 }
  0x66   :  { %3119 = vmatprep.subr.mxu0 %v5316_v0  ;;  %3151 = vmatpush3.msra.mxu1 %v4260_v26 }
  0x67   :  { %3120 = vmatpush3.msra.mxu0 %v4379_v49  ;;  %3152 = vmatprep.subr.mxu1 %v5316_v0 }
  0x68   :  { %3122 = vmatmul.mubr.f32.vlgmr.msra.gmra.mxu0 %v4282_v32  ;;  %3159 = vmatprep.subr.mxu0 %v5316_v0 }
  0x69   :  { %3160 = vmatpush3.msra.mxu0 %v4173_v4  ;;  %3153 = vmatpush3.msra.mxu1 %v4268_v28 }
  0x6a   :  { %3161 = vmatprep.subr.mxu0 %v5316_v0  ;;  %3154 = vmatprep.subr.mxu1 %v5316_v0 }
  0x6b   :  { %3162 = vmatpush3.msra.mxu0 %v4177_v5  ;;  %3155 = vmatpush3.msra.mxu1 %v4276_v30 }
  0x6c   :  { %3163 = vmatprep.subr.mxu0 %v5316_v0  ;;  %3156 = vmatprep.mubr.msk.f32.mxu1 %vm4114_vm0, %v5316_v0 }
  0x6d   :  { %3164 = vmatpush3.msra.mxu0 %v4183_v7  ;;  %3191 = vmatprep.mubr.msk.f32.mxu0 %vm4114_vm0, %v5316_v0 }
  0x6e   :  { %3165 = vmatprep.subr.mxu0 %v5316_v0  ;;  %3194 = vmatprep.subr.mxu1 %v5316_v0 }
  0x6f   :  { %3166 = vmatpush3.msra.mxu0 %v4191_v9 }
  0x70   :  { %3167 = vmatprep.subr.mxu0 %v5316_v0 }
  0x71   :  { %3168 = vmatpush3.msra.mxu0 %v4199_v11 }
  0x72   :  { %3169 = vmatprep.subr.mxu0 %v5316_v0 }
  0x73   :  { %3170 = vmatpush3.msra.mxu0 %v4207_v13 }
  0x74   :  { %3171 = vmatprep.subr.mxu0 %v5316_v0 }
  0x75   :  { %3172 = vmatpush3.msra.mxu0 %v4215_v15 }
  0x76   :  { %3173 = vmatprep.subr.mxu0 %v5316_v0 }
  0x77   :  { %3174 = vmatpush3.msra.mxu0 %v4223_v17 }
  0x78   :  { %3175 = vmatprep.subr.mxu0 %v5316_v0 }
  0x79   :  { %3176 = vmatpush3.msra.mxu0 %v4231_v19 }
  0x7a   :  { %3177 = vmatprep.subr.mxu0 %v5316_v0 }
  0x7b   :  { %3178 = vmatpush3.msra.mxu0 %v4239_v21 }
  0x7c   :  { %3179 = vmatprep.subr.mxu0 %v5316_v0 }
  0x7d   :  { %3180 = vmatpush3.msra.mxu0 %v4247_v23 }
  0x7e   :  { %3181 = vmatprep.subr.mxu0 %v5316_v0 }
  0x7f   :  { %3182 = vmatpush3.msra.mxu0 %v4255_v25 }
  0x80   :  { %3183 = vmatprep.subr.mxu0 %v5316_v0 }
  0x81   :  { %3184 = vmatpush3.msra.mxu0 %v4263_v27 }
  0x82   :  { %3185 = vmatprep.subr.mxu0 %v5316_v0 }
  0x83   :  { %3186 = vmatpush3.msra.mxu0 %v4271_v29 }
  0x84   :  { %3187 = vmatprep.subr.mxu0 %v5316_v0 }
  0x85   :  { %3188 = vmatpush3.msra.mxu0 %v4279_v31 }
  0x86   :  { %3189 = vmatprep.subr.mxu0 %v5316_v0 }
  0x87   :  { %3190 = vmatpush3.msra.mxu0 %v4291_v34 }
  0x88   :  { %3229 = vmatprep.subr.mxu0 %v5316_v0  ;;  %v4435_v0 = vld [vmem:[%s5313_s3] ss:$0 sm:$0xff] }
 0x108   :  { %v191_v51 = vpop.f32.mrf.mxu0 }
 0x109   :  { %v195_v52 = vadd.f32 %v191_v51, %v122_v50  ;;  %v268_v56 = vpop.f32.mrf.mxu1 }
 0x10a   :  { %v3053_v53 = vpop.f32.mrf.mxu0  ;;  %v272_v57 = vadd.f32 %v268_v56, %v123_v54 }
 0x10b   :  { %v2563_v55 = vmul.f32 -1.442695, %v195_v52  ;;  %v3088_v58 = vpop.f32.mrf.mxu1  ;;  %v124_v53 = vld [vmem:[#allocation2 + $0x10] sm:$0xff] }
 0x10c   :  { %v2564_v59 = vmul.f32 -1.442695, %v272_v57  ;;  %v4115_v57 = vmov 1966171168  }
 0x10d   :  { %3871 = vpow2.f32 %v2563_v55  ;;  %v359_v58 = vunpack.c.l.s4 %v4115_v57 }
 0x10e   :  { %3873 = vpow2.f32 %v2564_v59  ;;  %v361_v59 = vlaneseq }
 0x110   :  { %v362_v34 = vshrl.u32 %v361_v59, 7 }
 0x11a   :  { %v3872_v60 = vpop.eup %3871 }
 0x11b   :  { %v199_v61 = vadd.f32 1.0, %v3872_v60  ;;  %v3874_v62 = vpop.eup %3873 }
 0x11c   :  { %v276_v63 = vadd.f32 1.0, %v3874_v62  ;;  %v360_v62 = vunpack.c.0.s8 %v359_v58 }
 0x11d   :  { %3875 = vrcp.f32 %v199_v61 }
 0x11e   :  { %3877 = vrcp.f32 %v276_v63  ;;  %v4439_v63 = vsub.s32 %v360_v62, %v362_v34  ;;  %v5349_v62 = vld [vmem:[#allocation20_spill] sm:$0xff] }
 0x128   :  { %v345_v50 = vpop.f32.mrf.mxu0 }
 0x129   :  { %v346_v51 = vadd.f32 %v4435_v0, %v345_v50 }
 0x12a   :  { %v3876_v52 = vpop.eup %3875  ;;  %v3123_v54 = vpop.f32.mrf.mxu0 }
 0x12b   :  { %v349_v55 = vmul.f32 %v3876_v52, %v346_v51  ;;  %v3878_v60 = vpop.eup %3877 }
 0x12c   :  { %v352_v61 = vsub.f32 1.0, %v3878_v60  ;;  %v354_v27 = vmul.f32 %v3878_v60, %v4282_v32  ;;  %v5347_v60 = vld [vmem:[#allocation18_spill] sm:$0xff] }
 0x12d   :  { %v350_v56 = vadd.f32 %v349_v55, %v124_v53  ;;  %v5346_v53 = vmov 0.0  }
 0x12f   :  { %3879 = vtanh.f32 %v350_v56 }
 0x13c   :  { %v3880_v31 = vpop.eup %3879 }
 0x13d   :  { %v353_v29 = vmul.f32 %v3880_v31, %v352_v61  ;;  %v5348_v61 = vld [vmem:[#allocation19_spill] sm:$0xff] }
 0x13f   :  { %v4441_v50 = vadd.f32 %v354_v27, %v353_v29 }
 0x141   :  { %v357_v51 = vcombine.high %v4441_v50, %v4441_v50  ;;  %v364_v52 = vrot.slane %v4441_v50, %v4439_v63  ;;  %3157 = vmatmul.mubr.f32.vlgmr.msra.gmra.mxu1 %v4441_v50  ;;  %3192 = vmatmul.mubr.f32.vlgmr.msra.gmra.mxu0 %v4441_v50 }
 0x142   :  { %3195 = vmatpush3.msra.mxu1 %v4286_v33  ;;  %3226 = vmatprep.mubr.msk.f32.mxu1 %vm4114_vm0, %v5346_v53 }
 0x143   :  { %v371_v31 = vrot.slane %v357_v51, %v4439_v63  ;;  %v372_v32 = vcombine.high %v364_v52, %v364_v52  ;;  %v380_v27 = vrot.slane %v364_v52, %v4439_v63  ;;  %2565 = vst.sshfl [vmem:[#allocation8] sm:$0x1 pattern:$0x73625140] %v364_v52  ;;  %3196 = vmatprep.subr.mxu1 %v5346_v53  ;;  %v5350_v51 = vld [vmem:[#allocation21_spill] sm:$0xff]  ;;  %v423_v52 = vld [vmem:[#allocation2 + $0x18] sm:$0xff] }
 0x144   :  { %3230 = vmatpush3.msra.mxu0 %v4165_v1  ;;  %3197 = vmatpush3.msra.mxu1 %v4295_v35 }
 0x145   :  { %3231 = vmatprep.subr.mxu0 %v5346_v53  ;;  %v373_v29 = vcombine.high %v371_v31, %v371_v31  ;;  %v387_v34 = vrot.slane %v371_v31, %v4439_v63  ;;  %v394_v54 = vrot.slane %v372_v32, %v4439_v63  ;;  %v402_v55 = vcombine.high %v380_v27, %v380_v27 }
 0x146   :  { %2566 = vst.sshfl [vmem:[#allocation8 + $0x8] sm:$0x1 pattern:$0x73625140] %v372_v32  ;;  %3198 = vmatprep.subr.mxu1 %v5346_v53  ;;  %3232 = vmatpush3.msra.mxu0 %v4167_v2 }
 0x147   :  { %2567 = vst.sshfl [vmem:[#allocation8 + $0x20] sm:$0x1 pattern:$0x73625140] %v371_v31  ;;  %3199 = vmatpush3.msra.mxu1 %v4300_v36  ;;  %v401_v56 = vrot.slane %v373_v29, %v4439_v63  ;;  %v403_v57 = vcombine.high %v387_v34, %v387_v34  ;;  %v404_v58 = vcombine.high %v394_v54, %v394_v54  ;;  %416 = vst [vmem:[#allocation8 + $0x10] sm:$0x1] %v402_v55 }
 0x148   :  { %2568 = vst.sshfl [vmem:[#allocation8 + $0x28] sm:$0x1 pattern:$0x73625140] %v373_v29  ;;  %3200 = vmatprep.subr.mxu1 %v5346_v53  ;;  %3233 = vmatprep.subr.mxu0 %v5346_v53  ;;  %v424_v55 = vld [vmem:[#allocation2 + $0x20] sm:$0xff] }
 0x149   :  { %3201 = vmatpush3.msra.mxu1 %v4306_v37  ;;  %3234 = vmatpush3.msra.mxu0 %v4171_v3  ;;  %v405_v59 = vcombine.high %v401_v56, %v401_v56  ;;  %417 = vst [vmem:[#allocation8 + $0x18] sm:$0x1] %v404_v58  ;;  %420 = vst [vmem:[#allocation8 + $0x30] sm:$0x1] %v403_v57 }
 0x14a   :  { %3202 = vmatprep.subr.mxu1 %v5346_v53  ;;  %3235 = vmatprep.subr.mxu0 %v5346_v53 }
 0x14b   :  { %3203 = vmatpush3.msra.mxu1 %v4313_v38  ;;  %3236 = vmatpush3.msra.mxu0 %v4180_v6  ;;  %421 = vst [vmem:[#allocation8 + $0x38] sm:$0x1] %v405_v59 }
 0x14c   :  { %3204 = vmatprep.subr.mxu1 %v5346_v53  ;;  %3237 = vmatprep.subr.mxu0 %v5346_v53 }
 0x14d   :  { %3205 = vmatpush3.msra.mxu1 %v4319_v39  ;;  %3238 = vmatpush3.msra.mxu0 %v4188_v8 }
 0x14e   :  { %3206 = vmatprep.subr.mxu1 %v5346_v53  ;;  %3239 = vmatprep.subr.mxu0 %v5346_v53 }
 0x14f   :  { %3207 = vmatpush3.msra.mxu1 %v4325_v40  ;;  %3240 = vmatpush3.msra.mxu0 %v4196_v10 }
 0x150   :  { %3208 = vmatprep.subr.mxu1 %v5346_v53  ;;  %3241 = vmatprep.subr.mxu0 %v5346_v53 }
 0x151   :  { %3209 = vmatpush3.msra.mxu1 %v4331_v41  ;;  %3242 = vmatpush3.msra.mxu0 %v4204_v12 }
 0x152   :  { %3210 = vmatprep.subr.mxu1 %v5346_v53  ;;  %3243 = vmatprep.subr.mxu0 %v5346_v53 }
 0x153   :  { %3211 = vmatpush3.msra.mxu1 %v4337_v42  ;;  %3244 = vmatpush3.msra.mxu0 %v4212_v14 }
 0x154   :  { %3212 = vmatprep.subr.mxu1 %v5346_v53  ;;  %3245 = vmatprep.subr.mxu0 %v5346_v53 }
 0x155   :  { %3213 = vmatpush3.msra.mxu1 %v4343_v43  ;;  %3246 = vmatpush3.msra.mxu0 %v4220_v16 }
 0x156   :  { %3214 = vmatprep.subr.mxu1 %v5346_v53  ;;  %3247 = vmatprep.subr.mxu0 %v5346_v53 }
 0x157   :  { %3215 = vmatpush3.msra.mxu1 %v4349_v44  ;;  %3248 = vmatpush3.msra.mxu0 %v4228_v18 }
 0x158   :  { %3216 = vmatprep.subr.mxu1 %v5346_v53  ;;  %3249 = vmatprep.subr.mxu0 %v5346_v53 }
 0x159   :  { %3217 = vmatpush3.msra.mxu1 %v4355_v45  ;;  %3250 = vmatpush3.msra.mxu0 %v4236_v20 }
 0x15a   :  { %3218 = vmatprep.subr.mxu1 %v5346_v53  ;;  %3251 = vmatprep.subr.mxu0 %v5346_v53 }
 0x15b   :  { %3219 = vmatpush3.msra.mxu1 %v4361_v46  ;;  %3252 = vmatpush3.msra.mxu0 %v4244_v22 }
 0x15c   :  { %3220 = vmatprep.subr.mxu1 %v5346_v53  ;;  %3253 = vmatprep.subr.mxu0 %v5346_v53 }
 0x15d   :  { %3221 = vmatpush3.msra.mxu1 %v4367_v47  ;;  %3254 = vmatpush3.msra.mxu0 %v4252_v24 }
 0x15e   :  { %3222 = vmatprep.subr.mxu1 %v5346_v53  ;;  %3255 = vmatprep.subr.mxu0 %v5346_v53 }
 0x15f   :  { %3223 = vmatpush3.msra.mxu1 %v4373_v48  ;;  %3256 = vmatpush3.msra.mxu0 %v4260_v26 }
 0x160   :  { %3224 = vmatprep.subr.mxu1 %v5346_v53  ;;  %3257 = vmatprep.subr.mxu0 %v5346_v53 }
 0x161   :  { %3225 = vmatpush3.msra.mxu1 %v4379_v49  ;;  %3258 = vmatpush3.msra.mxu0 %v4268_v28 }
 0x162   :  { %3227 = vmatmul.mubr.f32.vlgmr.msra.gmra.mxu1 %v4441_v50  ;;  %3264 = vmatprep.subr.mxu1 %v5346_v53 }
 0x163   :  { %3265 = vmatpush3.msra.mxu1 %v4173_v4  ;;  %3259 = vmatprep.subr.mxu0 %v5346_v53 }
 0x164   :  { %3266 = vmatprep.subr.mxu1 %v5346_v53  ;;  %3260 = vmatpush3.msra.mxu0 %v4276_v30 }
 0x165   :  { %3267 = vmatpush3.msra.mxu1 %v4177_v5  ;;  %3261 = vmatprep.mubr.msk.f32.mxu0 %vm4114_vm0, %v5346_v53 }
 0x166   :  { %3268 = vmatprep.subr.mxu1 %v5346_v53  ;;  %3296 = vmatprep.mubr.msk.f32.mxu1 %vm4114_vm0, %v5346_v53 }
 0x167   :  { %3269 = vmatpush3.msra.mxu1 %v4183_v7  ;;  %3299 = vmatprep.subr.mxu0 %v5346_v53 }
 0x168   :  { %3270 = vmatprep.subr.mxu1 %v5346_v53 }
 0x169   :  { %3271 = vmatpush3.msra.mxu1 %v4191_v9 }
 0x16a   :  { %3272 = vmatprep.subr.mxu1 %v5346_v53 }
 0x16b   :  { %3273 = vmatpush3.msra.mxu1 %v4199_v11 }
 0x16c   :  { %3274 = vmatprep.subr.mxu1 %v5346_v53 }
 0x16d   :  { %3275 = vmatpush3.msra.mxu1 %v4207_v13 }
 0x16e   :  { %3276 = vmatprep.subr.mxu1 %v5346_v53 }
 0x16f   :  { %3277 = vmatpush3.msra.mxu1 %v4215_v15 }
 0x170   :  { %3278 = vmatprep.subr.mxu1 %v5346_v53 }
 0x171   :  { %3279 = vmatpush3.msra.mxu1 %v4223_v17 }
 0x172   :  { %3280 = vmatprep.subr.mxu1 %v5346_v53 }
 0x173   :  { %3281 = vmatpush3.msra.mxu1 %v4231_v19 }
 0x174   :  { %3282 = vmatprep.subr.mxu1 %v5346_v53 }
 0x175   :  { %3283 = vmatpush3.msra.mxu1 %v4239_v21 }
 0x176   :  { %3284 = vmatprep.subr.mxu1 %v5346_v53 }
 0x177   :  { %3285 = vmatpush3.msra.mxu1 %v4247_v23  ;;  %v425_v23 = vld [vmem:[#allocation2 + $0x28] sm:$0xff] }
 0x178   :  { %3286 = vmatprep.subr.mxu1 %v5346_v53 }
 0x179   :  { %3287 = vmatpush3.msra.mxu1 %v4255_v25 }
 0x17a   :  { %3288 = vmatprep.subr.mxu1 %v5346_v53 }
 0x17b   :  { %3289 = vmatpush3.msra.mxu1 %v5347_v60 }
 0x17c   :  { %3290 = vmatprep.subr.mxu1 %v5346_v53 }
 0x17d   :  { %3291 = vmatpush3.msra.mxu1 %v5348_v61 }
 0x17e   :  { %3292 = vmatprep.subr.mxu1 %v5346_v53 }
 0x17f   :  { %3293 = vmatpush3.msra.mxu1 %v5349_v62 }
 0x180   :  { %3294 = vmatprep.subr.mxu1 %v5346_v53 }
 0x181   :  { %3295 = vmatpush3.msra.mxu1 %v5350_v51 }
 0x182   :  { %3334 = vmatprep.subr.mxu1 %v5346_v53 }
 0x201   :  { %v492_v31 = vpop.f32.mrf.mxu1  ;;  %v569_v32 = vpop.f32.mrf.mxu0 }
 0x202   :  { %v496_v27 = vadd.f32 %v492_v31, %v423_v52  ;;  %v573_v56 = vadd.f32 %v569_v32, %v424_v55 }
 0x203   :  { %v3158_v29 = vpop.f32.mrf.mxu1  ;;  %v3193_v34 = vpop.f32.mrf.mxu0 }
 0x204   :  { %v2569_v54 = vmul.f32 -1.442695, %v496_v27  ;;  %v2570_v57 = vmul.f32 -1.442695, %v573_v56 }
 0x206   :  { %3881 = vpow2.f32 %v2569_v54 }
 0x207   :  { %3883 = vpow2.f32 %v2570_v57 }
 0x213   :  { %v3882_v58 = vpop.eup %3881 }
 0x214   :  { %v500_v59 = vadd.f32 1.0, %v3882_v58  ;;  %v3884_v62 = vpop.eup %3883 }
 0x215   :  { %v577_v61 = vadd.f32 1.0, %v3884_v62 }
 0x216   :  { %3885 = vrcp.f32 %v500_v59 }
 0x217   :  { %3887 = vrcp.f32 %v577_v61 }
 0x222   :  { %v646_v51 = vpop.f32.mrf.mxu1 }
 0x223   :  { %v647_v60 = vadd.f32 %v4435_v0, %v646_v51  ;;  %v3886_v25 = vpop.eup %3885 }
 0x224   :  { %v3228_v21 = vpop.f32.mrf.mxu1  ;;  %v3888_v27 = vpop.eup %3887 }
 0x225   :  { %v650_v52 = vmul.f32 %v3886_v25, %v647_v60  ;;  %v653_v29 = vsub.f32 1.0, %v3888_v27  ;;  %v655_v54 = vmul.f32 %v3888_v27, %v4441_v50 }
 0x227   :  { %v651_v31 = vadd.f32 %v650_v52, %v425_v23  ;;  %v726_v52 = vld [vmem:[#allocation2 + $0x40] sm:$0xff] }
 0x229   :  { %3889 = vtanh.f32 %v651_v31 }
 0x236   :  { %v3890_v32 = vpop.eup %3889 }
 0x237   :  { %v654_v34 = vmul.f32 %v3890_v32, %v653_v29 }
 0x239   :  { %v4559_v55 = vadd.f32 %v655_v54, %v654_v34 }
 0x23b   :  { %v658_v62 = vcombine.high %v4559_v55, %v4559_v55  ;;  %v665_v51 = vrot.slane %v4559_v55, %v4439_v63  ;;  %3262 = vmatmul.mubr.f32.vlgmr.msra.gmra.mxu0 %v4559_v55  ;;  %3297 = vmatmul.mubr.f32.vlgmr.msra.gmra.mxu1 %v4559_v55 }
 0x23c   :  { %3300 = vmatpush3.msra.mxu0 %v4286_v33  ;;  %3331 = vmatprep.mubr.msk.f32.mxu0 %vm4114_vm0, %v5346_v53 }
 0x23d   :  { %v672_v21 = vrot.slane %v658_v62, %v4439_v63  ;;  %v673_v23 = vcombine.high %v665_v51, %v665_v51  ;;  %v681_v25 = vrot.slane %v665_v51, %v4439_v63  ;;  %2571 = vst.sshfl [vmem:[#allocation8 + $0x1] sm:$0x1 pattern:$0x73625140] %v665_v51  ;;  %3301 = vmatprep.subr.mxu0 %v5346_v53 }
 0x23e   :  { %3335 = vmatpush3.msra.mxu1 %v4165_v1  ;;  %3302 = vmatpush3.msra.mxu0 %v4295_v35 }
 0x23f   :  { %3336 = vmatprep.subr.mxu1 %v5346_v53  ;;  %v674_v50 = vcombine.high %v672_v21, %v672_v21  ;;  %v688_v60 = vrot.slane %v672_v21, %v4439_v63  ;;  %v695_v61 = vrot.slane %v673_v23, %v4439_v63  ;;  %v703_v56 = vcombine.high %v681_v25, %v681_v25 }
 0x240   :  { %2572 = vst.sshfl [vmem:[#allocation8 + $0x9] sm:$0x1 pattern:$0x73625140] %v673_v23  ;;  %3303 = vmatprep.subr.mxu0 %v5346_v53  ;;  %3337 = vmatpush3.msra.mxu1 %v4167_v2  ;;  %v5351_v2 = vld [vmem:[#allocation15_spill] sm:$0xff] }
 0x241   :  { %2573 = vst.sshfl [vmem:[#allocation8 + $0x21] sm:$0x1 pattern:$0x73625140] %v672_v21  ;;  %3304 = vmatpush3.msra.mxu0 %v4300_v36  ;;  %v702_v1 = vrot.slane %v674_v50, %v4439_v63  ;;  %v704_v57 = vcombine.high %v688_v60, %v688_v60  ;;  %v705_v58 = vcombine.high %v695_v61, %v695_v61  ;;  %717 = vst [vmem:[#allocation8 + $0x11] sm:$0x1] %v703_v56 }
 0x242   :  { %2574 = vst.sshfl [vmem:[#allocation8 + $0x29] sm:$0x1 pattern:$0x73625140] %v674_v50  ;;  %3305 = vmatprep.subr.mxu0 %v5346_v53  ;;  %3338 = vmatprep.subr.mxu1 %v5346_v53  ;;  %v4691_v61 = vld [vmem:[#allocation7 + $0x168] sm:$0xff] }
 0x243   :  { %3306 = vmatpush3.msra.mxu0 %v4306_v37  ;;  %3339 = vmatpush3.msra.mxu1 %v4171_v3  ;;  %v706_v59 = vcombine.high %v702_v1, %v702_v1  ;;  %718 = vst [vmem:[#allocation8 + $0x19] sm:$0x1] %v705_v58  ;;  %721 = vst [vmem:[#allocation8 + $0x31] sm:$0x1] %v704_v57  ;;  %v5352_v3 = vld [vmem:[#allocation16_spill] sm:$0xff] }
 0x244   :  { %3307 = vmatprep.subr.mxu0 %v5346_v53  ;;  %3340 = vmatprep.subr.mxu1 %v5346_v53  ;;  %v4700_v58 = vld [vmem:[#allocation7 + $0x150] sm:$0xff] }
 0x245   :  { %3308 = vmatpush3.msra.mxu0 %v4313_v38  ;;  %3341 = vmatpush3.msra.mxu1 %v4180_v6  ;;  %722 = vst [vmem:[#allocation8 + $0x39] sm:$0x1] %v706_v59  ;;  %v5355_v6 = vld [vmem:[#allocation19_spill] sm:$0xff] }
 0x246   :  { %3309 = vmatprep.subr.mxu0 %v5346_v53  ;;  %3342 = vmatprep.subr.mxu1 %v5346_v53 }
 0x247   :  { %3310 = vmatpush3.msra.mxu0 %v4319_v39  ;;  %3343 = vmatpush3.msra.mxu1 %v4188_v8  ;;  %v5357_v8 = vld [vmem:[#allocation21_spill] sm:$0xff] }
 0x248   :  { %3311 = vmatprep.subr.mxu0 %v5346_v53  ;;  %3344 = vmatprep.subr.mxu1 %v5346_v53 }
 0x249   :  { %3312 = vmatpush3.msra.mxu0 %v4325_v40  ;;  %3345 = vmatpush3.msra.mxu1 %v4196_v10 }
 0x24a   :  { %3313 = vmatprep.subr.mxu0 %v5346_v53  ;;  %3346 = vmatprep.subr.mxu1 %v5346_v53 }
 0x24b   :  { %3314 = vmatpush3.msra.mxu0 %v4331_v41  ;;  %3347 = vmatpush3.msra.mxu1 %v4204_v12 }
 0x24c   :  { %3315 = vmatprep.subr.mxu0 %v5346_v53  ;;  %3348 = vmatprep.subr.mxu1 %v5346_v53 }
 0x24d   :  { %3316 = vmatpush3.msra.mxu0 %v4337_v42  ;;  %3349 = vmatpush3.msra.mxu1 %v4212_v14 }
 0x24e   :  { %3317 = vmatprep.subr.mxu0 %v5346_v53  ;;  %3350 = vmatprep.subr.mxu1 %v5346_v53 }
 0x24f   :  { %3318 = vmatpush3.msra.mxu0 %v4343_v43  ;;  %3351 = vmatpush3.msra.mxu1 %v4220_v16  ;;  %v725_v16 = vld [vmem:[#allocation2 + $0x38] sm:$0xff] }
 0x250   :  { %3319 = vmatprep.subr.mxu0 %v5346_v53  ;;  %3352 = vmatprep.subr.mxu1 %v5346_v53 }
 0x251   :  { %3320 = vmatpush3.msra.mxu0 %v4349_v44  ;;  %3353 = vmatpush3.msra.mxu1 %v4228_v18 }
 0x252   :  { %3321 = vmatprep.subr.mxu0 %v5346_v53  ;;  %3354 = vmatprep.subr.mxu1 %v5346_v53 }
 0x253   :  { %3322 = vmatpush3.msra.mxu0 %v4355_v45  ;;  %3355 = vmatpush3.msra.mxu1 %v4236_v20 }
 0x254   :  { %3323 = vmatprep.subr.mxu0 %v5346_v53  ;;  %3356 = vmatprep.subr.mxu1 %v5346_v53 }
 0x255   :  { %3324 = vmatpush3.msra.mxu0 %v4361_v46  ;;  %3357 = vmatpush3.msra.mxu1 %v4244_v22 }
 0x256   :  { %3325 = vmatprep.subr.mxu0 %v5346_v53  ;;  %3358 = vmatprep.subr.mxu1 %v5346_v53 }
 0x257   :  { %3326 = vmatpush3.msra.mxu0 %v4367_v47  ;;  %3359 = vmatpush3.msra.mxu1 %v4252_v24 }
 0x258   :  { %3327 = vmatprep.subr.mxu0 %v5346_v53  ;;  %3360 = vmatprep.subr.mxu1 %v5346_v53 }
 0x259   :  { %3328 = vmatpush3.msra.mxu0 %v4373_v48  ;;  %3361 = vmatpush3.msra.mxu1 %v4260_v26 }
 0x25a   :  { %3329 = vmatprep.subr.mxu0 %v5346_v53  ;;  %3362 = vmatprep.subr.mxu1 %v5346_v53 }
 0x25b   :  { %3330 = vmatpush3.msra.mxu0 %v4379_v49  ;;  %3363 = vmatpush3.msra.mxu1 %v4268_v28 }
 0x25c   :  { %3332 = vmatmul.mubr.f32.vlgmr.msra.gmra.mxu0 %v4559_v55  ;;  %3369 = vmatprep.subr.mxu0 %v5346_v53 }
 0x25d   :  { %3370 = vmatpush3.msra.mxu0 %v4173_v4  ;;  %3364 = vmatprep.subr.mxu1 %v5346_v53  ;;  %v5353_v4 = vld [vmem:[#allocation17_spill] sm:$0xff] }
 0x25e   :  { %3371 = vmatprep.subr.mxu0 %v5346_v53  ;;  %3365 = vmatpush3.msra.mxu1 %v4276_v30 }
 0x25f   :  { %3372 = vmatpush3.msra.mxu0 %v4177_v5  ;;  %3366 = vmatprep.mubr.msk.f32.mxu1 %vm4114_vm0, %v5346_v53  ;;  %v5354_v5 = vld [vmem:[#allocation18_spill] sm:$0xff] }
 0x260   :  { %3373 = vmatprep.subr.mxu0 %v5346_v53  ;;  %3401 = vmatprep.mubr.msk.f32.mxu0 %vm4114_vm0, %v5346_v53 }
 0x261   :  { %3374 = vmatpush3.msra.mxu0 %v4183_v7  ;;  %3404 = vmatprep.subr.mxu1 %v5346_v53  ;;  %v5356_v7 = vld [vmem:[#allocation20_spill] sm:$0xff] }
 0x262   :  { %3375 = vmatprep.subr.mxu0 %v5346_v53 }
 0x263   :  { %3376 = vmatpush3.msra.mxu0 %v4191_v9  ;;  %v724_v9 = vld [vmem:[#allocation2 + $0x30] sm:$0xff] }
 0x264   :  { %3377 = vmatprep.subr.mxu0 %v5346_v53 }
 0x265   :  { %3378 = vmatpush3.msra.mxu0 %v4199_v11 }
 0x266   :  { %3379 = vmatprep.subr.mxu0 %v5346_v53 }
 0x267   :  { %3380 = vmatpush3.msra.mxu0 %v4207_v13 }
 0x268   :  { %3381 = vmatprep.subr.mxu0 %v5346_v53 }
 0x269   :  { %3382 = vmatpush3.msra.mxu0 %v4215_v15 }
 0x26a   :  { %3383 = vmatprep.subr.mxu0 %v5346_v53 }
 0x26b   :  { %3384 = vmatpush3.msra.mxu0 %v4223_v17 }
 0x26c   :  { %3385 = vmatprep.subr.mxu0 %v5346_v53 }
 0x26d   :  { %3386 = vmatpush3.msra.mxu0 %v4231_v19 }
 0x26e   :  { %3387 = vmatprep.subr.mxu0 %v5346_v53 }
 0x26f   :  { %3388 = vmatpush3.msra.mxu0 %v5351_v2 }
 0x270   :  { %3389 = vmatprep.subr.mxu0 %v5346_v53 }
 0x271   :  { %3390 = vmatpush3.msra.mxu0 %v5352_v3  ;;  %v4707_v3 = vld [vmem:[#allocation7 + $0x138] sm:$0xff] }
 0x272   :  { %3391 = vmatprep.subr.mxu0 %v5346_v53 }
 0x273   :  { %3392 = vmatpush3.msra.mxu0 %v5353_v4  ;;  %v4713_v4 = vld [vmem:[#allocation7 + $0x120] sm:$0xff] }
 0x274   :  { %3393 = vmatprep.subr.mxu0 %v5346_v53 }
 0x275   :  { %3394 = vmatpush3.msra.mxu0 %v5354_v5  ;;  %v4784_v5 = vld [vmem:[#allocation7 + $0x170] sm:$0xff] }
 0x276   :  { %3395 = vmatprep.subr.mxu0 %v5346_v53 }
 0x277   :  { %3396 = vmatpush3.msra.mxu0 %v5355_v6  ;;  %v4800_v6 = vld [vmem:[#allocation7 + $0x140] sm:$0xff] }
 0x278   :  { %3397 = vmatprep.subr.mxu0 %v5346_v53 }
 0x279   :  { %3398 = vmatpush3.msra.mxu0 %v5356_v7  ;;  %v4805_v7 = vld [vmem:[#allocation7 + $0x128] sm:$0xff] }
 0x27a   :  { %3399 = vmatprep.subr.mxu0 %v5346_v53 }
 0x27b   :  { %3400 = vmatpush3.msra.mxu0 %v5357_v8  ;;  %v4809_v8 = vld [vmem:[#allocation7 + $0x110] sm:$0xff] }
 0x27c   :  { %3439 = vmatprep.subr.mxu0 %v5346_v53 }
 0x2fb   :  { %v793_v10 = vpop.f32.mrf.mxu0  ;;  %v870_v11 = vpop.f32.mrf.mxu1 }
 0x2fc   :  { %v797_v12 = vadd.f32 %v793_v10, %v724_v9  ;;  %v874_v17 = vadd.f32 %v870_v11, %v725_v16  ;;  %v4813_v9 = vld [vmem:[#allocation7 + $0xf8] sm:$0xff]  ;;  %v4817_v10 = vld [vmem:[#allocation7 + $0xe0] sm:$0xff]  ;;  %v4821_v11 = vld [vmem:[#allocation7 + $0xc8] sm:$0xff] }
 0x2fd   :  { %v3263_v13 = vpop.f32.mrf.mxu0  ;;  %v3298_v14 = vpop.f32.mrf.mxu1  ;;  %v4841_v16 = vld [vmem:[#allocation7 + $0x50] sm:$0xff] }
 0x2fe   :  { %v2575_v15 = vmul.f32 -1.442695, %v797_v12  ;;  %v2576_v18 = vmul.f32 -1.442695, %v874_v17  ;;  %v4825_v12 = vld [vmem:[#allocation7 + $0xb0] sm:$0xff]  ;;  %v4829_v13 = vld [vmem:[#allocation7 + $0x98] sm:$0xff] }
 0x2ff   :  { %5358 = vst [vmem:[#allocation15_spill] sm:$0xff] %v4829_v13  ;;  %v4833_v14 = vld [vmem:[#allocation7 + $0x80] sm:$0xff]  ;;  %5361 = vst [vmem:[#allocation18_spill] sm:$0xff] %v4841_v16  ;;  %v4845_v17 = vld [vmem:[#allocation7 + $0x38] sm:$0xff] }
 0x300   :  { %3891 = vpow2.f32 %v2575_v15  ;;  %5359 = vst [vmem:[#allocation16_spill] sm:$0xff] %v4833_v14  ;;  %v4837_v15 = vld [vmem:[#allocation7 + $0x68] sm:$0xff]  ;;  %5362 = vst [vmem:[#allocation19_spill] sm:$0xff] %v4845_v17 }
 0x301   :  { %3893 = vpow2.f32 %v2576_v18  ;;  %5360 = vst [vmem:[#allocation17_spill] sm:$0xff] %v4837_v15  ;;  %v4849_v18 = vld [vmem:[#allocation7 + $0x20] sm:$0xff] }
 0x302   :  { %5363 = vst [vmem:[#allocation20_spill] sm:$0xff] %v4849_v18 }
 0x30d   :  { %v3892_v19 = vpop.eup %3891 }
 0x30e   :  { %v801_v20 = vadd.f32 1.0, %v3892_v19  ;;  %v3894_v22 = vpop.eup %3893  ;;  %v4853_v19 = vld [vmem:[#allocation7 + $0x8] sm:$0xff] }
 0x30f   :  { %v878_v24 = vadd.f32 1.0, %v3894_v22  ;;  %5364 = vst [vmem:[#allocation21_spill] sm:$0xff] %v4853_v19 }
 0x310   :  { %3895 = vrcp.f32 %v801_v20  ;;  %v1025_v20 = vld [vmem:[#allocation2 + $0x48] sm:$0xff] }
 0x311   :  { %3897 = vrcp.f32 %v878_v24 }
 0x31c   :  { %v947_v26 = vpop.f32.mrf.mxu0 }
 0x31d   :  { %v948_v28 = vadd.f32 %v4435_v0, %v947_v26  ;;  %v3896_v30 = vpop.eup %3895 }
 0x31e   :  { %v3333_v31 = vpop.f32.mrf.mxu0  ;;  %v3898_v32 = vpop.eup %3897 }
 0x31f   :  { %v951_v27 = vmul.f32 %v3896_v30, %v948_v28  ;;  %v954_v34 = vsub.f32 1.0, %v3898_v32  ;;  %v956_v51 = vmul.f32 %v3898_v32, %v4559_v55  ;;  %v1026_v31 = vld [vmem:[#allocation2 + $0x50] sm:$0xff] }
 0x321   :  { %v952_v29 = vadd.f32 %v951_v27, %v726_v52 }
 0x323   :  { %3899 = vtanh.f32 %v952_v29 }
 0x330   :  { %v3900_v54 = vpop.eup %3899 }
 0x331   :  { %v955_v62 = vmul.f32 %v3900_v54, %v954_v34 }
 0x333   :  { %v4677_v21 = vadd.f32 %v956_v51, %v955_v62 }
 0x335   :  { %v959_v23 = vcombine.high %v4677_v21, %v4677_v21  ;;  %v966_v25 = vrot.slane %v4677_v21, %v4439_v63  ;;  %3367 = vmatmul.mubr.f32.vlgmr.msra.gmra.mxu1 %v4677_v21  ;;  %3402 = vmatmul.mubr.f32.vlgmr.msra.gmra.mxu0 %v4677_v21 }
 0x336   :  { %3405 = vmatpush3.msra.mxu1 %v4286_v33  ;;  %3436 = vmatprep.mubr.msk.f32.mxu1 %vm4114_vm0, %v5346_v53 }
 0x337   :  { %v973_v50 = vrot.slane %v959_v23, %v4439_v63  ;;  %v974_v55 = vcombine.high %v966_v25, %v966_v25  ;;  %v982_v60 = vrot.slane %v966_v25, %v4439_v63  ;;  %2577 = vst.sshfl [vmem:[#allocation8 + $0x2] sm:$0x1 pattern:$0x73625140] %v966_v25  ;;  %3406 = vmatprep.subr.mxu1 %v5346_v53 }
 0x338   :  { %3440 = vmatpush3.msra.mxu0 %v4691_v61  ;;  %3407 = vmatpush3.msra.mxu1 %v4295_v35 }
 0x339   :  { %3441 = vmatprep.subr.mxu0 %v5346_v53  ;;  %v975_v33 = vcombine.high %v973_v50, %v973_v50  ;;  %v989_v56 = vrot.slane %v973_v50, %v4439_v63  ;;  %v996_v1 = vrot.slane %v974_v55, %v4439_v63  ;;  %v1004_v57 = vcombine.high %v982_v60, %v982_v60 }
 0x33a   :  { %2578 = vst.sshfl [vmem:[#allocation8 + $0xa] sm:$0x1 pattern:$0x73625140] %v974_v55  ;;  %3408 = vmatprep.subr.mxu1 %v5346_v53  ;;  %3442 = vmatpush3.msra.mxu0 %v4700_v58 }
 0x33b   :  { %2579 = vst.sshfl [vmem:[#allocation8 + $0x22] sm:$0x1 pattern:$0x73625140] %v973_v50  ;;  %3409 = vmatpush3.msra.mxu1 %v4300_v36  ;;  %v1003_v35 = vrot.slane %v975_v33, %v4439_v63  ;;  %v1005_v59 = vcombine.high %v989_v56, %v989_v56  ;;  %v1006_v2 = vcombine.high %v996_v1, %v996_v1  ;;  %1018 = vst [vmem:[#allocation8 + $0x12] sm:$0x1] %v1004_v57 }
 0x33c   :  { %2580 = vst.sshfl [vmem:[#allocation8 + $0x2a] sm:$0x1 pattern:$0x73625140] %v975_v33  ;;  %3410 = vmatprep.subr.mxu1 %v5346_v53  ;;  %3443 = vmatprep.subr.mxu0 %v5346_v53  ;;  %v1027_v50 = vld [vmem:[#allocation2 + $0x58] sm:$0xff] }
 0x33d   :  { %3411 = vmatpush3.msra.mxu1 %v4306_v37  ;;  %3444 = vmatpush3.msra.mxu0 %v4707_v3  ;;  %v1007_v36 = vcombine.high %v1003_v35, %v1003_v35  ;;  %1019 = vst [vmem:[#allocation8 + $0x1a] sm:$0x1] %v1006_v2  ;;  %1022 = vst [vmem:[#allocation8 + $0x32] sm:$0x1] %v1005_v59  ;;  %v4719_v37 = vld [vmem:[#allocation7 + $0x108] sm:$0xff] }
 0x33e   :  { %3412 = vmatprep.subr.mxu1 %v5346_v53  ;;  %3445 = vmatprep.subr.mxu0 %v5346_v53 }
 0x33f   :  { %3413 = vmatpush3.msra.mxu1 %v4313_v38  ;;  %3446 = vmatpush3.msra.mxu0 %v4713_v4  ;;  %1023 = vst [vmem:[#allocation8 + $0x3a] sm:$0x1] %v1007_v36  ;;  %v4725_v38 = vld [vmem:[#allocation7 + $0xf0] sm:$0xff] }
 0x340   :  { %3414 = vmatprep.subr.mxu1 %v5346_v53  ;;  %3447 = vmatprep.subr.mxu0 %v5346_v53 }
 0x341   :  { %3415 = vmatpush3.msra.mxu1 %v4319_v39  ;;  %3448 = vmatpush3.msra.mxu0 %v4719_v37  ;;  %v4731_v39 = vld [vmem:[#allocation7 + $0xd8] sm:$0xff] }
 0x342   :  { %3416 = vmatprep.subr.mxu1 %v5346_v53  ;;  %3449 = vmatprep.subr.mxu0 %v5346_v53 }
 0x343   :  { %3417 = vmatpush3.msra.mxu1 %v4325_v40  ;;  %3450 = vmatpush3.msra.mxu0 %v4725_v38  ;;  %v4737_v40 = vld [vmem:[#allocation7 + $0xc0] sm:$0xff] }
 0x344   :  { %3418 = vmatprep.subr.mxu1 %v5346_v53  ;;  %3451 = vmatprep.subr.mxu0 %v5346_v53 }
 0x345   :  { %3419 = vmatpush3.msra.mxu1 %v4331_v41  ;;  %3452 = vmatpush3.msra.mxu0 %v4731_v39  ;;  %v4743_v41 = vld [vmem:[#allocation7 + $0xa8] sm:$0xff] }
 0x346   :  { %3420 = vmatprep.subr.mxu1 %v5346_v53  ;;  %3453 = vmatprep.subr.mxu0 %v5346_v53 }
 0x347   :  { %3421 = vmatpush3.msra.mxu1 %v4337_v42  ;;  %3454 = vmatpush3.msra.mxu0 %v4737_v40  ;;  %v4749_v42 = vld [vmem:[#allocation7 + $0x90] sm:$0xff] }
 0x348   :  { %3422 = vmatprep.subr.mxu1 %v5346_v53  ;;  %3455 = vmatprep.subr.mxu0 %v5346_v53 }
 0x349   :  { %3423 = vmatpush3.msra.mxu1 %v4343_v43  ;;  %3456 = vmatpush3.msra.mxu0 %v4743_v41  ;;  %v4755_v43 = vld [vmem:[#allocation7 + $0x78] sm:$0xff] }
 0x34a   :  { %3424 = vmatprep.subr.mxu1 %v5346_v53  ;;  %3457 = vmatprep.subr.mxu0 %v5346_v53 }
 0x34b   :  { %3425 = vmatpush3.msra.mxu1 %v4349_v44  ;;  %3458 = vmatpush3.msra.mxu0 %v4749_v42  ;;  %v4761_v44 = vld [vmem:[#allocation7 + $0x60] sm:$0xff] }
 0x34c   :  { %3426 = vmatprep.subr.mxu1 %v5346_v53  ;;  %3459 = vmatprep.subr.mxu0 %v5346_v53 }
 0x34d   :  { %3427 = vmatpush3.msra.mxu1 %v4355_v45  ;;  %3460 = vmatpush3.msra.mxu0 %v4755_v43  ;;  %v4767_v45 = vld [vmem:[#allocation7 + $0x48] sm:$0xff] }
 0x34e   :  { %3428 = vmatprep.subr.mxu1 %v5346_v53  ;;  %3461 = vmatprep.subr.mxu0 %v5346_v53 }
 0x34f   :  { %3429 = vmatpush3.msra.mxu1 %v4361_v46  ;;  %3462 = vmatpush3.msra.mxu0 %v4761_v44  ;;  %v4773_v46 = vld [vmem:[#allocation7 + $0x30] sm:$0xff] }
 0x350   :  { %3430 = vmatprep.subr.mxu1 %v5346_v53  ;;  %3463 = vmatprep.subr.mxu0 %v5346_v53 }
 0x351   :  { %3431 = vmatpush3.msra.mxu1 %v4367_v47  ;;  %3464 = vmatpush3.msra.mxu0 %v4767_v45  ;;  %v4779_v47 = vld [vmem:[#allocation7 + $0x18] sm:$0xff] }
 0x352   :  { %3432 = vmatprep.subr.mxu1 %v5346_v53  ;;  %3465 = vmatprep.subr.mxu0 %v5346_v53 }
 0x353   :  { %3433 = vmatpush3.msra.mxu1 %v4373_v48  ;;  %3466 = vmatpush3.msra.mxu0 %v4773_v46  ;;  %v4789_v48 = vld [vmem:[#allocation7] sm:$0xff] }
 0x354   :  { %3434 = vmatprep.subr.mxu1 %v5346_v53  ;;  %3467 = vmatprep.subr.mxu0 %v5346_v53 }
 0x355   :  { %3435 = vmatpush3.msra.mxu1 %v4379_v49  ;;  %3468 = vmatpush3.msra.mxu0 %v4779_v47  ;;  %v4792_v49 = vld [vmem:[#allocation7 + $0x158] sm:$0xff] }
 0x356   :  { %3437 = vmatmul.mubr.f32.vlgmr.msra.gmra.mxu1 %v4677_v21  ;;  %3474 = vmatprep.subr.mxu1 %v5346_v53 }
 0x357   :  { %3475 = vmatpush3.msra.mxu1 %v4784_v5  ;;  %3469 = vmatprep.subr.mxu0 %v5346_v53 }
 0x358   :  { %3476 = vmatprep.subr.mxu1 %v5346_v53  ;;  %3470 = vmatpush3.msra.mxu0 %v4789_v48 }
 0x359   :  { %3477 = vmatpush3.msra.mxu1 %v4792_v49  ;;  %3471 = vmatprep.mubr.msk.f32.mxu0 %vm4114_vm0, %v5346_v53 }
 0x35a   :  { %3478 = vmatprep.subr.mxu1 %v5346_v53  ;;  %3506 = vmatprep.mubr.msk.f32.mxu1 %vm4114_vm0, %v5346_v53 }
 0x35b   :  { %3479 = vmatpush3.msra.mxu1 %v4800_v6  ;;  %3509 = vmatprep.subr.mxu0 %v5346_v53 }
 0x35c   :  { %3480 = vmatprep.subr.mxu1 %v5346_v53 }
 0x35d   :  { %3481 = vmatpush3.msra.mxu1 %v4805_v7 }
 0x35e   :  { %3482 = vmatprep.subr.mxu1 %v5346_v53 }
 0x35f   :  { %3483 = vmatpush3.msra.mxu1 %v4809_v8 }
 0x360   :  { %3484 = vmatprep.subr.mxu1 %v5346_v53 }
 0x361   :  { %3485 = vmatpush3.msra.mxu1 %v4813_v9 }
 0x362   :  { %3486 = vmatprep.subr.mxu1 %v5346_v53 }
 0x363   :  { %3487 = vmatpush3.msra.mxu1 %v4817_v10 }
 0x364   :  { %3488 = vmatprep.subr.mxu1 %v5346_v53 }
 0x365   :  { %3489 = vmatpush3.msra.mxu1 %v4821_v11 }
 0x366   :  { %3490 = vmatprep.subr.mxu1 %v5346_v53 }
 0x367   :  { %3491 = vmatpush3.msra.mxu1 %v4825_v12 }
 0x368   :  { %3492 = vmatprep.subr.mxu1 %v5346_v53 }
 0x369   :  { %3493 = vmatpush3.msra.mxu1 %v4829_v13 }
 0x36a   :  { %3494 = vmatprep.subr.mxu1 %v5346_v53 }
 0x36b   :  { %3495 = vmatpush3.msra.mxu1 %v4833_v14 }
 0x36c   :  { %3496 = vmatprep.subr.mxu1 %v5346_v53 }
 0x36d   :  { %3497 = vmatpush3.msra.mxu1 %v4837_v15 }
 0x36e   :  { %3498 = vmatprep.subr.mxu1 %v5346_v53 }
 0x36f   :  { %3499 = vmatpush3.msra.mxu1 %v4841_v16 }
 0x370   :  { %3500 = vmatprep.subr.mxu1 %v5346_v53 }
 0x371   :  { %3501 = vmatpush3.msra.mxu1 %v4845_v17 }
 0x372   :  { %3502 = vmatprep.subr.mxu1 %v5346_v53 }
 0x373   :  { %3503 = vmatpush3.msra.mxu1 %v4849_v18 }
 0x374   :  { %3504 = vmatprep.subr.mxu1 %v5346_v53 }
 0x375   :  { %3505 = vmatpush3.msra.mxu1 %v4853_v19 }
 0x376   :  { %3544 = vmatprep.subr.mxu1 %v5346_v53 }
 0x3f5   :  { %v1094_v22 = vpop.f32.mrf.mxu1  ;;  %v1171_v24 = vpop.f32.mrf.mxu0 }
 0x3f6   :  { %v1098_v26 = vadd.f32 %v1094_v22, %v1025_v20  ;;  %v1175_v27 = vadd.f32 %v1171_v24, %v1026_v31  ;;  %v4867_v20 = vld [vmem:[#allocation7 + $0x178] sm:$0xff] }
 0x3f7   :  { %v3368_v28 = vpop.f32.mrf.mxu1  ;;  %v3403_v30 = vpop.f32.mrf.mxu0 }
 0x3f8   :  { %v2581_v52 = vmul.f32 -1.442695, %v1098_v26  ;;  %v2582_v29 = vmul.f32 -1.442695, %v1175_v27  ;;  %v4876_v26 = vld [vmem:[#allocation7 + $0x160] sm:$0xff]  ;;  %v4883_v27 = vld [vmem:[#allocation7 + $0x148] sm:$0xff] }
 0x3fa   :  { %3901 = vpow2.f32 %v2581_v52 }
 0x3fb   :  { %3903 = vpow2.f32 %v2582_v29 }
 0x407   :  { %v3902_v32 = vpop.eup %3901 }
 0x408   :  { %v1102_v34 = vadd.f32 1.0, %v3902_v32  ;;  %v3904_v54 = vpop.eup %3903 }
 0x409   :  { %v1179_v62 = vadd.f32 1.0, %v3904_v54  ;;  %v4890_v54 = vld [vmem:[#allocation7 + $0x130] sm:$0xff] }
 0x40a   :  { %3905 = vrcp.f32 %v1102_v34 }
 0x40b   :  { %3907 = vrcp.f32 %v1179_v62 }
 0x416   :  { %v1248_v51 = vpop.f32.mrf.mxu1 }
 0x417   :  { %v1249_v23 = vadd.f32 %v4435_v0, %v1248_v51  ;;  %v3906_v25 = vpop.eup %3905  ;;  %v4896_v51 = vld [vmem:[#allocation7 + $0x118] sm:$0xff] }
 0x418   :  { %v3438_v55 = vpop.f32.mrf.mxu1  ;;  %v3908_v56 = vpop.eup %3907 }
 0x419   :  { %v1252_v60 = vmul.f32 %v3906_v25, %v1249_v23  ;;  %v1255_v1 = vsub.f32 1.0, %v3908_v56  ;;  %v1257_v59 = vmul.f32 %v3908_v56, %v4677_v21  ;;  %v4902_v23 = vld [vmem:[#allocation7 + $0x100] sm:$0xff]  ;;  %v4908_v25 = vld [vmem:[#allocation7 + $0xe8] sm:$0xff]  ;;  %v4920_v55 = vld [vmem:[#allocation7 + $0xb8] sm:$0xff] }
 0x41a   :  { %v4938_v56 = vld [vmem:[#allocation7 + $0x70] sm:$0xff] }
 0x41b   :  { %v1253_v33 = vadd.f32 %v1252_v60, %v1027_v50  ;;  %v4914_v50 = vld [vmem:[#allocation7 + $0xd0] sm:$0xff]  ;;  %v4926_v60 = vld [vmem:[#allocation7 + $0xa0] sm:$0xff] }
 0x41d   :  { %3909 = vtanh.f32 %v1253_v33  ;;  %v4932_v33 = vld [vmem:[#allocation7 + $0x88] sm:$0xff] }
 0x42a   :  { %v3910_v57 = vpop.eup %3909 }
 0x42b   :  { %v1256_v35 = vmul.f32 %v3910_v57, %v1255_v1  ;;  %v4944_v1 = vld [vmem:[#allocation7 + $0x58] sm:$0xff]  ;;  %v4950_v57 = vld [vmem:[#allocation7 + $0x40] sm:$0xff] }
 0x42d   :  { %v4859_v2 = vadd.f32 %v1257_v59, %v1256_v35  ;;  %v4956_v35 = vld [vmem:[#allocation7 + $0x28] sm:$0xff]  ;;  %v4962_v59 = vld [vmem:[#allocation7 + $0x10] sm:$0xff] }
 0x42f   :  { %v1260_v36 = vcombine.high %v4859_v2, %v4859_v2  ;;  %v1267_v0 = vrot.slane %v4859_v2, %v4439_v63  ;;  %3472 = vmatmul.mubr.f32.vlgmr.msra.gmra.mxu0 %v4859_v2  ;;  %3507 = vmatmul.mubr.f32.vlgmr.msra.gmra.mxu1 %v4859_v2 }
 0x430   :  { %3510 = vmatpush3.msra.mxu0 %v4867_v20  ;;  %3541 = vmatprep.mubr.msk.f32.mxu0 %vm4114_vm0, %v5346_v53 }
 0x431   :  { %v1274_v21 = vrot.slane %v1260_v36, %v4439_v63  ;;  %v1275_v22 = vcombine.high %v1267_v0, %v1267_v0  ;;  %v1283_v24 = vrot.slane %v1267_v0, %v4439_v63  ;;  %2583 = vst.sshfl [vmem:[#allocation8 + $0x3] sm:$0x1 pattern:$0x73625140] %v1267_v0  ;;  %3511 = vmatprep.subr.mxu0 %v5346_v53  ;;  %v1326_v36 = vld [vmem:[#allocation2 + $0x60] sm:$0xff] }
 0x432   :  { %3545 = vmatpush3.msra.mxu1 %v4691_v61  ;;  %3512 = vmatpush3.msra.mxu0 %v4876_v26 }
 0x433   :  { %3546 = vmatprep.subr.mxu1 %v5346_v53  ;;  %v1276_v28 = vcombine.high %v1274_v21, %v1274_v21  ;;  %v1290_v30 = vrot.slane %v1274_v21, %v4439_v63  ;;  %v1297_v52 = vrot.slane %v1275_v22, %v4439_v63  ;;  %v1305_v31 = vcombine.high %v1283_v24, %v1283_v24 }
 0x434   :  { %2584 = vst.sshfl [vmem:[#allocation8 + $0xb] sm:$0x1 pattern:$0x73625140] %v1275_v22  ;;  %3513 = vmatprep.subr.mxu0 %v5346_v53  ;;  %3547 = vmatpush3.msra.mxu1 %v4700_v58 }
 0x435   :  { %2585 = vst.sshfl [vmem:[#allocation8 + $0x23] sm:$0x1 pattern:$0x73625140] %v1274_v21  ;;  %3514 = vmatpush3.msra.mxu0 %v4883_v27  ;;  %v1304_v29 = vrot.slane %v1276_v28, %v4439_v63  ;;  %v1306_v32 = vcombine.high %v1290_v30, %v1290_v30  ;;  %v1307_v34 = vcombine.high %v1297_v52, %v1297_v52  ;;  %1319 = vst [vmem:[#allocation8 + $0x13] sm:$0x1] %v1305_v31 }
 0x436   :  { %2586 = vst.sshfl [vmem:[#allocation8 + $0x2b] sm:$0x1 pattern:$0x73625140] %v1276_v28  ;;  %3515 = vmatprep.subr.mxu0 %v5346_v53  ;;  %3548 = vmatprep.subr.mxu1 %v5346_v53  ;;  %v1327_v52 = vld [vmem:[#allocation2 + $0x68] sm:$0xff] }
 0x437   :  { %3516 = vmatpush3.msra.mxu0 %v4890_v54  ;;  %3549 = vmatpush3.msra.mxu1 %v4707_v3  ;;  %v1308_v62 = vcombine.high %v1304_v29, %v1304_v29  ;;  %1320 = vst [vmem:[#allocation8 + $0x1b] sm:$0x1] %v1307_v34  ;;  %1323 = vst [vmem:[#allocation8 + $0x33] sm:$0x1] %v1306_v32 }
 0x438   :  { %3517 = vmatprep.subr.mxu0 %v5346_v53  ;;  %3550 = vmatprep.subr.mxu1 %v5346_v53 }
 0x439   :  { %3518 = vmatpush3.msra.mxu0 %v4896_v51  ;;  %3551 = vmatpush3.msra.mxu1 %v4713_v4  ;;  %1324 = vst [vmem:[#allocation8 + $0x3b] sm:$0x1] %v1308_v62 }
 0x43a   :  { %3519 = vmatprep.subr.mxu0 %v5346_v53  ;;  %3552 = vmatprep.subr.mxu1 %v5346_v53 }
 0x43b   :  { %3520 = vmatpush3.msra.mxu0 %v4902_v23  ;;  %3553 = vmatpush3.msra.mxu1 %v4719_v37 }
 0x43c   :  { %3521 = vmatprep.subr.mxu0 %v5346_v53  ;;  %3554 = vmatprep.subr.mxu1 %v5346_v53 }
 0x43d   :  { %3522 = vmatpush3.msra.mxu0 %v4908_v25  ;;  %3555 = vmatpush3.msra.mxu1 %v4725_v38 }
 0x43e   :  { %3523 = vmatprep.subr.mxu0 %v5346_v53  ;;  %3556 = vmatprep.subr.mxu1 %v5346_v53 }
 0x43f   :  { %3524 = vmatpush3.msra.mxu0 %v4914_v50  ;;  %3557 = vmatpush3.msra.mxu1 %v4731_v39 }
 0x440   :  { %3525 = vmatprep.subr.mxu0 %v5346_v53  ;;  %3558 = vmatprep.subr.mxu1 %v5346_v53 }
 0x441   :  { %3526 = vmatpush3.msra.mxu0 %v4920_v55  ;;  %3559 = vmatpush3.msra.mxu1 %v4737_v40 }
 0x442   :  { %3527 = vmatprep.subr.mxu0 %v5346_v53  ;;  %3560 = vmatprep.subr.mxu1 %v5346_v53 }
 0x443   :  { %3528 = vmatpush3.msra.mxu0 %v4926_v60  ;;  %3561 = vmatpush3.msra.mxu1 %v4743_v41 }
 0x444   :  { %3529 = vmatprep.subr.mxu0 %v5346_v53  ;;  %3562 = vmatprep.subr.mxu1 %v5346_v53 }
 0x445   :  { %3530 = vmatpush3.msra.mxu0 %v4932_v33  ;;  %3563 = vmatpush3.msra.mxu1 %v4749_v42 }
 0x446   :  { %3531 = vmatprep.subr.mxu0 %v5346_v53  ;;  %3564 = vmatprep.subr.mxu1 %v5346_v53 }
 0x447   :  { %3532 = vmatpush3.msra.mxu0 %v4938_v56  ;;  %3565 = vmatpush3.msra.mxu1 %v4755_v43 }
 0x448   :  { %3533 = vmatprep.subr.mxu0 %v5346_v53  ;;  %3566 = vmatprep.subr.mxu1 %v5346_v53 }
 0x449   :  { %3534 = vmatpush3.msra.mxu0 %v4944_v1  ;;  %3567 = vmatpush3.msra.mxu1 %v4761_v44 }
 0x44a   :  { %3535 = vmatprep.subr.mxu0 %v5346_v53  ;;  %3568 = vmatprep.subr.mxu1 %v5346_v53 }
 0x44b   :  { %3536 = vmatpush3.msra.mxu0 %v4950_v57  ;;  %3569 = vmatpush3.msra.mxu1 %v4767_v45 }
 0x44c   :  { %3537 = vmatprep.subr.mxu0 %v5346_v53  ;;  %3570 = vmatprep.subr.mxu1 %v5346_v53 }
 0x44d   :  { %3538 = vmatpush3.msra.mxu0 %v4956_v35  ;;  %3571 = vmatpush3.msra.mxu1 %v4773_v46 }
 0x44e   :  { %3539 = vmatprep.subr.mxu0 %v5346_v53  ;;  %3572 = vmatprep.subr.mxu1 %v5346_v53 }
 0x44f   :  { %3540 = vmatpush3.msra.mxu0 %v4962_v59  ;;  %3573 = vmatpush3.msra.mxu1 %v4779_v47 }
 0x450   :  { %3542 = vmatmul.mubr.f32.vlgmr.msra.gmra.mxu0 %v4859_v2  ;;  %3579 = vmatprep.subr.mxu0 %v5346_v53 }
 0x451   :  { %3580 = vmatpush3.msra.mxu0 %v4784_v5  ;;  %3574 = vmatprep.subr.mxu1 %v5346_v53 }
 0x452   :  { %3581 = vmatprep.subr.mxu0 %v5346_v53  ;;  %3575 = vmatpush3.msra.mxu1 %v4789_v48 }
 0x453   :  { %3582 = vmatpush3.msra.mxu0 %v4792_v49  ;;  %3576 = vmatprep.mubr.msk.f32.mxu1 %vm4114_vm0, %v5346_v53 }
 0x454   :  { %3583 = vmatprep.subr.mxu0 %v5346_v53  ;;  %3611 = vmatprep.mubr.msk.f32.mxu0 %vm4114_vm0, %v5346_v53 }
 0x455   :  { %3584 = vmatpush3.msra.mxu0 %v4800_v6  ;;  %3614 = vmatprep.subr.mxu1 %v5346_v53 }
 0x456   :  { %3585 = vmatprep.subr.mxu0 %v5346_v53 }
 0x457   :  { %3586 = vmatpush3.msra.mxu0 %v4805_v7 }
 0x458   :  { %3587 = vmatprep.subr.mxu0 %v5346_v53 }
 0x459   :  { %3588 = vmatpush3.msra.mxu0 %v4809_v8 }
 0x45a   :  { %3589 = vmatprep.subr.mxu0 %v5346_v53 }
 0x45b   :  { %3590 = vmatpush3.msra.mxu0 %v4813_v9 }
 0x45c   :  { %3591 = vmatprep.subr.mxu0 %v5346_v53 }
 0x45d   :  { %3592 = vmatpush3.msra.mxu0 %v4817_v10 }
 0x45e   :  { %3593 = vmatprep.subr.mxu0 %v5346_v53 }
 0x45f   :  { %3594 = vmatpush3.msra.mxu0 %v4821_v11 }
 0x460   :  { %3595 = vmatprep.subr.mxu0 %v5346_v53 }
 0x461   :  { %3596 = vmatpush3.msra.mxu0 %v4825_v12 }
 0x462   :  { %3597 = vmatprep.subr.mxu0 %v5346_v53 }
 0x463   :  { %3598 = vmatpush3.msra.mxu0 %v4829_v13 }
 0x464   :  { %3599 = vmatprep.subr.mxu0 %v5346_v53 }
 0x465   :  { %3600 = vmatpush3.msra.mxu0 %v4833_v14 }
 0x466   :  { %3601 = vmatprep.subr.mxu0 %v5346_v53 }
 0x467   :  { %3602 = vmatpush3.msra.mxu0 %v4837_v15 }
 0x468   :  { %3603 = vmatprep.subr.mxu0 %v5346_v53 }
 0x469   :  { %3604 = vmatpush3.msra.mxu0 %v4841_v16 }
 0x46a   :  { %3605 = vmatprep.subr.mxu0 %v5346_v53 }
 0x46b   :  { %3606 = vmatpush3.msra.mxu0 %v4845_v17  ;;  %v5010_v17 = vld [vmem:[%s5313_s3] ss:$0 sm:$0xff]  ;;  %s4116_s3 = smov [#allocation9]  }
 0x46c   :  { %3607 = vmatprep.subr.mxu0 %v5346_v53  ;;  %s2548_s11 = sshll.u32 %s4116_s3, 4  ;;  %s2549_s11 = int_to_ptr.vmem [resolvable:$true] %s2548_s11 }
 0x46d   :  { %3608 = vmatpush3.msra.mxu0 %v4849_v18  ;;  %s4060_s12 = scalar_lea.vmem %s2549_s11, 128  ;;  %p4065_p2 = scmp.lt.s32.totalorder %s2549_s11, %s2549_s11 }
 0x46e   :  { %3609 = vmatprep.subr.mxu0 %v5346_v53  ;;  %p4061_p1 = scmp.ne.s32.totalorder %s2549_s11, %s4060_s12  ;;  %p4066_p3 = scmp.lt.s32.totalorder %s4060_s12, %s4060_s12 }
 0x46f   :  { %3610 = vmatpush3.msra.mxu0 %v4853_v19 }
 0x470   :  { %3649 = vmatprep.subr.mxu0 %v5346_v53  ;;  %p4067_p4 = por %p4066_p3, %p4065_p2 }
 0x472   :  { %p4068_p5 = pnand %p4067_p4, %p4061_p1 }
 0x4ef   :  { %v1395_v0 = vpop.f32.mrf.mxu0  ;;  %v1472_v21 = vpop.f32.mrf.mxu1 }
 0x4f0   :  { %v1399_v22 = vadd.f32 %v1395_v0, %v1326_v36  ;;  %v1476_v31 = vadd.f32 %v1472_v21, %v1327_v52 }
 0x4f1   :  { %v3473_v24 = vpop.f32.mrf.mxu0  ;;  %v3508_v28 = vpop.f32.mrf.mxu1 }
 0x4f2   :  { %v2587_v30 = vmul.f32 -1.442695, %v1399_v22  ;;  %v2588_v29 = vmul.f32 -1.442695, %v1476_v31  ;;  %v1328_v22 = vld [vmem:[#allocation2 + $0x70] sm:$0xff] }
 0x4f4   :  { %3911 = vpow2.f32 %v2587_v30 }
 0x4f5   :  { %3913 = vpow2.f32 %v2588_v29 }
 0x501   :  { %v3912_v32 = vpop.eup %3911 }
 0x502   :  { %v1403_v34 = vadd.f32 1.0, %v3912_v32  ;;  %v3914_v62 = vpop.eup %3913 }
 0x503   :  { %v1480_v18 = vadd.f32 1.0, %v3914_v62 }
 0x504   :  { %3915 = vrcp.f32 %v1403_v34 }
 0x505   :  { %3917 = vrcp.f32 %v1480_v18 }
 0x510   :  { %v1549_v19 = vpop.f32.mrf.mxu0 }
 0x511   :  { %v1550_v36 = vadd.f32 %v5010_v17, %v1549_v19  ;;  %v3916_v0 = vpop.eup %3915 }
 0x512   :  { %v3543_v24 = vpop.f32.mrf.mxu0  ;;  %v3918_v30 = vpop.eup %3917 }
 0x513   :  { %v1553_v21 = vmul.f32 %v3916_v0, %v1550_v36  ;;  %v1556_v52 = vsub.f32 1.0, %v3918_v30  ;;  %v1558_v32 = vmul.f32 %v3918_v30, %v4859_v2 }
 0x515   :  { %v1554_v28 = vadd.f32 %v1553_v21, %v1328_v22 }
 0x517   :  { %3919 = vtanh.f32 %v1554_v28 }
 0x524   :  { %v3920_v31 = vpop.eup %3919 }
 0x525   :  { %v1557_v29 = vmul.f32 %v3920_v31, %v1556_v52 }
 0x527   :  { %v5014_v34 = vadd.f32 %v1558_v32, %v1557_v29  ;;  %v5365_v29 = vld [vmem:[#allocation19_spill] sm:$0xff]  ;;  %v5366_v32 = vld [vmem:[#allocation20_spill] sm:$0xff] }
 0x529   :  { %v1561_v62 = vcombine.high %v5014_v34, %v5014_v34  ;;  %v1568_v19 = vrot.slane %v5014_v34, %v4439_v63  ;;  %3577 = vmatmul.mubr.f32.vlgmr.msra.gmra.mxu1 %v5014_v34  ;;  %3612 = vmatmul.mubr.f32.vlgmr.msra.gmra.mxu0 %v5014_v34 }
 0x52a   :  { %3615 = vmatpush3.msra.mxu1 %v4867_v20  ;;  %3646 = vmatprep.mubr.msk.f32.mxu1 %vm4114_vm0, %v5346_v53 }
 0x52b   :  { %v1575_v18 = vrot.slane %v1561_v62, %v4439_v63  ;;  %v1576_v2 = vcombine.high %v1568_v19, %v1568_v19  ;;  %v1584_v36 = vrot.slane %v1568_v19, %v4439_v63  ;;  %2589 = vst.sshfl [vmem:[#allocation8 + $0x4] sm:$0x1 pattern:$0x73625140] %v1568_v19  ;;  %3616 = vmatprep.subr.mxu1 %v5346_v53  ;;  %v5367_v62 = vld [vmem:[#allocation21_spill] sm:$0xff]  ;;  %v1627_v19 = vld [vmem:[#allocation2 + $0x78] sm:$0xff] }
 0x52c   :  { %3650 = vmatpush3.msra.mxu0 %v4691_v61  ;;  %3617 = vmatpush3.msra.mxu1 %v4876_v26 }
 0x52d   :  { %3651 = vmatprep.subr.mxu0 %v5346_v53  ;;  %v1577_v0 = vcombine.high %v1575_v18, %v1575_v18  ;;  %v1591_v22 = vrot.slane %v1575_v18, %v4439_v63  ;;  %v1598_v24 = vrot.slane %v1576_v2, %v4439_v63  ;;  %v1606_v21 = vcombine.high %v1584_v36, %v1584_v36 }
 0x52e   :  { %2590 = vst.sshfl [vmem:[#allocation8 + $0xc] sm:$0x1 pattern:$0x73625140] %v1576_v2  ;;  %3618 = vmatprep.subr.mxu1 %v5346_v53  ;;  %3652 = vmatpush3.msra.mxu0 %v4700_v58 }
 0x52f   :  { %2591 = vst.sshfl [vmem:[#allocation8 + $0x24] sm:$0x1 pattern:$0x73625140] %v1575_v18  ;;  %3619 = vmatpush3.msra.mxu1 %v4883_v27  ;;  %v1605_v28 = vrot.slane %v1577_v0, %v4439_v63  ;;  %v1607_v30 = vcombine.high %v1591_v22, %v1591_v22  ;;  %v1608_v52 = vcombine.high %v1598_v24, %v1598_v24  ;;  %1620 = vst [vmem:[#allocation8 + $0x14] sm:$0x1] %v1606_v21 }
 0x530   :  { %2592 = vst.sshfl [vmem:[#allocation8 + $0x2c] sm:$0x1 pattern:$0x73625140] %v1577_v0  ;;  %3620 = vmatprep.subr.mxu1 %v5346_v53  ;;  %3653 = vmatprep.subr.mxu0 %v5346_v53  ;;  %v1628_v21 = vld [vmem:[#allocation2 + $0x80] sm:$0xff] }
 0x531   :  { %3621 = vmatpush3.msra.mxu1 %v4890_v54  ;;  %3654 = vmatpush3.msra.mxu0 %v4707_v3  ;;  %v1609_v31 = vcombine.high %v1605_v28, %v1605_v28  ;;  %1621 = vst [vmem:[#allocation8 + $0x1c] sm:$0x1] %v1608_v52  ;;  %1624 = vst [vmem:[#allocation8 + $0x34] sm:$0x1] %v1607_v30 }
 0x532   :  { %3622 = vmatprep.subr.mxu1 %v5346_v53  ;;  %3655 = vmatprep.subr.mxu0 %v5346_v53 }
 0x533   :  { %3623 = vmatpush3.msra.mxu1 %v4896_v51  ;;  %3656 = vmatpush3.msra.mxu0 %v4713_v4  ;;  %1625 = vst [vmem:[#allocation8 + $0x3c] sm:$0x1] %v1609_v31 }
 0x534   :  { %3624 = vmatprep.subr.mxu1 %v5346_v53  ;;  %3657 = vmatprep.subr.mxu0 %v5346_v53 }
 0x535   :  { %3625 = vmatpush3.msra.mxu1 %v4902_v23  ;;  %3658 = vmatpush3.msra.mxu0 %v4719_v37 }
 0x536   :  { %3626 = vmatprep.subr.mxu1 %v5346_v53  ;;  %3659 = vmatprep.subr.mxu0 %v5346_v53 }
 0x537   :  { %3627 = vmatpush3.msra.mxu1 %v4908_v25  ;;  %3660 = vmatpush3.msra.mxu0 %v4725_v38 }
 0x538   :  { %3628 = vmatprep.subr.mxu1 %v5346_v53  ;;  %3661 = vmatprep.subr.mxu0 %v5346_v53 }
 0x539   :  { %3629 = vmatpush3.msra.mxu1 %v4914_v50  ;;  %3662 = vmatpush3.msra.mxu0 %v4731_v39 }
 0x53a   :  { %3630 = vmatprep.subr.mxu1 %v5346_v53  ;;  %3663 = vmatprep.subr.mxu0 %v5346_v53 }
 0x53b   :  { %3631 = vmatpush3.msra.mxu1 %v4920_v55  ;;  %3664 = vmatpush3.msra.mxu0 %v4737_v40 }
 0x53c   :  { %3632 = vmatprep.subr.mxu1 %v5346_v53  ;;  %3665 = vmatprep.subr.mxu0 %v5346_v53 }
 0x53d   :  { %3633 = vmatpush3.msra.mxu1 %v4926_v60  ;;  %3666 = vmatpush3.msra.mxu0 %v4743_v41 }
 0x53e   :  { %3634 = vmatprep.subr.mxu1 %v5346_v53  ;;  %3667 = vmatprep.subr.mxu0 %v5346_v53 }
 0x53f   :  { %3635 = vmatpush3.msra.mxu1 %v4932_v33  ;;  %3668 = vmatpush3.msra.mxu0 %v4749_v42 }
 0x540   :  { %3636 = vmatprep.subr.mxu1 %v5346_v53  ;;  %3669 = vmatprep.subr.mxu0 %v5346_v53 }
 0x541   :  { %3637 = vmatpush3.msra.mxu1 %v4938_v56  ;;  %3670 = vmatpush3.msra.mxu0 %v4755_v43 }
 0x542   :  { %3638 = vmatprep.subr.mxu1 %v5346_v53  ;;  %3671 = vmatprep.subr.mxu0 %v5346_v53 }
 0x543   :  { %3639 = vmatpush3.msra.mxu1 %v4944_v1  ;;  %3672 = vmatpush3.msra.mxu0 %v4761_v44 }
 0x544   :  { %3640 = vmatprep.subr.mxu1 %v5346_v53  ;;  %3673 = vmatprep.subr.mxu0 %v5346_v53 }
 0x545   :  { %3641 = vmatpush3.msra.mxu1 %v4950_v57  ;;  %3674 = vmatpush3.msra.mxu0 %v4767_v45 }
 0x546   :  { %3642 = vmatprep.subr.mxu1 %v5346_v53  ;;  %3675 = vmatprep.subr.mxu0 %v5346_v53 }
 0x547   :  { %3643 = vmatpush3.msra.mxu1 %v4956_v35  ;;  %3676 = vmatpush3.msra.mxu0 %v4773_v46 }
 0x548   :  { %3644 = vmatprep.subr.mxu1 %v5346_v53  ;;  %3677 = vmatprep.subr.mxu0 %v5346_v53 }
 0x549   :  { %3645 = vmatpush3.msra.mxu1 %v4962_v59  ;;  %3678 = vmatpush3.msra.mxu0 %v4779_v47 }
 0x54a   :  { %3647 = vmatmul.mubr.f32.vlgmr.msra.gmra.mxu1 %v5014_v34  ;;  %3684 = vmatprep.subr.mxu1 %v5346_v53 }
 0x54b   :  { %3685 = vmatpush3.msra.mxu1 %v4784_v5  ;;  %3679 = vmatprep.subr.mxu0 %v5346_v53 }
 0x54c   :  { %3686 = vmatprep.subr.mxu1 %v5346_v53  ;;  %3680 = vmatpush3.msra.mxu0 %v4789_v48 }
 0x54d   :  { %3687 = vmatpush3.msra.mxu1 %v4792_v49  ;;  %3681 = vmatprep.mubr.msk.f32.mxu0 %vm4114_vm0, %v5346_v53 }
 0x54e   :  { %3688 = vmatprep.subr.mxu1 %v5346_v53  ;;  %3716 = vmatprep.mubr.msk.f32.mxu1 %vm4114_vm0, %v5346_v53 }
 0x54f   :  { %3689 = vmatpush3.msra.mxu1 %v4800_v6  ;;  %3719 = vmatprep.subr.mxu0 %v5346_v53 }
 0x550   :  { %3690 = vmatprep.subr.mxu1 %v5346_v53 }
 0x551   :  { %3691 = vmatpush3.msra.mxu1 %v4805_v7 }
 0x552   :  { %3692 = vmatprep.subr.mxu1 %v5346_v53 }
 0x553   :  { %3693 = vmatpush3.msra.mxu1 %v4809_v8 }
 0x554   :  { %3694 = vmatprep.subr.mxu1 %v5346_v53 }
 0x555   :  { %3695 = vmatpush3.msra.mxu1 %v4813_v9 }
 0x556   :  { %3696 = vmatprep.subr.mxu1 %v5346_v53 }
 0x557   :  { %3697 = vmatpush3.msra.mxu1 %v4817_v10 }
 0x558   :  { %3698 = vmatprep.subr.mxu1 %v5346_v53 }
 0x559   :  { %3699 = vmatpush3.msra.mxu1 %v4821_v11 }
 0x55a   :  { %3700 = vmatprep.subr.mxu1 %v5346_v53 }
 0x55b   :  { %3701 = vmatpush3.msra.mxu1 %v4825_v12 }
 0x55c   :  { %3702 = vmatprep.subr.mxu1 %v5346_v53 }
 0x55d   :  { %3703 = vmatpush3.msra.mxu1 %v4829_v13 }
 0x55e   :  { %3704 = vmatprep.subr.mxu1 %v5346_v53 }
 0x55f   :  { %3705 = vmatpush3.msra.mxu1 %v4833_v14  ;;  %v1629_v14 = vld [vmem:[#allocation2 + $0x88] sm:$0xff] }
 0x560   :  { %3706 = vmatprep.subr.mxu1 %v5346_v53 }
 0x561   :  { %3707 = vmatpush3.msra.mxu1 %v4837_v15 }
 0x562   :  { %3708 = vmatprep.subr.mxu1 %v5346_v53 }
 0x563   :  { %3709 = vmatpush3.msra.mxu1 %v4841_v16 }
 0x564   :  { %3710 = vmatprep.subr.mxu1 %v5346_v53 }
 0x565   :  { %3711 = vmatpush3.msra.mxu1 %v5365_v29 }
 0x566   :  { %3712 = vmatprep.subr.mxu1 %v5346_v53 }
 0x567   :  { %3713 = vmatpush3.msra.mxu1 %v5366_v32 }
 0x568   :  { %3714 = vmatprep.subr.mxu1 %v5346_v53 }
 0x569   :  { %3715 = vmatpush3.msra.mxu1 %v5367_v62 }
 0x56a   :  { %3754 = vmatprep.subr.mxu1 %v5346_v53 }
 0x5e9   :  { %v1696_v18 = vpop.f32.mrf.mxu1  ;;  %v1773_v2 = vpop.f32.mrf.mxu0 }
 0x5ea   :  { %v1700_v36 = vadd.f32 %v1696_v18, %v1627_v19  ;;  %v1777_v28 = vadd.f32 %v1773_v2, %v1628_v21 }
 0x5eb   :  { %v3578_v0 = vpop.f32.mrf.mxu1  ;;  %v3613_v22 = vpop.f32.mrf.mxu0 }
 0x5ec   :  { %v2593_v24 = vmul.f32 -1.442695, %v1700_v36  ;;  %v2594_v30 = vmul.f32 -1.442695, %v1777_v28 }
 0x5ee   :  { %3921 = vpow2.f32 %v2593_v24 }
 0x5ef   :  { %3923 = vpow2.f32 %v2594_v30 }
 0x5fb   :  { %v3922_v52 = vpop.eup %3921 }
 0x5fc   :  { %v1704_v31 = vadd.f32 1.0, %v3922_v52  ;;  %v3924_v32 = vpop.eup %3923 }
 0x5fd   :  { %v1781_v29 = vadd.f32 1.0, %v3924_v32 }
 0x5fe   :  { %3925 = vrcp.f32 %v1704_v31 }
 0x5ff   :  { %3927 = vrcp.f32 %v1781_v29 }
 0x60a   :  { %v1850_v62 = vpop.f32.mrf.mxu1 }
 0x60b   :  { %v1851_v16 = vadd.f32 %v5010_v17, %v1850_v62  ;;  %v3926_v15 = vpop.eup %3925 }
 0x60c   :  { %v3648_v13 = vpop.f32.mrf.mxu1  ;;  %v3928_v36 = vpop.eup %3927 }
 0x60d   :  { %v1854_v19 = vmul.f32 %v3926_v15, %v1851_v16  ;;  %v1857_v0 = vsub.f32 1.0, %v3928_v36  ;;  %v1859_v24 = vmul.f32 %v3928_v36, %v5014_v34 }
 0x60f   :  { %v1855_v18 = vadd.f32 %v1854_v19, %v1629_v14  ;;  %v1930_v19 = vld [vmem:[#allocation2 + $0xa0] sm:$0xff] }
 0x611   :  { %3929 = vtanh.f32 %v1855_v18 }
 0x61e   :  { %v3930_v2 = vpop.eup %3929 }
 0x61f   :  { %v1858_v22 = vmul.f32 %v3930_v2, %v1857_v0 }
 0x621   :  { %v5132_v21 = vadd.f32 %v1859_v24, %v1858_v22 }
 0x623   :  { %v1862_v32 = vcombine.high %v5132_v21, %v5132_v21  ;;  %v1869_v62 = vrot.slane %v5132_v21, %v4439_v63  ;;  %3682 = vmatmul.mubr.f32.vlgmr.msra.gmra.mxu0 %v5132_v21  ;;  %3717 = vmatmul.mubr.f32.vlgmr.msra.gmra.mxu1 %v5132_v21 }
 0x624   :  { %3720 = vmatpush3.msra.mxu0 %v4867_v20  ;;  %3751 = vmatprep.mubr.msk.f32.mxu0 %vm4114_vm0, %v5346_v53 }
 0x625   :  { %v1876_v13 = vrot.slane %v1862_v32, %v4439_v63  ;;  %v1877_v14 = vcombine.high %v1869_v62, %v1869_v62  ;;  %v1885_v15 = vrot.slane %v1869_v62, %v4439_v63  ;;  %2595 = vst.sshfl [vmem:[#allocation8 + $0x5] sm:$0x1 pattern:$0x73625140] %v1869_v62  ;;  %3721 = vmatprep.subr.mxu0 %v5346_v53 }
 0x626   :  { %3755 = vmatpush3.msra.mxu1 %v4691_v61  ;;  %3722 = vmatpush3.msra.mxu0 %v4876_v26 }
 0x627   :  { %3756 = vmatprep.subr.mxu1 %v5346_v53  ;;  %v1878_v16 = vcombine.high %v1876_v13, %v1876_v13  ;;  %v1892_v34 = vrot.slane %v1876_v13, %v4439_v63  ;;  %v1899_v29 = vrot.slane %v1877_v14, %v4439_v63  ;;  %v1907_v28 = vcombine.high %v1885_v15, %v1885_v15 }
 0x628   :  { %2596 = vst.sshfl [vmem:[#allocation8 + $0xd] sm:$0x1 pattern:$0x73625140] %v1877_v14  ;;  %3723 = vmatprep.subr.mxu0 %v5346_v53  ;;  %3757 = vmatpush3.msra.mxu1 %v4700_v58  ;;  %v5368_v58 = vld [vmem:[#allocation15_spill] sm:$0xff] }
 0x629   :  { %2597 = vst.sshfl [vmem:[#allocation8 + $0x25] sm:$0x1 pattern:$0x73625140] %v1876_v13  ;;  %3724 = vmatpush3.msra.mxu0 %v4883_v27  ;;  %v1906_v61 = vrot.slane %v1878_v16, %v4439_v63  ;;  %v1908_v30 = vcombine.high %v1892_v34, %v1892_v34  ;;  %v1909_v52 = vcombine.high %v1899_v29, %v1899_v29  ;;  %1921 = vst [vmem:[#allocation8 + $0x15] sm:$0x1] %v1907_v28 }
 0x62a   :  { %2598 = vst.sshfl [vmem:[#allocation8 + $0x2d] sm:$0x1 pattern:$0x73625140] %v1878_v16  ;;  %3725 = vmatprep.subr.mxu0 %v5346_v53  ;;  %3758 = vmatprep.subr.mxu1 %v5346_v53 }
 0x62b   :  { %3726 = vmatpush3.msra.mxu0 %v4890_v54  ;;  %3759 = vmatpush3.msra.mxu1 %v4707_v3  ;;  %v1910_v31 = vcombine.high %v1906_v61, %v1906_v61  ;;  %1922 = vst [vmem:[#allocation8 + $0x1d] sm:$0x1] %v1909_v52  ;;  %1925 = vst [vmem:[#allocation8 + $0x35] sm:$0x1] %v1908_v30  ;;  %v5369_v3 = vld [vmem:[#allocation16_spill] sm:$0xff] }
 0x62c   :  { %3727 = vmatprep.subr.mxu0 %v5346_v53  ;;  %3760 = vmatprep.subr.mxu1 %v5346_v53 }
 0x62d   :  { %3728 = vmatpush3.msra.mxu0 %v4896_v51  ;;  %3761 = vmatpush3.msra.mxu1 %v4713_v4  ;;  %1926 = vst [vmem:[#allocation8 + $0x3d] sm:$0x1] %v1910_v31  ;;  %v5370_v4 = vld [vmem:[#allocation17_spill] sm:$0xff] }
 0x62e   :  { %3729 = vmatprep.subr.mxu0 %v5346_v53  ;;  %3762 = vmatprep.subr.mxu1 %v5346_v53 }
 0x62f   :  { %3730 = vmatpush3.msra.mxu0 %v4902_v23  ;;  %3763 = vmatpush3.msra.mxu1 %v4719_v37  ;;  %v5371_v37 = vld [vmem:[#allocation18_spill] sm:$0xff] }
 0x630   :  { %3731 = vmatprep.subr.mxu0 %v5346_v53  ;;  %3764 = vmatprep.subr.mxu1 %v5346_v53 }
 0x631   :  { %3732 = vmatpush3.msra.mxu0 %v4908_v25  ;;  %3765 = vmatpush3.msra.mxu1 %v4725_v38  ;;  %v5372_v38 = vld [vmem:[#allocation19_spill] sm:$0xff] }
 0x632   :  { %3733 = vmatprep.subr.mxu0 %v5346_v53  ;;  %3766 = vmatprep.subr.mxu1 %v5346_v53 }
 0x633   :  { %3734 = vmatpush3.msra.mxu0 %v4914_v50  ;;  %3767 = vmatpush3.msra.mxu1 %v4731_v39  ;;  %v5373_v39 = vld [vmem:[#allocation20_spill] sm:$0xff] }
 0x634   :  { %3735 = vmatprep.subr.mxu0 %v5346_v53  ;;  %3768 = vmatprep.subr.mxu1 %v5346_v53 }
 0x635   :  { %3736 = vmatpush3.msra.mxu0 %v4920_v55  ;;  %3769 = vmatpush3.msra.mxu1 %v4737_v40  ;;  %v5374_v40 = vld [vmem:[#allocation21_spill] sm:$0xff] }
 0x636   :  { %3737 = vmatprep.subr.mxu0 %v5346_v53  ;;  %3770 = vmatprep.subr.mxu1 %v5346_v53 }
 0x637   :  { %3738 = vmatpush3.msra.mxu0 %v4926_v60  ;;  %3771 = vmatpush3.msra.mxu1 %v4743_v41  ;;  %v1928_v41 = vld [vmem:[#allocation2 + $0x90] sm:$0xff] }
 0x638   :  { %3739 = vmatprep.subr.mxu0 %v5346_v53  ;;  %3772 = vmatprep.subr.mxu1 %v5346_v53 }
 0x639   :  { %3740 = vmatpush3.msra.mxu0 %v4932_v33  ;;  %3773 = vmatpush3.msra.mxu1 %v4749_v42 }
 0x63a   :  { %3741 = vmatprep.subr.mxu0 %v5346_v53  ;;  %3774 = vmatprep.subr.mxu1 %v5346_v53 }
 0x63b   :  { %3742 = vmatpush3.msra.mxu0 %v4938_v56  ;;  %3775 = vmatpush3.msra.mxu1 %v4755_v43 }
 0x63c   :  { %3743 = vmatprep.subr.mxu0 %v5346_v53  ;;  %3776 = vmatprep.subr.mxu1 %v5346_v53 }
 0x63d   :  { %3744 = vmatpush3.msra.mxu0 %v4944_v1  ;;  %3777 = vmatpush3.msra.mxu1 %v4761_v44 }
 0x63e   :  { %3745 = vmatprep.subr.mxu0 %v5346_v53  ;;  %3778 = vmatprep.subr.mxu1 %v5346_v53 }
 0x63f   :  { %3746 = vmatpush3.msra.mxu0 %v4950_v57  ;;  %3779 = vmatpush3.msra.mxu1 %v4767_v45 }
 0x640   :  { %3747 = vmatprep.subr.mxu0 %v5346_v53  ;;  %3780 = vmatprep.subr.mxu1 %v5346_v53 }
 0x641   :  { %3748 = vmatpush3.msra.mxu0 %v4956_v35  ;;  %3781 = vmatpush3.msra.mxu1 %v4773_v46 }
 0x642   :  { %3749 = vmatprep.subr.mxu0 %v5346_v53  ;;  %3782 = vmatprep.subr.mxu1 %v5346_v53 }
 0x643   :  { %3750 = vmatpush3.msra.mxu0 %v4962_v59  ;;  %3783 = vmatpush3.msra.mxu1 %v4779_v47 }
 0x644   :  { %3752 = vmatmul.mubr.f32.vlgmr.msra.gmra.mxu0 %v5132_v21  ;;  %3789 = vmatprep.subr.mxu0 %v5346_v53 }
 0x645   :  { %3790 = vmatpush3.msra.mxu0 %v4784_v5  ;;  %3784 = vmatprep.subr.mxu1 %v5346_v53  ;;  %v1929_v5 = vld [vmem:[#allocation2 + $0x98] sm:$0xff] }
 0x646   :  { %3791 = vmatprep.subr.mxu0 %v5346_v53  ;;  %3785 = vmatpush3.msra.mxu1 %v4789_v48 }
 0x647   :  { %3792 = vmatpush3.msra.mxu0 %v4792_v49  ;;  %3786 = vmatprep.mubr.msk.f32.mxu1 %vm4114_vm0, %v5346_v53 }
 0x648   :  { %3793 = vmatprep.subr.mxu0 %v5346_v53  ;;  %3821 = vmatprep.mubr.msk.f32.mxu0 %vm4114_vm0, %v5346_v53 }
 0x649   :  { %3794 = vmatpush3.msra.mxu0 %v4800_v6  ;;  %3824 = vmatprep.subr.mxu1 %v5346_v53 }
 0x64a   :  { %3795 = vmatprep.subr.mxu0 %v5346_v53 }
 0x64b   :  { %3796 = vmatpush3.msra.mxu0 %v4805_v7 }
 0x64c   :  { %3797 = vmatprep.subr.mxu0 %v5346_v53 }
 0x64d   :  { %3798 = vmatpush3.msra.mxu0 %v4809_v8 }
 0x64e   :  { %3799 = vmatprep.subr.mxu0 %v5346_v53 }
 0x64f   :  { %3800 = vmatpush3.msra.mxu0 %v4813_v9 }
 0x650   :  { %3801 = vmatprep.subr.mxu0 %v5346_v53 }
 0x651   :  { %3802 = vmatpush3.msra.mxu0 %v4817_v10 }
 0x652   :  { %3803 = vmatprep.subr.mxu0 %v5346_v53 }
 0x653   :  { %3804 = vmatpush3.msra.mxu0 %v4821_v11 }
 0x654   :  { %3805 = vmatprep.subr.mxu0 %v5346_v53 }
 0x655   :  { %3806 = vmatpush3.msra.mxu0 %v4825_v12 }
 0x656   :  { %3807 = vmatprep.subr.mxu0 %v5346_v53 }
 0x657   :  { %3808 = vmatpush3.msra.mxu0 %v5368_v58 }
 0x658   :  { %3809 = vmatprep.subr.mxu0 %v5346_v53 }
 0x659   :  { %3810 = vmatpush3.msra.mxu0 %v5369_v3 }
 0x65a   :  { %3811 = vmatprep.subr.mxu0 %v5346_v53 }
 0x65b   :  { %3812 = vmatpush3.msra.mxu0 %v5370_v4  ;;  %v2231_v4 = vld [vmem:[#allocation2 + $0xb8] sm:$0xff] }
 0x65c   :  { %3813 = vmatprep.subr.mxu0 %v5346_v53 }
 0x65d   :  { %3814 = vmatpush3.msra.mxu0 %v5371_v37 }
 0x65e   :  { %3815 = vmatprep.subr.mxu0 %v5346_v53 }
 0x65f   :  { %3816 = vmatpush3.msra.mxu0 %v5372_v38 }
 0x660   :  { %3817 = vmatprep.subr.mxu0 %v5346_v53 }
 0x661   :  { %3818 = vmatpush3.msra.mxu0 %v5373_v39 }
 0x662   :  { %3819 = vmatprep.subr.mxu0 %v5346_v53 }
 0x663   :  { %3820 = vmatpush3.msra.mxu0 %v5374_v40 }
 0x6e3   :  { %v1997_v42 = vpop.f32.mrf.mxu0  ;;  %v2074_v43 = vpop.f32.mrf.mxu1 }
 0x6e4   :  { %v2001_v44 = vadd.f32 %v1997_v42, %v1928_v41  ;;  %v2078_v48 = vadd.f32 %v2074_v43, %v1929_v5 }
 0x6e5   :  { %v3683_v45 = vpop.f32.mrf.mxu0  ;;  %v3718_v46 = vpop.f32.mrf.mxu1 }
 0x6e6   :  { %v2599_v47 = vmul.f32 -1.442695, %v2001_v44  ;;  %v2600_v49 = vmul.f32 -1.442695, %v2078_v48 }
 0x6e8   :  { %3931 = vpow2.f32 %v2599_v47 }
 0x6e9   :  { %3933 = vpow2.f32 %v2600_v49 }
 0x6f5   :  { %v3932_v6 = vpop.eup %3931 }
 0x6f6   :  { %v2005_v7 = vadd.f32 1.0, %v3932_v6  ;;  %v3934_v8 = vpop.eup %3933 }
 0x6f7   :  { %v2082_v9 = vadd.f32 1.0, %v3934_v8 }
 0x6f8   :  { %3935 = vrcp.f32 %v2005_v7 }
 0x6f9   :  { %3937 = vrcp.f32 %v2082_v9 }
 0x704   :  { %v2151_v10 = vpop.f32.mrf.mxu0 }
 0x705   :  { %v2152_v11 = vadd.f32 %v5010_v17, %v2151_v10  ;;  %v3936_v12 = vpop.eup %3935 }
 0x706   :  { %v3753_v18 = vpop.f32.mrf.mxu0  ;;  %v3938_v2 = vpop.eup %3937 }
 0x707   :  { %v2155_v36 = vmul.f32 %v3936_v12, %v2152_v11  ;;  %v2158_v22 = vsub.f32 1.0, %v3938_v2  ;;  %v2160_v62 = vmul.f32 %v3938_v2, %v5132_v21 }
 0x709   :  { %v2156_v0 = vadd.f32 %v2155_v36, %v1930_v19 }
 0x70b   :  { %3939 = vtanh.f32 %v2156_v0 }
 0x718   :  { %v3940_v24 = vpop.eup %3939 }
 0x719   :  { %v2159_v32 = vmul.f32 %v3940_v24, %v2158_v22 }
 0x71b   :  { %v5249_v13 = vadd.f32 %v2160_v62, %v2159_v32 }
 0x71d   :  { %v2163_v14 = vcombine.high %v5249_v13, %v5249_v13  ;;  %v2170_v15 = vrot.slane %v5249_v13, %v4439_v63  ;;  %3787 = vmatmul.mubr.f32.vlgmr.msra.gmra.mxu1 %v5249_v13  ;;  %3822 = vmatmul.mubr.f32.vlgmr.msra.gmra.mxu0 %v5249_v13 }
 0x71e   :  { %3825 = vmatpush3.msra.mxu1 %v4867_v20  ;;  %3856 = vmatprep.mubr.msk.f32.mxu1 %vm4114_vm0, %v5346_v53 }
 0x71f   :  { %v2177_v16 = vrot.slane %v2163_v14, %v4439_v63  ;;  %v2178_v21 = vcombine.high %v2170_v15, %v2170_v15  ;;  %v2186_v34 = vrot.slane %v2170_v15, %v4439_v63  ;;  %2601 = vst.sshfl [vmem:[#allocation8 + $0x6] sm:$0x1 pattern:$0x73625140] %v2170_v15  ;;  %3826 = vmatprep.subr.mxu1 %v5346_v53 }
 0x720   :  { %3827 = vmatpush3.msra.mxu1 %v4876_v26 }
 0x721   :  { %v2179_v29 = vcombine.high %v2177_v16, %v2177_v16  ;;  %v2193_v28 = vrot.slane %v2177_v16, %v4439_v63  ;;  %v2200_v61 = vrot.slane %v2178_v21, %v4439_v63  ;;  %v2208_v30 = vcombine.high %v2186_v34, %v2186_v34  ;;  %2602 = vst.sshfl [vmem:[#allocation8 + $0xe] sm:$0x1 pattern:$0x73625140] %v2178_v21 }
 0x722   :  { %2603 = vst.sshfl [vmem:[#allocation8 + $0x26] sm:$0x1 pattern:$0x73625140] %v2177_v16  ;;  %3828 = vmatprep.subr.mxu1 %v5346_v53 }
 0x723   :  { %3829 = vmatpush3.msra.mxu1 %v4883_v27  ;;  %v2207_v20 = vrot.slane %v2179_v29, %v4439_v63  ;;  %v2209_v52 = vcombine.high %v2193_v28, %v2193_v28  ;;  %v2210_v31 = vcombine.high %v2200_v61, %v2200_v61  ;;  %2222 = vst [vmem:[#allocation8 + $0x16] sm:$0x1] %v2208_v30  ;;  %2604 = vst.sshfl [vmem:[#allocation8 + $0x2e] sm:$0x1 pattern:$0x73625140] %v2179_v29 }
 0x724   :  { %3830 = vmatprep.subr.mxu1 %v5346_v53  ;;  %v2229_v27 = vld [vmem:[#allocation2 + $0xa8] sm:$0xff] }
 0x725   :  { %3831 = vmatpush3.msra.mxu1 %v4890_v54  ;;  %v2211_v26 = vcombine.high %v2207_v20, %v2207_v20  ;;  %2223 = vst [vmem:[#allocation8 + $0x1e] sm:$0x1] %v2210_v31  ;;  %2226 = vst [vmem:[#allocation8 + $0x36] sm:$0x1] %v2209_v52 }
 0x726   :  { %3832 = vmatprep.subr.mxu1 %v5346_v53 }
 0x727   :  { %3833 = vmatpush3.msra.mxu1 %v4896_v51  ;;  %2227 = vst [vmem:[#allocation8 + $0x3e] sm:$0x1] %v2211_v26 }
 0x728   :  { %3834 = vmatprep.subr.mxu1 %v5346_v53 }
 0x729   :  { %3835 = vmatpush3.msra.mxu1 %v4902_v23 }
 0x72a   :  { %3836 = vmatprep.subr.mxu1 %v5346_v53 }
 0x72b   :  { %3837 = vmatpush3.msra.mxu1 %v4908_v25 }
 0x72c   :  { %3838 = vmatprep.subr.mxu1 %v5346_v53 }
 0x72d   :  { %3839 = vmatpush3.msra.mxu1 %v4914_v50 }
 0x72e   :  { %3840 = vmatprep.subr.mxu1 %v5346_v53 }
 0x72f   :  { %3841 = vmatpush3.msra.mxu1 %v4920_v55 }
 0x730   :  { %3842 = vmatprep.subr.mxu1 %v5346_v53 }
 0x731   :  { %3843 = vmatpush3.msra.mxu1 %v4926_v60  ;;  %v2230_v60 = vld [vmem:[#allocation2 + $0xb0] sm:$0xff] }
 0x732   :  { %3844 = vmatprep.subr.mxu1 %v5346_v53 }
 0x733   :  { %3845 = vmatpush3.msra.mxu1 %v4932_v33 }
 0x734   :  { %3846 = vmatprep.subr.mxu1 %v5346_v53 }
 0x735   :  { %3847 = vmatpush3.msra.mxu1 %v4938_v56 }
 0x736   :  { %3848 = vmatprep.subr.mxu1 %v5346_v53 }
 0x737   :  { %3849 = vmatpush3.msra.mxu1 %v4944_v1 }
 0x738   :  { %3850 = vmatprep.subr.mxu1 %v5346_v53 }
 0x739   :  { %3851 = vmatpush3.msra.mxu1 %v4950_v57 }
 0x73a   :  { %3852 = vmatprep.subr.mxu1 %v5346_v53 }
 0x73b   :  { %3853 = vmatpush3.msra.mxu1 %v4956_v35 }
 0x73c   :  { %3854 = vmatprep.subr.mxu1 %v5346_v53 }
 0x73d   :  { %3855 = vmatpush3.msra.mxu1 %v4962_v59 }
 0x73e   :  { %3857 = vmatmul.mubr.f32.vlgmr.msra.gmra.mxu1 %v5249_v13 }
 0x7dd   :  { %v2298_v54 = vpop.f32.mrf.mxu1  ;;  %v2375_v51 = vpop.f32.mrf.mxu0 }
 0x7de   :  { %v2302_v23 = vadd.f32 %v2298_v54, %v2229_v27  ;;  %v2379_v33 = vadd.f32 %v2375_v51, %v2230_v60 }
 0x7df   :  { %v3788_v25 = vpop.f32.mrf.mxu1  ;;  %v3823_v50 = vpop.f32.mrf.mxu0 }
 0x7e0   :  { %v2605_v55 = vmul.f32 -1.442695, %v2302_v23  ;;  %v2606_v56 = vmul.f32 -1.442695, %v2379_v33 }
 0x7e2   :  { %3941 = vpow2.f32 %v2605_v55 }
 0x7e3   :  { %3943 = vpow2.f32 %v2606_v56 }
 0x7ef   :  { %v3942_v1 = vpop.eup %3941 }
 0x7f0   :  { %v2306_v57 = vadd.f32 1.0, %v3942_v1  ;;  %v3944_v53 = vpop.eup %3943 }
 0x7f1   :  { %v2383_v35 = vadd.f32 1.0, %v3944_v53 }
 0x7f2   :  { %3945 = vrcp.f32 %v2306_v57 }
 0x7f3   :  { %3947 = vrcp.f32 %v2383_v35 }
 0x7fe   :  { %v2452_v59 = vpop.f32.mrf.mxu1 }
 0x7ff   :  { %v2453_v58 = vadd.f32 %v5010_v17, %v2452_v59  ;;  %v3946_v3 = vpop.eup %3945 }
 0x800   :  { %v3858_v37 = vpop.f32.mrf.mxu1  ;;  %v3948_v40 = vpop.eup %3947 }
 0x801   :  { %v2456_v38 = vmul.f32 %v3946_v3, %v2453_v58  ;;  %v2459_v41 = vsub.f32 1.0, %v3948_v40  ;;  %v2461_v43 = vmul.f32 %v3948_v40, %v5249_v13 }
 0x803   :  { %v2457_v39 = vadd.f32 %v2456_v38, %v2231_v4 }
 0x805   :  { %3949 = vtanh.f32 %v2457_v39 }
 0x812   :  { %v3950_v42 = vpop.eup %3949 }
 0x813   :  { %v2460_v44 = vmul.f32 %v3950_v42, %v2459_v41 }
 0x815   :  { %v2462_v45 = vadd.f32 %v2461_v43, %v2460_v44 }
 0x817   :  { %v2464_v46 = vcombine.high %v2462_v45, %v2462_v45  ;;  %v2471_v17 = vrot.slane %v2462_v45, %v4439_v63  ;;  %2529 = vst [vmem:[#allocation9] sm:$0xff] %v2462_v45 }
 0x818   :  { %4071 = shalt.err (!%p4068_p5)
}
 0x819   :  { %2551 = dma.vmem_to_hbm [thread:$0]  %s2549_s11, 128, %s5315_s5, [#allocation10]   ;;  %v2478_v47 = vrot.slane %v2464_v46, %v4439_v63  ;;  %v2479_v5 = vcombine.high %v2471_v17, %v2471_v17  ;;  %v2487_v48 = vrot.slane %v2471_v17, %v4439_v63  ;;  %2607 = vst.sshfl [vmem:[#allocation8 + $0x7] sm:$0x1 pattern:$0x73625140] %v2471_v17 }
 0x81a   :  { %s4117_s15 = smov [#allocation8]  }
 0x81b   :  { %v2480_v49 = vcombine.high %v2478_v47, %v2478_v47  ;;  %v2494_v6 = vrot.slane %v2478_v47, %v4439_v63  ;;  %v2501_v7 = vrot.slane %v2479_v5, %v4439_v63  ;;  %v2509_v8 = vcombine.high %v2487_v48, %v2487_v48  ;;  %2608 = vst.sshfl [vmem:[#allocation8 + $0xf] sm:$0x1 pattern:$0x73625140] %v2479_v5  ;;  %s2535_s16 = sshll.u32 %s4117_s15, 4  ;;  %s2536_s16 = int_to_ptr.vmem [resolvable:$true] %s2535_s16 }
 0x81c   :  { %2609 = vst.sshfl [vmem:[#allocation8 + $0x27] sm:$0x1 pattern:$0x73625140] %v2478_v47  ;;  %s4080_s5 = scalar_lea.vmem %s2536_s16, 1024  ;;  %p4085_p7 = scmp.lt.s32.totalorder %s2536_s16, %s2536_s16 }
 0x81d   :  { %v2508_v9 = vrot.slane %v2480_v49, %v4439_v63  ;;  %v2510_v10 = vcombine.high %v2494_v6, %v2494_v6  ;;  %v2511_v11 = vcombine.high %v2501_v7, %v2501_v7  ;;  %2523 = vst [vmem:[#allocation8 + $0x17] sm:$0x1] %v2509_v8  ;;  %2610 = vst.sshfl [vmem:[#allocation8 + $0x2f] sm:$0x1 pattern:$0x73625140] %v2480_v49  ;;  %p4081_p6 = scmp.ne.s32.totalorder %s2536_s16, %s4080_s5  ;;  %p4086_p8 = scmp.lt.s32.totalorder %s4080_s5, %s4080_s5 }
 0x81f   :  { %v2512_v12 = vcombine.high %v2508_v9, %v2508_v9  ;;  %2524 = vst [vmem:[#allocation8 + $0x1f] sm:$0x1] %v2511_v11  ;;  %2527 = vst [vmem:[#allocation8 + $0x37] sm:$0x1] %v2510_v10  ;;  %p4087_p9 = por %p4086_p8, %p4085_p7 }
 0x821   :  { %2528 = vst [vmem:[#allocation8 + $0x3f] sm:$0x1] %v2512_v12  ;;  %p4088_p10 = pnand %p4087_p9, %p4081_p6 }
 0x823   :  { %4091 = shalt.err (!%p4088_p10)
}
 0x824   :  { %s4118_s17 = smov 128   ;;  %s4119_s18 = smov 8  }
 0x825   :  { %2541 = dma.vmem_to_hbm [thread:$0]  %s2536_s16, 1024, %s5314_s4, [#allocation4], %s4118_s17, %s4118_s17, %s4119_s18  }
 0x826   :  { %4104 = dma.done.wait [#allocation4], 1024  }
 0x827   :  { %4105 = vsyncadd [#allocation4], 4294966272 }
 0x828   :  { %4106 = dma.done.wait [#allocation10], 128  }
 0x829   :  { %4107 = vsyncadd [#allocation10], 4294967168 }
 0x82a   :  { %2558 = vsyncpa [#allocation3], 1 }
 0x82b   :  { %2559 = vsyncpa [#allocation6], 1 }
 0x82c   :  { %2560 = vsyncpa [#allocation4], 1 }
 0x82d   :  { %2561 = vsyncpa [#allocation10], 1 }

</bundles_post_ra>
